<compile_context>
chip_gen: v7x
topology: tpu7x:2x2x1
jax: 0.10.0
libtpu: 0.0.40
codegen_flags: <defaults>
</compile_context>

<pallas_src>
from functools import partial

import jax
import jax.numpy as jnp
from jax.experimental import pallas as pl
from jax.experimental.pallas import tpu as pltpu


def _csab_kernel(cat_pad_ref, guide_ref, wcat_ref, bcat_ref, w1t_ref, w2t_ref,
                 wsa_ref, out_ref, sp_ref, *, H, W, C):
    f32 = jnp.float32
    bf16 = jnp.bfloat16

    # ---- cat_conv: 3x3 conv (2C -> C) + bias + ReLU as ONE fused bf16 MXU matmul ----
    # im2col: concatenate the 9 shifted (H, W, 2C) bf16 windows along the channel (lane)
    # axis; the single leading-dim merge reshape leaves the lane layout untouched.
    taps = [cat_pad_ref[ky:ky + H, kx:kx + W, :]            # (H, W, 2C) bf16
            for ky in range(3) for kx in range(3)]
    x = jnp.concatenate(taps, axis=-1)                      # (H, W, 9*2C) bf16
    x = x.reshape(H * W, 9 * 2 * C)
    att = jnp.dot(x, wcat_ref[...], preferred_element_type=f32)   # (H*W, C), f32 accumulate
    att = jnp.maximum(att + bcat_ref[...], 0.0)

    # ---- channel attention: stacked avg/max pooled rows -> shared MLP (once) -> sigmoid ----
    avg_c = jnp.mean(att, axis=0, keepdims=True)            # (1, C)
    max_c = jnp.max(att, axis=0, keepdims=True)             # (1, C)
    pooled = jnp.concatenate([avg_c, max_c], axis=0)        # (2, C) -- pads to 8 sublanes anyway
    hmid = jnp.maximum(
        jnp.dot(pooled.astype(bf16), w1t_ref[...], preferred_element_type=f32), 0.0)
    both = jnp.dot(hmid.astype(bf16), w2t_ref[...], preferred_element_type=f32)   # (2, C)
    ca = jax.nn.sigmoid(both[0:1] + both[1:2])              # (1, C), f32

    # ---- spatial attention: channel mean/max -> 7x7 conv (2 -> 1) -> sigmoid ----
    att3 = att.reshape(H, W, C)
    avg_s = jnp.mean(att3, axis=2)                          # (H, W) f32
    max_s = jnp.max(att3, axis=2)                           # (H, W) f32

    sp_ref[...] = jnp.zeros_like(sp_ref)                    # zero pad=3 border, lane-dense buffer
    sp_ref[0, 3:3 + H, 3:3 + W] = avg_s
    sp_ref[1, 3:3 + H, 3:3 + W] = max_s

    # Hoist the 98 SMEM scalar tap-weight reads.
    w_avg = [[wsa_ref[2 * (ky * 7 + kx) + 0] for kx in range(7)] for ky in range(7)]
    w_max = [[wsa_ref[2 * (ky * 7 + kx) + 1] for kx in range(7)] for ky in range(7)]

    # 4 partial accumulators break the 98-deep serial VALU dependency chain; one
    # sublane-shifted row load per (channel, ky), then cheap static lane slices per kx.
    accs = [jnp.zeros((H, W), f32) for _ in range(4)]
    i = 0
    for ky in range(7):
        row_a = sp_ref[0, ky:ky + H, :]                     # (H, 128) lane-dense
        row_m = sp_ref[1, ky:ky + H, :]
        for kx in range(7):
            a = row_a[:, kx:kx + W]
            m = row_m[:, kx:kx + W]
            accs[i & 3] = accs[i & 3] + w_avg[ky][kx] * a
            accs[(i + 1) & 3] = accs[(i + 1) & 3] + w_max[ky][kx] * m
            i += 2
    sa = jax.nn.sigmoid((accs[0] + accs[1]) + (accs[2] + accs[3]))   # (H, W)

    # ---- guide_refined = spatial_mask * (channel_mask * guide) ----
    out = guide_ref[...] * ca.reshape(1, 1, C) * sa.reshape(H, W, 1)
    out_ref[...] = out.astype(out_ref.dtype)


def bilinear_upsample_x2(x):
    """F.interpolate(x, scale_factor=2, mode='bilinear', align_corners=False), NCHW."""
    _, _, h, w = x.shape

    def coords(out_size, in_size):
        i = jnp.arange(out_size, dtype=jnp.float32)
        src = (i + 0.5) * (in_size / out_size) - 0.5
        src = jnp.maximum(src, 0.0)                     # PyTorch clamps negative src to 0
        lo = jnp.minimum(jnp.floor(src).astype(jnp.int32), in_size - 1)
        hi = jnp.minimum(lo + 1, in_size - 1)
        frac = src - lo.astype(jnp.float32)
        return lo, hi, frac

    ylo, yhi, yf = coords(2 * h, h)
    xlo, xhi, xf = coords(2 * w, w)
    top = x[:, :, ylo, :]
    bot = x[:, :, yhi, :]
    rows = top * (1.0 - yf)[None, None, :, None] + bot * yf[None, None, :, None]
    left = rows[:, :, :, xlo]
    right = rows[:, :, :, xhi]
    return left * (1.0 - xf)[None, None, None, :] + right * xf[None, None, None, :]


class CSABPallas:
    """JAX/Pallas port of the PyTorch CSAB module (deterministic synthetic weights)."""

    def __init__(self, in_planes, key):
        C = in_planes
        Ch = in_planes // 16
        assert Ch >= 1, "in_planes must be >= 16 (matches `in_planes // 16` in the module)"
        self.C, self.Ch = C, Ch

        k = jax.random.split(key, 5)
        # cat_conv: Conv2d(2C, C, 3, padding=1) with bias
        b_cat_bound = 1.0 / (2 * C * 9) ** 0.5
        w_cat = jax.random.uniform(k[0], (C, 2 * C, 3, 3), jnp.float32, -b_cat_bound, b_cat_bound)
        b_cat = jax.random.uniform(k[1], (C,), jnp.float32, -b_cat_bound, b_cat_bound)
        # ChannelAttention fc: Conv2d(C, Ch, 1, bias=False), Conv2d(Ch, C, 1, bias=False)
        w1 = jax.random.uniform(k[2], (Ch, C), jnp.float32, -1 / C ** 0.5, 1 / C ** 0.5)
        w2 = jax.random.uniform(k[3], (C, Ch), jnp.float32, -1 / Ch ** 0.5, 1 / Ch ** 0.5)
        # SpatialAttention: Conv2d(2, 1, 7, padding=3, bias=False)
        sa_bound = 1.0 / (2 * 49) ** 0.5
        w_sa = jax.random.uniform(k[4], (1, 2, 7, 7), jnp.float32, -sa_bound, sa_bound)

        # Repack weights into kernel-friendly layouts.  MXU operands are pre-cast to bf16
        # (accumulation stays f32 in-kernel); VPU-side constants stay f32.
        self.w_cat_k = (jnp.transpose(w_cat, (2, 3, 1, 0))           # (3,3,2C,C) [ky,kx,in,out]
                        .reshape(9 * 2 * C, C).astype(jnp.bfloat16))  # (18C, C)
        self.b_cat_k = b_cat.reshape(1, C)                            # f32
        self.w1t = w1.T.astype(jnp.bfloat16)                          # (C, Ch)
        self.w2t = w2.T.astype(jnp.bfloat16)                          # (Ch, C)
        self.w_sa_k = jnp.transpose(w_sa[0], (1, 2, 0)).reshape(-1)   # (98,) f32: [tap*2 + ch]

    def __call__(self, inp, guide):
        # inp:   (N, C, h, w)   NCHW   |   guide: (N, C, 2h, 2w) NCHW
        N, C, h, w = inp.shape
        H, W = 2 * h, 2 * w
        assert C == self.C and guide.shape == (N, C, H, W)

        up = bilinear_upsample_x2(inp)                                # (N, C, H, W) f32
        up_nhwc = jnp.transpose(up, (0, 2, 3, 1))
        guide_nhwc = jnp.transpose(guide, (0, 2, 3, 1)).astype(jnp.float32)
        cat = jnp.concatenate([up_nhwc, guide_nhwc], axis=-1)         # (N, H, W, 2C)
        # pad=1 for the 3x3 conv; bf16 for the MXU path (halves HBM/VMEM traffic).
        cat_pad = jnp.pad(cat, ((0, 0), (1, 1), (1, 1), (0, 0))).astype(jnp.bfloat16)

        # Lane-dense spatial-attention scratch: at least 128 lanes (>= W + 6).
        w_pad = max(128, pl.cdiv(W + 6, 128) * 128)

        kernel = partial(_csab_kernel, H=H, W=W, C=C)
        out_nhwc = pl.pallas_call(
            kernel,
            out_shape=jax.ShapeDtypeStruct((N, H, W, C), jnp.float32),
            grid=(N,),
            in_specs=[
                # Leading batch dim squeezed (None) -> kernel refs are 3-D / 2-D.
                pl.BlockSpec((None, H + 2, W + 2, 2 * C), lambda n: (n, 0, 0, 0)),
                pl.BlockSpec((None, H, W, C), lambda n: (n, 0, 0, 0)),
                pl.BlockSpec((9 * 2 * C, C), lambda n: (0, 0)),
                pl.BlockSpec((1, C), lambda n: (0, 0)),
                pl.BlockSpec((C, self.Ch), lambda n: (0, 0)),
                pl.BlockSpec((self.Ch, C), lambda n: (0, 0)),
                pl.BlockSpec(memory_space=pltpu.MemorySpace.SMEM),    # 7x7 conv taps as scalars
            ],
            out_specs=pl.BlockSpec((None, H, W, C), lambda n: (n, 0, 0, 0)),
            scratch_shapes=[pltpu.VMEM((2, H + 6, w_pad), jnp.float32)],
            compiler_params=pltpu.CompilerParams(
                # Batch iterations are independent -> shard across TCs on v7x megacore.
                dimension_semantics=("parallel",),
                # Explicit VMEM budget: generous on all chips, below v7x's 64 MiB/TC physical.
                vmem_limit_bytes=48 * 1024 * 1024,
            ),
        )(cat_pad, guide_nhwc, self.w_cat_k, self.b_cat_k,
          self.w1t, self.w2t, self.w_sa_k)

        return jnp.transpose(out_nhwc, (0, 3, 1, 2))                  # back to NCHW


if __name__ == "__main__":
    key = jax.random.PRNGKey(0)
    k_in, k_gd, k_w = jax.random.split(key, 3)

    N, C, h, w = 2, 16, 8, 8          # in_planes=16 so in_planes//16 == 1
    inp = jax.random.normal(k_in, (N, C, h, w), jnp.float32)
    guide = jax.random.normal(k_gd, (N, C, 2 * h, 2 * w), jnp.float32)

    csab = CSABPallas(C, k_w)
    out = jax.block_until_ready(csab(inp, guide))

    assert out.shape == (N, C, 2 * h, 2 * w), out.shape
    assert bool(jnp.all(jnp.isfinite(out)))
    print("KERNEL_OK")
</pallas_src>

<mosaic_0001>
module attributes {stable_mosaic.version = 11 : i64} {
  func.func @_csab_kernel(%arg0: i32, %arg1: memref<1x18x18x32xbf16, #tpu.memory_space<vmem>>, %arg2: memref<1x16x16x16xf32, #tpu.memory_space<vmem>>, %arg3: memref<288x16xbf16, #tpu.memory_space<vmem>>, %arg4: memref<1x16xf32, #tpu.memory_space<vmem>>, %arg5: memref<16x1xbf16, #tpu.memory_space<vmem>>, %arg6: memref<1x16xbf16, #tpu.memory_space<vmem>>, %arg7: memref<98xf32, #tpu.memory_space<smem>>, %arg8: memref<1x16x16x16xf32, #tpu.memory_space<vmem>>, %arg9: memref<2x22x128xf32, #tpu.memory_space<vmem>>) attributes {dimension_semantics = [#tpu.dimension_semantics<parallel>], iteration_bounds = array<i64: 2>, scalar_prefetch = 0 : i64, scratch_operands = 1 : i64, tpu.core_type = #tpu.core_type<tc>, window_params = [{transform_indices = @transform_0, window_bounds = array<i64: 1, 18, 18, 32>}, {transform_indices = @transform_1, window_bounds = array<i64: 1, 16, 16, 16>}, {pipeline_mode = #tpu.pipeline_mode<synchronous>, transform_indices = @transform_2, window_bounds = array<i64: 288, 16>}, {pipeline_mode = #tpu.pipeline_mode<synchronous>, transform_indices = @transform_3, window_bounds = array<i64: 1, 16>}, {pipeline_mode = #tpu.pipeline_mode<synchronous>, transform_indices = @transform_4, window_bounds = array<i64: 16, 1>}, {pipeline_mode = #tpu.pipeline_mode<synchronous>, transform_indices = @transform_5, window_bounds = array<i64: 1, 16>}, {transform_indices = @transform_6, window_bounds = array<i64: 98>}, {transform_indices = @transform_7, window_bounds = array<i64: 1, 16, 16, 16>}]} {
    %c0 = arith.constant 0 : index
    %c0_0 = arith.constant 0 : index
    %c0_1 = arith.constant 0 : index
    %c0_2 = arith.constant 0 : index
    %0 = vector.load %arg1[%c0, %c0_0, %c0_1, %c0_2] : memref<1x18x18x32xbf16, #tpu.memory_space<vmem>>, vector<1x16x16x32xbf16>
    %1 = vector.shape_cast %0 : vector<1x16x16x32xbf16> to vector<16x16x32xbf16>
    %c0_3 = arith.constant 0 : index
    %c0_4 = arith.constant 0 : index
    %c1 = arith.constant 1 : index
    %c0_5 = arith.constant 0 : index
    %2 = vector.load %arg1[%c0_3, %c0_4, %c1, %c0_5] : memref<1x18x18x32xbf16, #tpu.memory_space<vmem>>, vector<1x16x16x32xbf16>
    %3 = vector.shape_cast %2 : vector<1x16x16x32xbf16> to vector<16x16x32xbf16>
    %c0_6 = arith.constant 0 : index
    %c0_7 = arith.constant 0 : index
    %c2 = arith.constant 2 : index
    %c0_8 = arith.constant 0 : index
    %4 = vector.load %arg1[%c0_6, %c0_7, %c2, %c0_8] : memref<1x18x18x32xbf16, #tpu.memory_space<vmem>>, vector<1x16x16x32xbf16>
    %5 = vector.shape_cast %4 : vector<1x16x16x32xbf16> to vector<16x16x32xbf16>
    %c0_9 = arith.constant 0 : index
    %c1_10 = arith.constant 1 : index
    %c0_11 = arith.constant 0 : index
    %c0_12 = arith.constant 0 : index
    %6 = vector.load %arg1[%c0_9, %c1_10, %c0_11, %c0_12] : memref<1x18x18x32xbf16, #tpu.memory_space<vmem>>, vector<1x16x16x32xbf16>
    %7 = vector.shape_cast %6 : vector<1x16x16x32xbf16> to vector<16x16x32xbf16>
    %c0_13 = arith.constant 0 : index
    %c1_14 = arith.constant 1 : index
    %c1_15 = arith.constant 1 : index
    %c0_16 = arith.constant 0 : index
    %8 = vector.load %arg1[%c0_13, %c1_14, %c1_15, %c0_16] : memref<1x18x18x32xbf16, #tpu.memory_space<vmem>>, vector<1x16x16x32xbf16>
    %9 = vector.shape_cast %8 : vector<1x16x16x32xbf16> to vector<16x16x32xbf16>
    %c0_17 = arith.constant 0 : index
    %c1_18 = arith.constant 1 : index
    %c2_19 = arith.constant 2 : index
    %c0_20 = arith.constant 0 : index
    %10 = vector.load %arg1[%c0_17, %c1_18, %c2_19, %c0_20] : memref<1x18x18x32xbf16, #tpu.memory_space<vmem>>, vector<1x16x16x32xbf16>
    %11 = vector.shape_cast %10 : vector<1x16x16x32xbf16> to vector<16x16x32xbf16>
    %c0_21 = arith.constant 0 : index
    %c2_22 = arith.constant 2 : index
    %c0_23 = arith.constant 0 : index
    %c0_24 = arith.constant 0 : index
    %12 = vector.load %arg1[%c0_21, %c2_22, %c0_23, %c0_24] : memref<1x18x18x32xbf16, #tpu.memory_space<vmem>>, vector<1x16x16x32xbf16>
    %13 = vector.shape_cast %12 : vector<1x16x16x32xbf16> to vector<16x16x32xbf16>
    %c0_25 = arith.constant 0 : index
    %c2_26 = arith.constant 2 : index
    %c1_27 = arith.constant 1 : index
    %c0_28 = arith.constant 0 : index
    %14 = vector.load %arg1[%c0_25, %c2_26, %c1_27, %c0_28] : memref<1x18x18x32xbf16, #tpu.memory_space<vmem>>, vector<1x16x16x32xbf16>
    %15 = vector.shape_cast %14 : vector<1x16x16x32xbf16> to vector<16x16x32xbf16>
    %c0_29 = arith.constant 0 : index
    %c2_30 = arith.constant 2 : index
    %c2_31 = arith.constant 2 : index
    %c0_32 = arith.constant 0 : index
    %16 = vector.load %arg1[%c0_29, %c2_30, %c2_31, %c0_32] : memref<1x18x18x32xbf16, #tpu.memory_space<vmem>>, vector<1x16x16x32xbf16>
    %17 = vector.shape_cast %16 : vector<1x16x16x32xbf16> to vector<16x16x32xbf16>
    %18 = tpu.concatenate %1, %3, %5, %7, %9, %11, %13, %15, %17 in 2 : vector<16x16x32xbf16>, vector<16x16x32xbf16>, vector<16x16x32xbf16>, vector<16x16x32xbf16>, vector<16x16x32xbf16>, vector<16x16x32xbf16>, vector<16x16x32xbf16>, vector<16x16x32xbf16>, vector<16x16x32xbf16> -> vector<16x16x288xbf16>
    %19 = vector.shape_cast %18 : vector<16x16x288xbf16> to vector<256x288xbf16>
    %c0_33 = arith.constant 0 : index
    %c0_34 = arith.constant 0 : index
    %20 = vector.load %arg3[%c0_33, %c0_34] : memref<288x16xbf16, #tpu.memory_space<vmem>>, vector<288x16xbf16>
    %cst = arith.constant dense<0.000000e+00> : vector<256x16xf32>
    %21 = tpu.matmul %19, %20, %cst {dimension_numbers = #tpu.dot_dimension_numbers<[1], [0], [0], [1], [0, 0, 1, 1], [], []>} : vector<256x288xbf16>, vector<288x16xbf16>, vector<256x16xf32> -> vector<256x16xf32>
    %c0_35 = arith.constant 0 : index
    %c0_36 = arith.constant 0 : index
    %22 = vector.load %arg4[%c0_35, %c0_36] : memref<1x16xf32, #tpu.memory_space<vmem>>, vector<1x16xf32>
    %23 = vector.broadcast %22 : vector<1x16xf32> to vector<256x16xf32>
    %24 = arith.addf %21, %23 : vector<256x16xf32>
    %cst_37 = arith.constant 0.000000e+00 : f32
    %25 = vector.broadcast %cst_37 : f32 to vector<256x16xf32>
    %26 = arith.maximumf %24, %25 : vector<256x16xf32>
    %cst_38 = arith.constant dense<0.000000e+00> : vector<16xf32>
    %27 = vector.multi_reduction <add>, %26, %cst_38 [0] : vector<256x16xf32> to vector<16xf32>
    %28 = vector.shape_cast %27 : vector<16xf32> to vector<1x16xf32>
    %cst_39 = arith.constant 2.560000e+02 : f32
    %29 = vector.broadcast %cst_39 : f32 to vector<1x16xf32>
    %30 = arith.divf %28, %29 : vector<1x16xf32>
    %cst_40 = arith.constant dense<0xFF800000> : vector<16xf32>
    %31 = vector.multi_reduction <maximumf>, %26, %cst_40 [0] : vector<256x16xf32> to vector<16xf32>
    %32 = vector.shape_cast %31 : vector<16xf32> to vector<1x16xf32>
    %33 = tpu.concatenate %30, %32 in 0 : vector<1x16xf32>, vector<1x16xf32> -> vector<2x16xf32>
    %34 = arith.truncf %33 : vector<2x16xf32> to vector<2x16xbf16>
    %c0_41 = arith.constant 0 : index
    %c0_42 = arith.constant 0 : index
    %35 = vector.load %arg5[%c0_41, %c0_42] : memref<16x1xbf16, #tpu.memory_space<vmem>>, vector<16x1xbf16>
    %cst_43 = arith.constant dense<0.000000e+00> : vector<2x1xf32>
    %36 = tpu.matmul %34, %35, %cst_43 {dimension_numbers = #tpu.dot_dimension_numbers<[1], [0], [0], [1], [0, 0, 1, 1], [], []>} : vector<2x16xbf16>, vector<16x1xbf16>, vector<2x1xf32> -> vector<2x1xf32>
    %cst_44 = arith.constant 0.000000e+00 : f32
    %37 = vector.broadcast %cst_44 : f32 to vector<2x1xf32>
    %38 = arith.maximumf %36, %37 : vector<2x1xf32>
    %39 = arith.truncf %38 : vector<2x1xf32> to vector<2x1xbf16>
    %c0_45 = arith.constant 0 : index
    %c0_46 = arith.constant 0 : index
    %40 = vector.load %arg6[%c0_45, %c0_46] : memref<1x16xbf16, #tpu.memory_space<vmem>>, vector<1x16xbf16>
    %cst_47 = arith.constant dense<0.000000e+00> : vector<2x16xf32>
    %41 = tpu.matmul %39, %40, %cst_47 {dimension_numbers = #tpu.dot_dimension_numbers<[1], [0], [0], [1], [0, 0, 1, 1], [], []>} : vector<2x1xbf16>, vector<1x16xbf16>, vector<2x16xf32> -> vector<2x16xf32>
    %42 = vector.extract_strided_slice %41 {offsets = [0, 0], sizes = [1, 16], strides = [1, 1]} : vector<2x16xf32> to vector<1x16xf32>
    %43 = vector.extract_strided_slice %41 {offsets = [1, 0], sizes = [1, 16], strides = [1, 1]} : vector<2x16xf32> to vector<1x16xf32>
    %44 = arith.addf %42, %43 : vector<1x16xf32>
    %45 = arith.negf %44 : vector<1x16xf32>
    %46 = math.exp %45 : vector<1x16xf32>
    %cst_48 = arith.constant 1.000000e+00 : f32
    %47 = vector.broadcast %cst_48 : f32 to vector<1x16xf32>
    %48 = arith.addf %47, %46 : vector<1x16xf32>
    %49 = arith.divf %47, %48 : vector<1x16xf32>
    %50 = vector.shape_cast %26 : vector<256x16xf32> to vector<16x16x16xf32>
    %cst_49 = arith.constant dense<0.000000e+00> : vector<16x16xf32>
    %51 = vector.multi_reduction <add>, %50, %cst_49 [2] : vector<16x16x16xf32> to vector<16x16xf32>
    %cst_50 = arith.constant 1.600000e+01 : f32
    %52 = vector.broadcast %cst_50 : f32 to vector<16x16xf32>
    %53 = arith.divf %51, %52 : vector<16x16xf32>
    %cst_51 = arith.constant dense<0xFF800000> : vector<16x16xf32>
    %54 = vector.multi_reduction <maximumf>, %50, %cst_51 [2] : vector<16x16x16xf32> to vector<16x16xf32>
    %cst_52 = arith.constant 0.000000e+00 : f32
    %55 = vector.broadcast %cst_52 : f32 to vector<2x22x128xf32>
    %c0_53 = arith.constant 0 : index
    %c0_54 = arith.constant 0 : index
    %c0_55 = arith.constant 0 : index
    %56 = vector.load %arg9[%c0_53, %c0_54, %c0_55] : memref<2x22x128xf32, #tpu.memory_space<vmem>>, vector<2x22x128xf32>
    tpu.vector_store %arg9[%c0_53, %c0_54, %c0_55], %55 {strides = array<i32>} : memref<2x22x128xf32, #tpu.memory_space<vmem>>, vector<2x22x128xf32>,
    %c0_56 = arith.constant 0 : index
    %c3 = arith.constant 3 : index
    %c3_57 = arith.constant 3 : index
    %57 = vector.load %arg9[%c0_56, %c3, %c3_57] : memref<2x22x128xf32, #tpu.memory_space<vmem>>, vector<1x16x16xf32>
    %58 = vector.shape_cast %57 : vector<1x16x16xf32> to vector<16x16xf32>
    %59 = vector.shape_cast %53 : vector<16x16xf32> to vector<1x16x16xf32>
    tpu.vector_store %arg9[%c0_56, %c3, %c3_57], %59 {strides = array<i32>} : memref<2x22x128xf32, #tpu.memory_space<vmem>>, vector<1x16x16xf32>,
    %c1_58 = arith.constant 1 : index
    %c3_59 = arith.constant 3 : index
    %c3_60 = arith.constant 3 : index
    %60 = vector.load %arg9[%c1_58, %c3_59, %c3_60] : memref<2x22x128xf32, #tpu.memory_space<vmem>>, vector<1x16x16xf32>
    %61 = vector.shape_cast %60 : vector<1x16x16xf32> to vector<16x16xf32>
    %62 = vector.shape_cast %54 : vector<16x16xf32> to vector<1x16x16xf32>
    tpu.vector_store %arg9[%c1_58, %c3_59, %c3_60], %62 {strides = array<i32>} : memref<2x22x128xf32, #tpu.memory_space<vmem>>, vector<1x16x16xf32>,
    %c0_61 = arith.constant 0 : index
    %63 = memref.load %arg7[%c0_61] : memref<98xf32, #tpu.memory_space<smem>>
    %c2_62 = arith.constant 2 : index
    %64 = memref.load %arg7[%c2_62] : memref<98xf32, #tpu.memory_space<smem>>
    %c4 = arith.constant 4 : index
    %65 = memref.load %arg7[%c4] : memref<98xf32, #tpu.memory_space<smem>>
    %c6 = arith.constant 6 : index
    %66 = memref.load %arg7[%c6] : memref<98xf32, #tpu.memory_space<smem>>
    %c8 = arith.constant 8 : index
    %67 = memref.load %arg7[%c8] : memref<98xf32, #tpu.memory_space<smem>>
    %c10 = arith.constant 10 : index
    %68 = memref.load %arg7[%c10] : memref<98xf32, #tpu.memory_space<smem>>
    %c12 = arith.constant 12 : index
    %69 = memref.load %arg7[%c12] : memref<98xf32, #tpu.memory_space<smem>>
    %c14 = arith.constant 14 : index
    %70 = memref.load %arg7[%c14] : memref<98xf32, #tpu.memory_space<smem>>
    %c16 = arith.constant 16 : index
    %71 = memref.load %arg7[%c16] : memref<98xf32, #tpu.memory_space<smem>>
    %c18 = arith.constant 18 : index
    %72 = memref.load %arg7[%c18] : memref<98xf32, #tpu.memory_space<smem>>
    %c20 = arith.constant 20 : index
    %73 = memref.load %arg7[%c20] : memref<98xf32, #tpu.memory_space<smem>>
    %c22 = arith.constant 22 : index
    %74 = memref.load %arg7[%c22] : memref<98xf32, #tpu.memory_space<smem>>
    %c24 = arith.constant 24 : index
    %75 = memref.load %arg7[%c24] : memref<98xf32, #tpu.memory_space<smem>>
    %c26 = arith.constant 26 : index
    %76 = memref.load %arg7[%c26] : memref<98xf32, #tpu.memory_space<smem>>
    %c28 = arith.constant 28 : index
    %77 = memref.load %arg7[%c28] : memref<98xf32, #tpu.memory_space<smem>>
    %c30 = arith.constant 30 : index
    %78 = memref.load %arg7[%c30] : memref<98xf32, #tpu.memory_space<smem>>
    %c32 = arith.constant 32 : index
    %79 = memref.load %arg7[%c32] : memref<98xf32, #tpu.memory_space<smem>>
    %c34 = arith.constant 34 : index
    %80 = memref.load %arg7[%c34] : memref<98xf32, #tpu.memory_space<smem>>
    %c36 = arith.constant 36 : index
    %81 = memref.load %arg7[%c36] : memref<98xf32, #tpu.memory_space<smem>>
    %c38 = arith.constant 38 : index
    %82 = memref.load %arg7[%c38] : memref<98xf32, #tpu.memory_space<smem>>
    %c40 = arith.constant 40 : index
    %83 = memref.load %arg7[%c40] : memref<98xf32, #tpu.memory_space<smem>>
    %c42 = arith.constant 42 : index
    %84 = memref.load %arg7[%c42] : memref<98xf32, #tpu.memory_space<smem>>
    %c44 = arith.constant 44 : index
    %85 = memref.load %arg7[%c44] : memref<98xf32, #tpu.memory_space<smem>>
    %c46 = arith.constant 46 : index
    %86 = memref.load %arg7[%c46] : memref<98xf32, #tpu.memory_space<smem>>
    %c48 = arith.constant 48 : index
    %87 = memref.load %arg7[%c48] : memref<98xf32, #tpu.memory_space<smem>>
    %c50 = arith.constant 50 : index
    %88 = memref.load %arg7[%c50] : memref<98xf32, #tpu.memory_space<smem>>
    %c52 = arith.constant 52 : index
    %89 = memref.load %arg7[%c52] : memref<98xf32, #tpu.memory_space<smem>>
    %c54 = arith.constant 54 : index
    %90 = memref.load %arg7[%c54] : memref<98xf32, #tpu.memory_space<smem>>
    %c56 = arith.constant 56 : index
    %91 = memref.load %arg7[%c56] : memref<98xf32, #tpu.memory_space<smem>>
    %c58 = arith.constant 58 : index
    %92 = memref.load %arg7[%c58] : memref<98xf32, #tpu.memory_space<smem>>
    %c60 = arith.constant 60 : index
    %93 = memref.load %arg7[%c60] : memref<98xf32, #tpu.memory_space<smem>>
    %c62 = arith.constant 62 : index
    %94 = memref.load %arg7[%c62] : memref<98xf32, #tpu.memory_space<smem>>
    %c64 = arith.constant 64 : index
    %95 = memref.load %arg7[%c64] : memref<98xf32, #tpu.memory_space<smem>>
    %c66 = arith.constant 66 : index
    %96 = memref.load %arg7[%c66] : memref<98xf32, #tpu.memory_space<smem>>
    %c68 = arith.constant 68 : index
    %97 = memref.load %arg7[%c68] : memref<98xf32, #tpu.memory_space<smem>>
    %c70 = arith.constant 70 : index
    %98 = memref.load %arg7[%c70] : memref<98xf32, #tpu.memory_space<smem>>
    %c72 = arith.constant 72 : index
    %99 = memref.load %arg7[%c72] : memref<98xf32, #tpu.memory_space<smem>>
    %c74 = arith.constant 74 : index
    %100 = memref.load %arg7[%c74] : memref<98xf32, #tpu.memory_space<smem>>
    %c76 = arith.constant 76 : index
    %101 = memref.load %arg7[%c76] : memref<98xf32, #tpu.memory_space<smem>>
    %c78 = arith.constant 78 : index
    %102 = memref.load %arg7[%c78] : memref<98xf32, #tpu.memory_space<smem>>
    %c80 = arith.constant 80 : index
    %103 = memref.load %arg7[%c80] : memref<98xf32, #tpu.memory_space<smem>>
    %c82 = arith.constant 82 : index
    %104 = memref.load %arg7[%c82] : memref<98xf32, #tpu.memory_space<smem>>
    %c84 = arith.constant 84 : index
    %105 = memref.load %arg7[%c84] : memref<98xf32, #tpu.memory_space<smem>>
    %c86 = arith.constant 86 : index
    %106 = memref.load %arg7[%c86] : memref<98xf32, #tpu.memory_space<smem>>
    %c88 = arith.constant 88 : index
    %107 = memref.load %arg7[%c88] : memref<98xf32, #tpu.memory_space<smem>>
    %c90 = arith.constant 90 : index
    %108 = memref.load %arg7[%c90] : memref<98xf32, #tpu.memory_space<smem>>
    %c92 = arith.constant 92 : index
    %109 = memref.load %arg7[%c92] : memref<98xf32, #tpu.memory_space<smem>>
    %c94 = arith.constant 94 : index
    %110 = memref.load %arg7[%c94] : memref<98xf32, #tpu.memory_space<smem>>
    %c96 = arith.constant 96 : index
    %111 = memref.load %arg7[%c96] : memref<98xf32, #tpu.memory_space<smem>>
    %c1_63 = arith.constant 1 : index
    %112 = memref.load %arg7[%c1_63] : memref<98xf32, #tpu.memory_space<smem>>
    %c3_64 = arith.constant 3 : index
    %113 = memref.load %arg7[%c3_64] : memref<98xf32, #tpu.memory_space<smem>>
    %c5 = arith.constant 5 : index
    %114 = memref.load %arg7[%c5] : memref<98xf32, #tpu.memory_space<smem>>
    %c7 = arith.constant 7 : index
    %115 = memref.load %arg7[%c7] : memref<98xf32, #tpu.memory_space<smem>>
    %c9 = arith.constant 9 : index
    %116 = memref.load %arg7[%c9] : memref<98xf32, #tpu.memory_space<smem>>
    %c11 = arith.constant 11 : index
    %117 = memref.load %arg7[%c11] : memref<98xf32, #tpu.memory_space<smem>>
    %c13 = arith.constant 13 : index
    %118 = memref.load %arg7[%c13] : memref<98xf32, #tpu.memory_space<smem>>
    %c15 = arith.constant 15 : index
    %119 = memref.load %arg7[%c15] : memref<98xf32, #tpu.memory_space<smem>>
    %c17 = arith.constant 17 : index
    %120 = memref.load %arg7[%c17] : memref<98xf32, #tpu.memory_space<smem>>
    %c19 = arith.constant 19 : index
    %121 = memref.load %arg7[%c19] : memref<98xf32, #tpu.memory_space<smem>>
    %c21 = arith.constant 21 : index
    %122 = memref.load %arg7[%c21] : memref<98xf32, #tpu.memory_space<smem>>
    %c23 = arith.constant 23 : index
    %123 = memref.load %arg7[%c23] : memref<98xf32, #tpu.memory_space<smem>>
    %c25 = arith.constant 25 : index
    %124 = memref.load %arg7[%c25] : memref<98xf32, #tpu.memory_space<smem>>
    %c27 = arith.constant 27 : index
    %125 = memref.load %arg7[%c27] : memref<98xf32, #tpu.memory_space<smem>>
    %c29 = arith.constant 29 : index
    %126 = memref.load %arg7[%c29] : memref<98xf32, #tpu.memory_space<smem>>
    %c31 = arith.constant 31 : index
    %127 = memref.load %arg7[%c31] : memref<98xf32, #tpu.memory_space<smem>>
    %c33 = arith.constant 33 : index
    %128 = memref.load %arg7[%c33] : memref<98xf32, #tpu.memory_space<smem>>
    %c35 = arith.constant 35 : index
    %129 = memref.load %arg7[%c35] : memref<98xf32, #tpu.memory_space<smem>>
    %c37 = arith.constant 37 : index
    %130 = memref.load %arg7[%c37] : memref<98xf32, #tpu.memory_space<smem>>
    %c39 = arith.constant 39 : index
    %131 = memref.load %arg7[%c39] : memref<98xf32, #tpu.memory_space<smem>>
    %c41 = arith.constant 41 : index
    %132 = memref.load %arg7[%c41] : memref<98xf32, #tpu.memory_space<smem>>
    %c43 = arith.constant 43 : index
    %133 = memref.load %arg7[%c43] : memref<98xf32, #tpu.memory_space<smem>>
    %c45 = arith.constant 45 : index
    %134 = memref.load %arg7[%c45] : memref<98xf32, #tpu.memory_space<smem>>
    %c47 = arith.constant 47 : index
    %135 = memref.load %arg7[%c47] : memref<98xf32, #tpu.memory_space<smem>>
    %c49 = arith.constant 49 : index
    %136 = memref.load %arg7[%c49] : memref<98xf32, #tpu.memory_space<smem>>
    %c51 = arith.constant 51 : index
    %137 = memref.load %arg7[%c51] : memref<98xf32, #tpu.memory_space<smem>>
    %c53 = arith.constant 53 : index
    %138 = memref.load %arg7[%c53] : memref<98xf32, #tpu.memory_space<smem>>
    %c55 = arith.constant 55 : index
    %139 = memref.load %arg7[%c55] : memref<98xf32, #tpu.memory_space<smem>>
    %c57 = arith.constant 57 : index
    %140 = memref.load %arg7[%c57] : memref<98xf32, #tpu.memory_space<smem>>
    %c59 = arith.constant 59 : index
    %141 = memref.load %arg7[%c59] : memref<98xf32, #tpu.memory_space<smem>>
    %c61 = arith.constant 61 : index
    %142 = memref.load %arg7[%c61] : memref<98xf32, #tpu.memory_space<smem>>
    %c63 = arith.constant 63 : index
    %143 = memref.load %arg7[%c63] : memref<98xf32, #tpu.memory_space<smem>>
    %c65 = arith.constant 65 : index
    %144 = memref.load %arg7[%c65] : memref<98xf32, #tpu.memory_space<smem>>
    %c67 = arith.constant 67 : index
    %145 = memref.load %arg7[%c67] : memref<98xf32, #tpu.memory_space<smem>>
    %c69 = arith.constant 69 : index
    %146 = memref.load %arg7[%c69] : memref<98xf32, #tpu.memory_space<smem>>
    %c71 = arith.constant 71 : index
    %147 = memref.load %arg7[%c71] : memref<98xf32, #tpu.memory_space<smem>>
    %c73 = arith.constant 73 : index
    %148 = memref.load %arg7[%c73] : memref<98xf32, #tpu.memory_space<smem>>
    %c75 = arith.constant 75 : index
    %149 = memref.load %arg7[%c75] : memref<98xf32, #tpu.memory_space<smem>>
    %c77 = arith.constant 77 : index
    %150 = memref.load %arg7[%c77] : memref<98xf32, #tpu.memory_space<smem>>
    %c79 = arith.constant 79 : index
    %151 = memref.load %arg7[%c79] : memref<98xf32, #tpu.memory_space<smem>>
    %c81 = arith.constant 81 : index
    %152 = memref.load %arg7[%c81] : memref<98xf32, #tpu.memory_space<smem>>
    %c83 = arith.constant 83 : index
    %153 = memref.load %arg7[%c83] : memref<98xf32, #tpu.memory_space<smem>>
    %c85 = arith.constant 85 : index
    %154 = memref.load %arg7[%c85] : memref<98xf32, #tpu.memory_space<smem>>
    %c87 = arith.constant 87 : index
    %155 = memref.load %arg7[%c87] : memref<98xf32, #tpu.memory_space<smem>>
    %c89 = arith.constant 89 : index
    %156 = memref.load %arg7[%c89] : memref<98xf32, #tpu.memory_space<smem>>
    %c91 = arith.constant 91 : index
    %157 = memref.load %arg7[%c91] : memref<98xf32, #tpu.memory_space<smem>>
    %c93 = arith.constant 93 : index
    %158 = memref.load %arg7[%c93] : memref<98xf32, #tpu.memory_space<smem>>
    %c95 = arith.constant 95 : index
    %159 = memref.load %arg7[%c95] : memref<98xf32, #tpu.memory_space<smem>>
    %c97 = arith.constant 97 : index
    %160 = memref.load %arg7[%c97] : memref<98xf32, #tpu.memory_space<smem>>
    %cst_65 = arith.constant 0.000000e+00 : f32
    %161 = vector.broadcast %cst_65 : f32 to vector<16x16xf32>
    %cst_66 = arith.constant 0.000000e+00 : f32
    %162 = vector.broadcast %cst_66 : f32 to vector<16x16xf32>
    %cst_67 = arith.constant 0.000000e+00 : f32
    %163 = vector.broadcast %cst_67 : f32 to vector<16x16xf32>
    %cst_68 = arith.constant 0.000000e+00 : f32
    %164 = vector.broadcast %cst_68 : f32 to vector<16x16xf32>
    %c0_69 = arith.constant 0 : index
    %c0_70 = arith.constant 0 : index
    %c0_71 = arith.constant 0 : index
    %165 = vector.load %arg9[%c0_69, %c0_70, %c0_71] : memref<2x22x128xf32, #tpu.memory_space<vmem>>, vector<1x16x128xf32>
    %166 = vector.shape_cast %165 : vector<1x16x128xf32> to vector<16x128xf32>
    %c1_72 = arith.constant 1 : index
    %c0_73 = arith.constant 0 : index
    %c0_74 = arith.constant 0 : index
    %167 = vector.load %arg9[%c1_72, %c0_73, %c0_74] : memref<2x22x128xf32, #tpu.memory_space<vmem>>, vector<1x16x128xf32>
    %168 = vector.shape_cast %167 : vector<1x16x128xf32> to vector<16x128xf32>
    %169 = vector.extract_strided_slice %166 {offsets = [0, 0], sizes = [16, 16], strides = [1, 1]} : vector<16x128xf32> to vector<16x16xf32>
    %170 = vector.extract_strided_slice %168 {offsets = [0, 0], sizes = [16, 16], strides = [1, 1]} : vector<16x128xf32> to vector<16x16xf32>
    %171 = vector.broadcast %63 : f32 to vector<16x16xf32>
    %172 = arith.mulf %171, %169 : vector<16x16xf32>
    %173 = arith.addf %161, %172 : vector<16x16xf32>
    %174 = vector.broadcast %112 : f32 to vector<16x16xf32>
    %175 = arith.mulf %174, %170 : vector<16x16xf32>
    %176 = arith.addf %162, %175 : vector<16x16xf32>
    %177 = vector.extract_strided_slice %166 {offsets = [0, 1], sizes = [16, 16], strides = [1, 1]} : vector<16x128xf32> to vector<16x16xf32>
    %178 = vector.extract_strided_slice %168 {offsets = [0, 1], sizes = [16, 16], strides = [1, 1]} : vector<16x128xf32> to vector<16x16xf32>
    %179 = vector.broadcast %64 : f32 to vector<16x16xf32>
    %180 = arith.mulf %179, %177 : vector<16x16xf32>
    %181 = arith.addf %163, %180 : vector<16x16xf32>
    %182 = vector.broadcast %113 : f32 to vector<16x16xf32>
    %183 = arith.mulf %182, %178 : vector<16x16xf32>
    %184 = arith.addf %164, %183 : vector<16x16xf32>
    %185 = vector.extract_strided_slice %166 {offsets = [0, 2], sizes = [16, 16], strides = [1, 1]} : vector<16x128xf32> to vector<16x16xf32>
    %186 = vector.extract_strided_slice %168 {offsets = [0, 2], sizes = [16, 16], strides = [1, 1]} : vector<16x128xf32> to vector<16x16xf32>
    %187 = vector.broadcast %65 : f32 to vector<16x16xf32>
    %188 = arith.mulf %187, %185 : vector<16x16xf32>
    %189 = arith.addf %173, %188 : vector<16x16xf32>
    %190 = vector.broadcast %114 : f32 to vector<16x16xf32>
    %191 = arith.mulf %190, %186 : vector<16x16xf32>
    %192 = arith.addf %176, %191 : vector<16x16xf32>
    %193 = vector.extract_strided_slice %166 {offsets = [0, 3], sizes = [16, 16], strides = [1, 1]} : vector<16x128xf32> to vector<16x16xf32>
    %194 = vector.extract_strided_slice %168 {offsets = [0, 3], sizes = [16, 16], strides = [1, 1]} : vector<16x128xf32> to vector<16x16xf32>
    %195 = vector.broadcast %66 : f32 to vector<16x16xf32>
    %196 = arith.mulf %195, %193 : vector<16x16xf32>
    %197 = arith.addf %181, %196 : vector<16x16xf32>
    %198 = vector.broadcast %115 : f32 to vector<16x16xf32>
    %199 = arith.mulf %198, %194 : vector<16x16xf32>
    %200 = arith.addf %184, %199 : vector<16x16xf32>
    %201 = vector.extract_strided_slice %166 {offsets = [0, 4], sizes = [16, 16], strides = [1, 1]} : vector<16x128xf32> to vector<16x16xf32>
    %202 = vector.extract_strided_slice %168 {offsets = [0, 4], sizes = [16, 16], strides = [1, 1]} : vector<16x128xf32> to vector<16x16xf32>
    %203 = vector.broadcast %67 : f32 to vector<16x16xf32>
    %204 = arith.mulf %203, %201 : vector<16x16xf32>
    %205 = arith.addf %189, %204 : vector<16x16xf32>
    %206 = vector.broadcast %116 : f32 to vector<16x16xf32>
    %207 = arith.mulf %206, %202 : vector<16x16xf32>
    %208 = arith.addf %192, %207 : vector<16x16xf32>
    %209 = vector.extract_strided_slice %166 {offsets = [0, 5], sizes = [16, 16], strides = [1, 1]} : vector<16x128xf32> to vector<16x16xf32>
    %210 = vector.extract_strided_slice %168 {offsets = [0, 5], sizes = [16, 16], strides = [1, 1]} : vector<16x128xf32> to vector<16x16xf32>
    %211 = vector.broadcast %68 : f32 to vector<16x16xf32>
    %212 = arith.mulf %211, %209 : vector<16x16xf32>
    %213 = arith.addf %197, %212 : vector<16x16xf32>
    %214 = vector.broadcast %117 : f32 to vector<16x16xf32>
    %215 = arith.mulf %214, %210 : vector<16x16xf32>
    %216 = arith.addf %200, %215 : vector<16x16xf32>
    %217 = vector.extract_strided_slice %166 {offsets = [0, 6], sizes = [16, 16], strides = [1, 1]} : vector<16x128xf32> to vector<16x16xf32>
    %218 = vector.extract_strided_slice %168 {offsets = [0, 6], sizes = [16, 16], strides = [1, 1]} : vector<16x128xf32> to vector<16x16xf32>
    %219 = vector.broadcast %69 : f32 to vector<16x16xf32>
    %220 = arith.mulf %219, %217 : vector<16x16xf32>
    %221 = arith.addf %205, %220 : vector<16x16xf32>
    %222 = vector.broadcast %118 : f32 to vector<16x16xf32>
    %223 = arith.mulf %222, %218 : vector<16x16xf32>
    %224 = arith.addf %208, %223 : vector<16x16xf32>
    %c0_75 = arith.constant 0 : index
    %c1_76 = arith.constant 1 : index
    %c0_77 = arith.constant 0 : index
    %225 = vector.load %arg9[%c0_75, %c1_76, %c0_77] : memref<2x22x128xf32, #tpu.memory_space<vmem>>, vector<1x16x128xf32>
    %226 = vector.shape_cast %225 : vector<1x16x128xf32> to vector<16x128xf32>
    %c1_78 = arith.constant 1 : index
    %c1_79 = arith.constant 1 : index
    %c0_80 = arith.constant 0 : index
    %227 = vector.load %arg9[%c1_78, %c1_79, %c0_80] : memref<2x22x128xf32, #tpu.memory_space<vmem>>, vector<1x16x128xf32>
    %228 = vector.shape_cast %227 : vector<1x16x128xf32> to vector<16x128xf32>
    %229 = vector.extract_strided_slice %226 {offsets = [0, 0], sizes = [16, 16], strides = [1, 1]} : vector<16x128xf32> to vector<16x16xf32>
    %230 = vector.extract_strided_slice %228 {offsets = [0, 0], sizes = [16, 16], strides = [1, 1]} : vector<16x128xf32> to vector<16x16xf32>
    %231 = vector.broadcast %70 : f32 to vector<16x16xf32>
    %232 = arith.mulf %231, %229 : vector<16x16xf32>
    %233 = arith.addf %213, %232 : vector<16x16xf32>
    %234 = vector.broadcast %119 : f32 to vector<16x16xf32>
    %235 = arith.mulf %234, %230 : vector<16x16xf32>
    %236 = arith.addf %216, %235 : vector<16x16xf32>
    %237 = vector.extract_strided_slice %226 {offsets = [0, 1], sizes = [16, 16], strides = [1, 1]} : vector<16x128xf32> to vector<16x16xf32>
    %238 = vector.extract_strided_slice %228 {offsets = [0, 1], sizes = [16, 16], strides = [1, 1]} : vector<16x128xf32> to vector<16x16xf32>
    %239 = vector.broadcast %71 : f32 to vector<16x16xf32>
    %240 = arith.mulf %239, %237 : vector<16x16xf32>
    %241 = arith.addf %221, %240 : vector<16x16xf32>
    %242 = vector.broadcast %120 : f32 to vector<16x16xf32>
    %243 = arith.mulf %242, %238 : vector<16x16xf32>
    %244 = arith.addf %224, %243 : vector<16x16xf32>
    %245 = vector.extract_strided_slice %226 {offsets = [0, 2], sizes = [16, 16], strides = [1, 1]} : vector<16x128xf32> to vector<16x16xf32>
    %246 = vector.extract_strided_slice %228 {offsets = [0, 2], sizes = [16, 16], strides = [1, 1]} : vector<16x128xf32> to vector<16x16xf32>
    %247 = vector.broadcast %72 : f32 to vector<16x16xf32>
    %248 = arith.mulf %247, %245 : vector<16x16xf32>
    %249 = arith.addf %233, %248 : vector<16x16xf32>
    %250 = vector.broadcast %121 : f32 to vector<16x16xf32>
    %251 = arith.mulf %250, %246 : vector<16x16xf32>
    %252 = arith.addf %236, %251 : vector<16x16xf32>
    %253 = vector.extract_strided_slice %226 {offsets = [0, 3], sizes = [16, 16], strides = [1, 1]} : vector<16x128xf32> to vector<16x16xf32>
    %254 = vector.extract_strided_slice %228 {offsets = [0, 3], sizes = [16, 16], strides = [1, 1]} : vector<16x128xf32> to vector<16x16xf32>
    %255 = vector.broadcast %73 : f32 to vector<16x16xf32>
    %256 = arith.mulf %255, %253 : vector<16x16xf32>
    %257 = arith.addf %241, %256 : vector<16x16xf32>
    %258 = vector.broadcast %122 : f32 to vector<16x16xf32>
    %259 = arith.mulf %258, %254 : vector<16x16xf32>
    %260 = arith.addf %244, %259 : vector<16x16xf32>
    %261 = vector.extract_strided_slice %226 {offsets = [0, 4], sizes = [16, 16], strides = [1, 1]} : vector<16x128xf32> to vector<16x16xf32>
    %262 = vector.extract_strided_slice %228 {offsets = [0, 4], sizes = [16, 16], strides = [1, 1]} : vector<16x128xf32> to vector<16x16xf32>
    %263 = vector.broadcast %74 : f32 to vector<16x16xf32>
    %264 = arith.mulf %263, %261 : vector<16x16xf32>
    %265 = arith.addf %249, %264 : vector<16x16xf32>
    %266 = vector.broadcast %123 : f32 to vector<16x16xf32>
    %267 = arith.mulf %266, %262 : vector<16x16xf32>
    %268 = arith.addf %252, %267 : vector<16x16xf32>
    %269 = vector.extract_strided_slice %226 {offsets = [0, 5], sizes = [16, 16], strides = [1, 1]} : vector<16x128xf32> to vector<16x16xf32>
    %270 = vector.extract_strided_slice %228 {offsets = [0, 5], sizes = [16, 16], strides = [1, 1]} : vector<16x128xf32> to vector<16x16xf32>
    %271 = vector.broadcast %75 : f32 to vector<16x16xf32>
    %272 = arith.mulf %271, %269 : vector<16x16xf32>
    %273 = arith.addf %257, %272 : vector<16x16xf32>
    %274 = vector.broadcast %124 : f32 to vector<16x16xf32>
    %275 = arith.mulf %274, %270 : vector<16x16xf32>
    %276 = arith.addf %260, %275 : vector<16x16xf32>
    %277 = vector.extract_strided_slice %226 {offsets = [0, 6], sizes = [16, 16], strides = [1, 1]} : vector<16x128xf32> to vector<16x16xf32>
    %278 = vector.extract_strided_slice %228 {offsets = [0, 6], sizes = [16, 16], strides = [1, 1]} : vector<16x128xf32> to vector<16x16xf32>
    %279 = vector.broadcast %76 : f32 to vector<16x16xf32>
    %280 = arith.mulf %279, %277 : vector<16x16xf32>
    %281 = arith.addf %265, %280 : vector<16x16xf32>
    %282 = vector.broadcast %125 : f32 to vector<16x16xf32>
    %283 = arith.mulf %282, %278 : vector<16x16xf32>
    %284 = arith.addf %268, %283 : vector<16x16xf32>
    %c0_81 = arith.constant 0 : index
    %c2_82 = arith.constant 2 : index
    %c0_83 = arith.constant 0 : index
    %285 = vector.load %arg9[%c0_81, %c2_82, %c0_83] : memref<2x22x128xf32, #tpu.memory_space<vmem>>, vector<1x16x128xf32>
    %286 = vector.shape_cast %285 : vector<1x16x128xf32> to vector<16x128xf32>
    %c1_84 = arith.constant 1 : index
    %c2_85 = arith.constant 2 : index
    %c0_86 = arith.constant 0 : index
    %287 = vector.load %arg9[%c1_84, %c2_85, %c0_86] : memref<2x22x128xf32, #tpu.memory_space<vmem>>, vector<1x16x128xf32>
    %288 = vector.shape_cast %287 : vector<1x16x128xf32> to vector<16x128xf32>
    %289 = vector.extract_strided_slice %286 {offsets = [0, 0], sizes = [16, 16], strides = [1, 1]} : vector<16x128xf32> to vector<16x16xf32>
    %290 = vector.extract_strided_slice %288 {offsets = [0, 0], sizes = [16, 16], strides = [1, 1]} : vector<16x128xf32> to vector<16x16xf32>
    %291 = vector.broadcast %77 : f32 to vector<16x16xf32>
    %292 = arith.mulf %291, %289 : vector<16x16xf32>
    %293 = arith.addf %273, %292 : vector<16x16xf32>
    %294 = vector.broadcast %126 : f32 to vector<16x16xf32>
    %295 = arith.mulf %294, %290 : vector<16x16xf32>
    %296 = arith.addf %276, %295 : vector<16x16xf32>
    %297 = vector.extract_strided_slice %286 {offsets = [0, 1], sizes = [16, 16], strides = [1, 1]} : vector<16x128xf32> to vector<16x16xf32>
    %298 = vector.extract_strided_slice %288 {offsets = [0, 1], sizes = [16, 16], strides = [1, 1]} : vector<16x128xf32> to vector<16x16xf32>
    %299 = vector.broadcast %78 : f32 to vector<16x16xf32>
    %300 = arith.mulf %299, %297 : vector<16x16xf32>
    %301 = arith.addf %281, %300 : vector<16x16xf32>
    %302 = vector.broadcast %127 : f32 to vector<16x16xf32>
    %303 = arith.mulf %302, %298 : vector<16x16xf32>
    %304 = arith.addf %284, %303 : vector<16x16xf32>
    %305 = vector.extract_strided_slice %286 {offsets = [0, 2], sizes = [16, 16], strides = [1, 1]} : vector<16x128xf32> to vector<16x16xf32>
    %306 = vector.extract_strided_slice %288 {offsets = [0, 2], sizes = [16, 16], strides = [1, 1]} : vector<16x128xf32> to vector<16x16xf32>
    %307 = vector.broadcast %79 : f32 to vector<16x16xf32>
    %308 = arith.mulf %307, %305 : vector<16x16xf32>
    %309 = arith.addf %293, %308 : vector<16x16xf32>
    %310 = vector.broadcast %128 : f32 to vector<16x16xf32>
    %311 = arith.mulf %310, %306 : vector<16x16xf32>
    %312 = arith.addf %296, %311 : vector<16x16xf32>
    %313 = vector.extract_strided_slice %286 {offsets = [0, 3], sizes = [16, 16], strides = [1, 1]} : vector<16x128xf32> to vector<16x16xf32>
    %314 = vector.extract_strided_slice %288 {offsets = [0, 3], sizes = [16, 16], strides = [1, 1]} : vector<16x128xf32> to vector<16x16xf32>
    %315 = vector.broadcast %80 : f32 to vector<16x16xf32>
    %316 = arith.mulf %315, %313 : vector<16x16xf32>
    %317 = arith.addf %301, %316 : vector<16x16xf32>
    %318 = vector.broadcast %129 : f32 to vector<16x16xf32>
    %319 = arith.mulf %318, %314 : vector<16x16xf32>
    %320 = arith.addf %304, %319 : vector<16x16xf32>
    %321 = vector.extract_strided_slice %286 {offsets = [0, 4], sizes = [16, 16], strides = [1, 1]} : vector<16x128xf32> to vector<16x16xf32>
    %322 = vector.extract_strided_slice %288 {offsets = [0, 4], sizes = [16, 16], strides = [1, 1]} : vector<16x128xf32> to vector<16x16xf32>
    %323 = vector.broadcast %81 : f32 to vector<16x16xf32>
    %324 = arith.mulf %323, %321 : vector<16x16xf32>
    %325 = arith.addf %309, %324 : vector<16x16xf32>
    %326 = vector.broadcast %130 : f32 to vector<16x16xf32>
    %327 = arith.mulf %326, %322 : vector<16x16xf32>
    %328 = arith.addf %312, %327 : vector<16x16xf32>
    %329 = vector.extract_strided_slice %286 {offsets = [0, 5], sizes = [16, 16], strides = [1, 1]} : vector<16x128xf32> to vector<16x16xf32>
    %330 = vector.extract_strided_slice %288 {offsets = [0, 5], sizes = [16, 16], strides = [1, 1]} : vector<16x128xf32> to vector<16x16xf32>
    %331 = vector.broadcast %82 : f32 to vector<16x16xf32>
    %332 = arith.mulf %331, %329 : vector<16x16xf32>
    %333 = arith.addf %317, %332 : vector<16x16xf32>
    %334 = vector.broadcast %131 : f32 to vector<16x16xf32>
    %335 = arith.mulf %334, %330 : vector<16x16xf32>
    %336 = arith.addf %320, %335 : vector<16x16xf32>
    %337 = vector.extract_strided_slice %286 {offsets = [0, 6], sizes = [16, 16], strides = [1, 1]} : vector<16x128xf32> to vector<16x16xf32>
    %338 = vector.extract_strided_slice %288 {offsets = [0, 6], sizes = [16, 16], strides = [1, 1]} : vector<16x128xf32> to vector<16x16xf32>
    %339 = vector.broadcast %83 : f32 to vector<16x16xf32>
    %340 = arith.mulf %339, %337 : vector<16x16xf32>
    %341 = arith.addf %325, %340 : vector<16x16xf32>
    %342 = vector.broadcast %132 : f32 to vector<16x16xf32>
    %343 = arith.mulf %342, %338 : vector<16x16xf32>
    %344 = arith.addf %328, %343 : vector<16x16xf32>
    %c0_87 = arith.constant 0 : index
    %c3_88 = arith.constant 3 : index
    %c0_89 = arith.constant 0 : index
    %345 = vector.load %arg9[%c0_87, %c3_88, %c0_89] : memref<2x22x128xf32, #tpu.memory_space<vmem>>, vector<1x16x128xf32>
    %346 = vector.shape_cast %345 : vector<1x16x128xf32> to vector<16x128xf32>
    %c1_90 = arith.constant 1 : index
    %c3_91 = arith.constant 3 : index
    %c0_92 = arith.constant 0 : index
    %347 = vector.load %arg9[%c1_90, %c3_91, %c0_92] : memref<2x22x128xf32, #tpu.memory_space<vmem>>, vector<1x16x128xf32>
    %348 = vector.shape_cast %347 : vector<1x16x128xf32> to vector<16x128xf32>
    %349 = vector.extract_strided_slice %346 {offsets = [0, 0], sizes = [16, 16], strides = [1, 1]} : vector<16x128xf32> to vector<16x16xf32>
    %350 = vector.extract_strided_slice %348 {offsets = [0, 0], sizes = [16, 16], strides = [1, 1]} : vector<16x128xf32> to vector<16x16xf32>
    %351 = vector.broadcast %84 : f32 to vector<16x16xf32>
    %352 = arith.mulf %351, %349 : vector<16x16xf32>
    %353 = arith.addf %333, %352 : vector<16x16xf32>
    %354 = vector.broadcast %133 : f32 to vector<16x16xf32>
    %355 = arith.mulf %354, %350 : vector<16x16xf32>
    %356 = arith.addf %336, %355 : vector<16x16xf32>
    %357 = vector.extract_strided_slice %346 {offsets = [0, 1], sizes = [16, 16], strides = [1, 1]} : vector<16x128xf32> to vector<16x16xf32>
    %358 = vector.extract_strided_slice %348 {offsets = [0, 1], sizes = [16, 16], strides = [1, 1]} : vector<16x128xf32> to vector<16x16xf32>
    %359 = vector.broadcast %85 : f32 to vector<16x16xf32>
    %360 = arith.mulf %359, %357 : vector<16x16xf32>
    %361 = arith.addf %341, %360 : vector<16x16xf32>
    %362 = vector.broadcast %134 : f32 to vector<16x16xf32>
    %363 = arith.mulf %362, %358 : vector<16x16xf32>
    %364 = arith.addf %344, %363 : vector<16x16xf32>
    %365 = vector.extract_strided_slice %346 {offsets = [0, 2], sizes = [16, 16], strides = [1, 1]} : vector<16x128xf32> to vector<16x16xf32>
    %366 = vector.extract_strided_slice %348 {offsets = [0, 2], sizes = [16, 16], strides = [1, 1]} : vector<16x128xf32> to vector<16x16xf32>
    %367 = vector.broadcast %86 : f32 to vector<16x16xf32>
    %368 = arith.mulf %367, %365 : vector<16x16xf32>
    %369 = arith.addf %353, %368 : vector<16x16xf32>
    %370 = vector.broadcast %135 : f32 to vector<16x16xf32>
    %371 = arith.mulf %370, %366 : vector<16x16xf32>
    %372 = arith.addf %356, %371 : vector<16x16xf32>
    %373 = vector.extract_strided_slice %346 {offsets = [0, 3], sizes = [16, 16], strides = [1, 1]} : vector<16x128xf32> to vector<16x16xf32>
    %374 = vector.extract_strided_slice %348 {offsets = [0, 3], sizes = [16, 16], strides = [1, 1]} : vector<16x128xf32> to vector<16x16xf32>
    %375 = vector.broadcast %87 : f32 to vector<16x16xf32>
    %376 = arith.mulf %375, %373 : vector<16x16xf32>
    %377 = arith.addf %361, %376 : vector<16x16xf32>
    %378 = vector.broadcast %136 : f32 to vector<16x16xf32>
    %379 = arith.mulf %378, %374 : vector<16x16xf32>
    %380 = arith.addf %364, %379 : vector<16x16xf32>
    %381 = vector.extract_strided_slice %346 {offsets = [0, 4], sizes = [16, 16], strides = [1, 1]} : vector<16x128xf32> to vector<16x16xf32>
    %382 = vector.extract_strided_slice %348 {offsets = [0, 4], sizes = [16, 16], strides = [1, 1]} : vector<16x128xf32> to vector<16x16xf32>
    %383 = vector.broadcast %88 : f32 to vector<16x16xf32>
    %384 = arith.mulf %383, %381 : vector<16x16xf32>
    %385 = arith.addf %369, %384 : vector<16x16xf32>
    %386 = vector.broadcast %137 : f32 to vector<16x16xf32>
    %387 = arith.mulf %386, %382 : vector<16x16xf32>
    %388 = arith.addf %372, %387 : vector<16x16xf32>
    %389 = vector.extract_strided_slice %346 {offsets = [0, 5], sizes = [16, 16], strides = [1, 1]} : vector<16x128xf32> to vector<16x16xf32>
    %390 = vector.extract_strided_slice %348 {offsets = [0, 5], sizes = [16, 16], strides = [1, 1]} : vector<16x128xf32> to vector<16x16xf32>
    %391 = vector.broadcast %89 : f32 to vector<16x16xf32>
    %392 = arith.mulf %391, %389 : vector<16x16xf32>
    %393 = arith.addf %377, %392 : vector<16x16xf32>
    %394 = vector.broadcast %138 : f32 to vector<16x16xf32>
    %395 = arith.mulf %394, %390 : vector<16x16xf32>
    %396 = arith.addf %380, %395 : vector<16x16xf32>
    %397 = vector.extract_strided_slice %346 {offsets = [0, 6], sizes = [16, 16], strides = [1, 1]} : vector<16x128xf32> to vector<16x16xf32>
    %398 = vector.extract_strided_slice %348 {offsets = [0, 6], sizes = [16, 16], strides = [1, 1]} : vector<16x128xf32> to vector<16x16xf32>
    %399 = vector.broadcast %90 : f32 to vector<16x16xf32>
    %400 = arith.mulf %399, %397 : vector<16x16xf32>
    %401 = arith.addf %385, %400 : vector<16x16xf32>
    %402 = vector.broadcast %139 : f32 to vector<16x16xf32>
    %403 = arith.mulf %402, %398 : vector<16x16xf32>
    %404 = arith.addf %388, %403 : vector<16x16xf32>
    %c0_93 = arith.constant 0 : index
    %c4_94 = arith.constant 4 : index
    %c0_95 = arith.constant 0 : index
    %405 = vector.load %arg9[%c0_93, %c4_94, %c0_95] : memref<2x22x128xf32, #tpu.memory_space<vmem>>, vector<1x16x128xf32>
    %406 = vector.shape_cast %405 : vector<1x16x128xf32> to vector<16x128xf32>
    %c1_96 = arith.constant 1 : index
    %c4_97 = arith.constant 4 : index
    %c0_98 = arith.constant 0 : index
    %407 = vector.load %arg9[%c1_96, %c4_97, %c0_98] : memref<2x22x128xf32, #tpu.memory_space<vmem>>, vector<1x16x128xf32>
    %408 = vector.shape_cast %407 : vector<1x16x128xf32> to vector<16x128xf32>
    %409 = vector.extract_strided_slice %406 {offsets = [0, 0], sizes = [16, 16], strides = [1, 1]} : vector<16x128xf32> to vector<16x16xf32>
    %410 = vector.extract_strided_slice %408 {offsets = [0, 0], sizes = [16, 16], strides = [1, 1]} : vector<16x128xf32> to vector<16x16xf32>
    %411 = vector.broadcast %91 : f32 to vector<16x16xf32>
    %412 = arith.mulf %411, %409 : vector<16x16xf32>
    %413 = arith.addf %393, %412 : vector<16x16xf32>
    %414 = vector.broadcast %140 : f32 to vector<16x16xf32>
    %415 = arith.mulf %414, %410 : vector<16x16xf32>
    %416 = arith.addf %396, %415 : vector<16x16xf32>
    %417 = vector.extract_strided_slice %406 {offsets = [0, 1], sizes = [16, 16], strides = [1, 1]} : vector<16x128xf32> to vector<16x16xf32>
    %418 = vector.extract_strided_slice %408 {offsets = [0, 1], sizes = [16, 16], strides = [1, 1]} : vector<16x128xf32> to vector<16x16xf32>
    %419 = vector.broadcast %92 : f32 to vector<16x16xf32>
    %420 = arith.mulf %419, %417 : vector<16x16xf32>
    %421 = arith.addf %401, %420 : vector<16x16xf32>
    %422 = vector.broadcast %141 : f32 to vector<16x16xf32>
    %423 = arith.mulf %422, %418 : vector<16x16xf32>
    %424 = arith.addf %404, %423 : vector<16x16xf32>
    %425 = vector.extract_strided_slice %406 {offsets = [0, 2], sizes = [16, 16], strides = [1, 1]} : vector<16x128xf32> to vector<16x16xf32>
    %426 = vector.extract_strided_slice %408 {offsets = [0, 2], sizes = [16, 16], strides = [1, 1]} : vector<16x128xf32> to vector<16x16xf32>
    %427 = vector.broadcast %93 : f32 to vector<16x16xf32>
    %428 = arith.mulf %427, %425 : vector<16x16xf32>
    %429 = arith.addf %413, %428 : vector<16x16xf32>
    %430 = vector.broadcast %142 : f32 to vector<16x16xf32>
    %431 = arith.mulf %430, %426 : vector<16x16xf32>
    %432 = arith.addf %416, %431 : vector<16x16xf32>
    %433 = vector.extract_strided_slice %406 {offsets = [0, 3], sizes = [16, 16], strides = [1, 1]} : vector<16x128xf32> to vector<16x16xf32>
    %434 = vector.extract_strided_slice %408 {offsets = [0, 3], sizes = [16, 16], strides = [1, 1]} : vector<16x128xf32> to vector<16x16xf32>
    %435 = vector.broadcast %94 : f32 to vector<16x16xf32>
    %436 = arith.mulf %435, %433 : vector<16x16xf32>
    %437 = arith.addf %421, %436 : vector<16x16xf32>
    %438 = vector.broadcast %143 : f32 to vector<16x16xf32>
    %439 = arith.mulf %438, %434 : vector<16x16xf32>
    %440 = arith.addf %424, %439 : vector<16x16xf32>
    %441 = vector.extract_strided_slice %406 {offsets = [0, 4], sizes = [16, 16], strides = [1, 1]} : vector<16x128xf32> to vector<16x16xf32>
    %442 = vector.extract_strided_slice %408 {offsets = [0, 4], sizes = [16, 16], strides = [1, 1]} : vector<16x128xf32> to vector<16x16xf32>
    %443 = vector.broadcast %95 : f32 to vector<16x16xf32>
    %444 = arith.mulf %443, %441 : vector<16x16xf32>
    %445 = arith.addf %429, %444 : vector<16x16xf32>
    %446 = vector.broadcast %144 : f32 to vector<16x16xf32>
    %447 = arith.mulf %446, %442 : vector<16x16xf32>
    %448 = arith.addf %432, %447 : vector<16x16xf32>
    %449 = vector.extract_strided_slice %406 {offsets = [0, 5], sizes = [16, 16], strides = [1, 1]} : vector<16x128xf32> to vector<16x16xf32>
    %450 = vector.extract_strided_slice %408 {offsets = [0, 5], sizes = [16, 16], strides = [1, 1]} : vector<16x128xf32> to vector<16x16xf32>
    %451 = vector.broadcast %96 : f32 to vector<16x16xf32>
    %452 = arith.mulf %451, %449 : vector<16x16xf32>
    %453 = arith.addf %437, %452 : vector<16x16xf32>
    %454 = vector.broadcast %145 : f32 to vector<16x16xf32>
    %455 = arith.mulf %454, %450 : vector<16x16xf32>
    %456 = arith.addf %440, %455 : vector<16x16xf32>
    %457 = vector.extract_strided_slice %406 {offsets = [0, 6], sizes = [16, 16], strides = [1, 1]} : vector<16x128xf32> to vector<16x16xf32>
    %458 = vector.extract_strided_slice %408 {offsets = [0, 6], sizes = [16, 16], strides = [1, 1]} : vector<16x128xf32> to vector<16x16xf32>
    %459 = vector.broadcast %97 : f32 to vector<16x16xf32>
    %460 = arith.mulf %459, %457 : vector<16x16xf32>
    %461 = arith.addf %445, %460 : vector<16x16xf32>
    %462 = vector.broadcast %146 : f32 to vector<16x16xf32>
    %463 = arith.mulf %462, %458 : vector<16x16xf32>
    %464 = arith.addf %448, %463 : vector<16x16xf32>
    %c0_99 = arith.constant 0 : index
    %c5_100 = arith.constant 5 : index
    %c0_101 = arith.constant 0 : index
    %465 = vector.load %arg9[%c0_99, %c5_100, %c0_101] : memref<2x22x128xf32, #tpu.memory_space<vmem>>, vector<1x16x128xf32>
    %466 = vector.shape_cast %465 : vector<1x16x128xf32> to vector<16x128xf32>
    %c1_102 = arith.constant 1 : index
    %c5_103 = arith.constant 5 : index
    %c0_104 = arith.constant 0 : index
    %467 = vector.load %arg9[%c1_102, %c5_103, %c0_104] : memref<2x22x128xf32, #tpu.memory_space<vmem>>, vector<1x16x128xf32>
    %468 = vector.shape_cast %467 : vector<1x16x128xf32> to vector<16x128xf32>
    %469 = vector.extract_strided_slice %466 {offsets = [0, 0], sizes = [16, 16], strides = [1, 1]} : vector<16x128xf32> to vector<16x16xf32>
    %470 = vector.extract_strided_slice %468 {offsets = [0, 0], sizes = [16, 16], strides = [1, 1]} : vector<16x128xf32> to vector<16x16xf32>
    %471 = vector.broadcast %98 : f32 to vector<16x16xf32>
    %472 = arith.mulf %471, %469 : vector<16x16xf32>
    %473 = arith.addf %453, %472 : vector<16x16xf32>
    %474 = vector.broadcast %147 : f32 to vector<16x16xf32>
    %475 = arith.mulf %474, %470 : vector<16x16xf32>
    %476 = arith.addf %456, %475 : vector<16x16xf32>
    %477 = vector.extract_strided_slice %466 {offsets = [0, 1], sizes = [16, 16], strides = [1, 1]} : vector<16x128xf32> to vector<16x16xf32>
    %478 = vector.extract_strided_slice %468 {offsets = [0, 1], sizes = [16, 16], strides = [1, 1]} : vector<16x128xf32> to vector<16x16xf32>
    %479 = vector.broadcast %99 : f32 to vector<16x16xf32>
    %480 = arith.mulf %479, %477 : vector<16x16xf32>
    %481 = arith.addf %461, %480 : vector<16x16xf32>
    %482 = vector.broadcast %148 : f32 to vector<16x16xf32>
    %483 = arith.mulf %482, %478 : vector<16x16xf32>
    %484 = arith.addf %464, %483 : vector<16x16xf32>
    %485 = vector.extract_strided_slice %466 {offsets = [0, 2], sizes = [16, 16], strides = [1, 1]} : vector<16x128xf32> to vector<16x16xf32>
    %486 = vector.extract_strided_slice %468 {offsets = [0, 2], sizes = [16, 16], strides = [1, 1]} : vector<16x128xf32> to vector<16x16xf32>
    %487 = vector.broadcast %100 : f32 to vector<16x16xf32>
    %488 = arith.mulf %487, %485 : vector<16x16xf32>
    %489 = arith.addf %473, %488 : vector<16x16xf32>
    %490 = vector.broadcast %149 : f32 to vector<16x16xf32>
    %491 = arith.mulf %490, %486 : vector<16x16xf32>
    %492 = arith.addf %476, %491 : vector<16x16xf32>
    %493 = vector.extract_strided_slice %466 {offsets = [0, 3], sizes = [16, 16], strides = [1, 1]} : vector<16x128xf32> to vector<16x16xf32>
    %494 = vector.extract_strided_slice %468 {offsets = [0, 3], sizes = [16, 16], strides = [1, 1]} : vector<16x128xf32> to vector<16x16xf32>
    %495 = vector.broadcast %101 : f32 to vector<16x16xf32>
    %496 = arith.mulf %495, %493 : vector<16x16xf32>
    %497 = arith.addf %481, %496 : vector<16x16xf32>
    %498 = vector.broadcast %150 : f32 to vector<16x16xf32>
    %499 = arith.mulf %498, %494 : vector<16x16xf32>
    %500 = arith.addf %484, %499 : vector<16x16xf32>
    %501 = vector.extract_strided_slice %466 {offsets = [0, 4], sizes = [16, 16], strides = [1, 1]} : vector<16x128xf32> to vector<16x16xf32>
    %502 = vector.extract_strided_slice %468 {offsets = [0, 4], sizes = [16, 16], strides = [1, 1]} : vector<16x128xf32> to vector<16x16xf32>
    %503 = vector.broadcast %102 : f32 to vector<16x16xf32>
    %504 = arith.mulf %503, %501 : vector<16x16xf32>
    %505 = arith.addf %489, %504 : vector<16x16xf32>
    %506 = vector.broadcast %151 : f32 to vector<16x16xf32>
    %507 = arith.mulf %506, %502 : vector<16x16xf32>
    %508 = arith.addf %492, %507 : vector<16x16xf32>
    %509 = vector.extract_strided_slice %466 {offsets = [0, 5], sizes = [16, 16], strides = [1, 1]} : vector<16x128xf32> to vector<16x16xf32>
    %510 = vector.extract_strided_slice %468 {offsets = [0, 5], sizes = [16, 16], strides = [1, 1]} : vector<16x128xf32> to vector<16x16xf32>
    %511 = vector.broadcast %103 : f32 to vector<16x16xf32>
    %512 = arith.mulf %511, %509 : vector<16x16xf32>
    %513 = arith.addf %497, %512 : vector<16x16xf32>
    %514 = vector.broadcast %152 : f32 to vector<16x16xf32>
    %515 = arith.mulf %514, %510 : vector<16x16xf32>
    %516 = arith.addf %500, %515 : vector<16x16xf32>
    %517 = vector.extract_strided_slice %466 {offsets = [0, 6], sizes = [16, 16], strides = [1, 1]} : vector<16x128xf32> to vector<16x16xf32>
    %518 = vector.extract_strided_slice %468 {offsets = [0, 6], sizes = [16, 16], strides = [1, 1]} : vector<16x128xf32> to vector<16x16xf32>
    %519 = vector.broadcast %104 : f32 to vector<16x16xf32>
    %520 = arith.mulf %519, %517 : vector<16x16xf32>
    %521 = arith.addf %505, %520 : vector<16x16xf32>
    %522 = vector.broadcast %153 : f32 to vector<16x16xf32>
    %523 = arith.mulf %522, %518 : vector<16x16xf32>
    %524 = arith.addf %508, %523 : vector<16x16xf32>
    %c0_105 = arith.constant 0 : index
    %c6_106 = arith.constant 6 : index
    %c0_107 = arith.constant 0 : index
    %525 = vector.load %arg9[%c0_105, %c6_106, %c0_107] : memref<2x22x128xf32, #tpu.memory_space<vmem>>, vector<1x16x128xf32>
    %526 = vector.shape_cast %525 : vector<1x16x128xf32> to vector<16x128xf32>
    %c1_108 = arith.constant 1 : index
    %c6_109 = arith.constant 6 : index
    %c0_110 = arith.constant 0 : index
    %527 = vector.load %arg9[%c1_108, %c6_109, %c0_110] : memref<2x22x128xf32, #tpu.memory_space<vmem>>, vector<1x16x128xf32>
    %528 = vector.shape_cast %527 : vector<1x16x128xf32> to vector<16x128xf32>
    %529 = vector.extract_strided_slice %526 {offsets = [0, 0], sizes = [16, 16], strides = [1, 1]} : vector<16x128xf32> to vector<16x16xf32>
    %530 = vector.extract_strided_slice %528 {offsets = [0, 0], sizes = [16, 16], strides = [1, 1]} : vector<16x128xf32> to vector<16x16xf32>
    %531 = vector.broadcast %105 : f32 to vector<16x16xf32>
    %532 = arith.mulf %531, %529 : vector<16x16xf32>
    %533 = arith.addf %513, %532 : vector<16x16xf32>
    %534 = vector.broadcast %154 : f32 to vector<16x16xf32>
    %535 = arith.mulf %534, %530 : vector<16x16xf32>
    %536 = arith.addf %516, %535 : vector<16x16xf32>
    %537 = vector.extract_strided_slice %526 {offsets = [0, 1], sizes = [16, 16], strides = [1, 1]} : vector<16x128xf32> to vector<16x16xf32>
    %538 = vector.extract_strided_slice %528 {offsets = [0, 1], sizes = [16, 16], strides = [1, 1]} : vector<16x128xf32> to vector<16x16xf32>
    %539 = vector.broadcast %106 : f32 to vector<16x16xf32>
    %540 = arith.mulf %539, %537 : vector<16x16xf32>
    %541 = arith.addf %521, %540 : vector<16x16xf32>
    %542 = vector.broadcast %155 : f32 to vector<16x16xf32>
    %543 = arith.mulf %542, %538 : vector<16x16xf32>
    %544 = arith.addf %524, %543 : vector<16x16xf32>
    %545 = vector.extract_strided_slice %526 {offsets = [0, 2], sizes = [16, 16], strides = [1, 1]} : vector<16x128xf32> to vector<16x16xf32>
    %546 = vector.extract_strided_slice %528 {offsets = [0, 2], sizes = [16, 16], strides = [1, 1]} : vector<16x128xf32> to vector<16x16xf32>
    %547 = vector.broadcast %107 : f32 to vector<16x16xf32>
    %548 = arith.mulf %547, %545 : vector<16x16xf32>
    %549 = arith.addf %533, %548 : vector<16x16xf32>
    %550 = vector.broadcast %156 : f32 to vector<16x16xf32>
    %551 = arith.mulf %550, %546 : vector<16x16xf32>
    %552 = arith.addf %536, %551 : vector<16x16xf32>
    %553 = vector.extract_strided_slice %526 {offsets = [0, 3], sizes = [16, 16], strides = [1, 1]} : vector<16x128xf32> to vector<16x16xf32>
    %554 = vector.extract_strided_slice %528 {offsets = [0, 3], sizes = [16, 16], strides = [1, 1]} : vector<16x128xf32> to vector<16x16xf32>
    %555 = vector.broadcast %108 : f32 to vector<16x16xf32>
    %556 = arith.mulf %555, %553 : vector<16x16xf32>
    %557 = arith.addf %541, %556 : vector<16x16xf32>
    %558 = vector.broadcast %157 : f32 to vector<16x16xf32>
    %559 = arith.mulf %558, %554 : vector<16x16xf32>
    %560 = arith.addf %544, %559 : vector<16x16xf32>
    %561 = vector.extract_strided_slice %526 {offsets = [0, 4], sizes = [16, 16], strides = [1, 1]} : vector<16x128xf32> to vector<16x16xf32>
    %562 = vector.extract_strided_slice %528 {offsets = [0, 4], sizes = [16, 16], strides = [1, 1]} : vector<16x128xf32> to vector<16x16xf32>
    %563 = vector.broadcast %109 : f32 to vector<16x16xf32>
    %564 = arith.mulf %563, %561 : vector<16x16xf32>
    %565 = arith.addf %549, %564 : vector<16x16xf32>
    %566 = vector.broadcast %158 : f32 to vector<16x16xf32>
    %567 = arith.mulf %566, %562 : vector<16x16xf32>
    %568 = arith.addf %552, %567 : vector<16x16xf32>
    %569 = vector.extract_strided_slice %526 {offsets = [0, 5], sizes = [16, 16], strides = [1, 1]} : vector<16x128xf32> to vector<16x16xf32>
    %570 = vector.extract_strided_slice %528 {offsets = [0, 5], sizes = [16, 16], strides = [1, 1]} : vector<16x128xf32> to vector<16x16xf32>
    %571 = vector.broadcast %110 : f32 to vector<16x16xf32>
    %572 = arith.mulf %571, %569 : vector<16x16xf32>
    %573 = arith.addf %557, %572 : vector<16x16xf32>
    %574 = vector.broadcast %159 : f32 to vector<16x16xf32>
    %575 = arith.mulf %574, %570 : vector<16x16xf32>
    %576 = arith.addf %560, %575 : vector<16x16xf32>
    %577 = vector.extract_strided_slice %526 {offsets = [0, 6], sizes = [16, 16], strides = [1, 1]} : vector<16x128xf32> to vector<16x16xf32>
    %578 = vector.extract_strided_slice %528 {offsets = [0, 6], sizes = [16, 16], strides = [1, 1]} : vector<16x128xf32> to vector<16x16xf32>
    %579 = vector.broadcast %111 : f32 to vector<16x16xf32>
    %580 = arith.mulf %579, %577 : vector<16x16xf32>
    %581 = arith.addf %565, %580 : vector<16x16xf32>
    %582 = vector.broadcast %160 : f32 to vector<16x16xf32>
    %583 = arith.mulf %582, %578 : vector<16x16xf32>
    %584 = arith.addf %568, %583 : vector<16x16xf32>
    %585 = arith.addf %581, %584 : vector<16x16xf32>
    %586 = arith.addf %573, %576 : vector<16x16xf32>
    %587 = arith.addf %585, %586 : vector<16x16xf32>
    %588 = arith.negf %587 : vector<16x16xf32>
    %589 = math.exp %588 : vector<16x16xf32>
    %cst_111 = arith.constant 1.000000e+00 : f32
    %590 = vector.broadcast %cst_111 : f32 to vector<16x16xf32>
    %591 = arith.addf %590, %589 : vector<16x16xf32>
    %592 = arith.divf %590, %591 : vector<16x16xf32>
    %c0_112 = arith.constant 0 : index
    %c0_113 = arith.constant 0 : index
    %c0_114 = arith.constant 0 : index
    %c0_115 = arith.constant 0 : index
    %593 = vector.load %arg2[%c0_112, %c0_113, %c0_114, %c0_115] : memref<1x16x16x16xf32, #tpu.memory_space<vmem>>, vector<1x16x16x16xf32>
    %594 = vector.shape_cast %593 : vector<1x16x16x16xf32> to vector<16x16x16xf32>
    %595 = vector.shape_cast %49 : vector<1x16xf32> to vector<1x1x16xf32>
    %596 = vector.broadcast %595 : vector<1x1x16xf32> to vector<16x16x16xf32>
    %597 = arith.mulf %594, %596 : vector<16x16x16xf32>
    %598 = vector.shape_cast %592 : vector<16x16xf32> to vector<16x16x1xf32>
    %599 = vector.broadcast %598 : vector<16x16x1xf32> to vector<16x16x16xf32>
    %600 = arith.mulf %597, %599 : vector<16x16x16xf32>
    %c0_116 = arith.constant 0 : index
    %c0_117 = arith.constant 0 : index
    %c0_118 = arith.constant 0 : index
    %c0_119 = arith.constant 0 : index
    %601 = vector.load %arg8[%c0_116, %c0_117, %c0_118, %c0_119] : memref<1x16x16x16xf32, #tpu.memory_space<vmem>>, vector<1x16x16x16xf32>
    %602 = vector.shape_cast %601 : vector<1x16x16x16xf32> to vector<16x16x16xf32>
    %603 = vector.shape_cast %600 : vector<16x16x16xf32> to vector<1x16x16x16xf32>
    tpu.vector_store %arg8[%c0_116, %c0_117, %c0_118, %c0_119], %603 {strides = array<i32>} : memref<1x16x16x16xf32, #tpu.memory_space<vmem>>, vector<1x16x16x16xf32>,
    return
  }
  func.func @transform_0(%arg0: i32) -> (i32, i32, i32, i32) {
    %c0_i32 = arith.constant 0 : i32
    %c0_i32_0 = arith.constant 0 : i32
    %c0_i32_1 = arith.constant 0 : i32
    %c0_i32_2 = arith.constant 0 : i32
    return %arg0, %c0_i32, %c0_i32_0, %c0_i32_1 : i32, i32, i32, i32
  }
  func.func @transform_1(%arg0: i32) -> (i32, i32, i32, i32) {
    %c0_i32 = arith.constant 0 : i32
    %c0_i32_0 = arith.constant 0 : i32
    %c0_i32_1 = arith.constant 0 : i32
    %c0_i32_2 = arith.constant 0 : i32
    return %arg0, %c0_i32, %c0_i32_0, %c0_i32_1 : i32, i32, i32, i32
  }
  func.func @transform_2(%arg0: i32) -> (i32, i32) {
    %c0_i32 = arith.constant 0 : i32
    %c0_i32_0 = arith.constant 0 : i32
    %c0_i32_1 = arith.constant 0 : i32
    return %c0_i32, %c0_i32_0 : i32, i32
  }
  func.func @transform_3(%arg0: i32) -> (i32, i32) {
    %c0_i32 = arith.constant 0 : i32
    %c0_i32_0 = arith.constant 0 : i32
    %c0_i32_1 = arith.constant 0 : i32
    return %c0_i32, %c0_i32_0 : i32, i32
  }
  func.func @transform_4(%arg0: i32) -> (i32, i32) {
    %c0_i32 = arith.constant 0 : i32
    %c0_i32_0 = arith.constant 0 : i32
    %c0_i32_1 = arith.constant 0 : i32
    return %c0_i32, %c0_i32_0 : i32, i32
  }
  func.func @transform_5(%arg0: i32) -> (i32, i32) {
    %c0_i32 = arith.constant 0 : i32
    %c0_i32_0 = arith.constant 0 : i32
    %c0_i32_1 = arith.constant 0 : i32
    return %c0_i32, %c0_i32_0 : i32, i32
  }
  func.func @transform_6(%arg0: i32) -> i32 {
    %c0_i32 = arith.constant 0 : i32
    %c0_i32_0 = arith.constant 0 : i32
    return %c0_i32 : i32
  }
  func.func @transform_7(%arg0: i32) -> (i32, i32, i32, i32) {
    %c0_i32 = arith.constant 0 : i32
    %c0_i32_0 = arith.constant 0 : i32
    %c0_i32_1 = arith.constant 0 : i32
    %c0_i32_2 = arith.constant 0 : i32
    return %arg0, %c0_i32, %c0_i32_0, %c0_i32_1 : i32, i32, i32, i32
  }
}

</mosaic_0001>

<bundles_post_ra>
// kernel: tpu_custom_call.1
= control target key start
LH: loop header
LB: loop body
LE: loop exit
PB: predicated region body
PF: predicated region fallthrough
CT: control target
= control target key end

     0   :  { %s9679_s0 = inlined_call_operand.vmem [shape: bf16[2,18,18,32], index: 0, kind: input, shape index: {}]   ;;  %s9680_s1 = inlined_call_operand.vmem [shape: f32[2,16,16,16], index: 1, kind: input, shape index: {}]   ;;  %s9681_s2 = inlined_call_operand.vmem [shape: bf16[288,16], index: 2, kind: input, shape index: {}]   ;;  %s9682_s3 = inlined_call_operand.vmem [shape: f32[1,16], index: 3, kind: input, shape index: {}]   ;;  %s9683_s4 = inlined_call_operand.vmem [shape: bf16[16,1], index: 4, kind: input, shape index: {}]   ;;  %s9684_s5 = inlined_call_operand.vmem [shape: bf16[1,16], index: 5, kind: input, shape index: {}]   ;;  %s9685_s6 = inlined_call_operand.vmem [shape: f32[98], index: 6, kind: input, shape index: {}]   ;;  %s9686_s7 = inlined_call_operand.hbm [shape: f32[2,16,16,16], index: 7, kind: output, shape index: {}]  }
   0x1   :  { %9806 = sst [smem:[#allocation59_spill]] %s9679_s0 }
   0x2   :  { %9807 = sst [smem:[#allocation60_spill]] %s9680_s1 }
   0x3   :  { %9808 = sst [smem:[#allocation61_spill]] %s9681_s2 }
   0x4   :  { %9809 = sst [smem:[#allocation62_spill]] %s9682_s3 }
   0x5   :  { %9810 = sst [smem:[#allocation63_spill]] %s9683_s4 }
   0x6   :  { %9811 = sst [smem:[#allocation64_spill]] %s9684_s5 }
   0x7   :  { %9812 = sst [smem:[#allocation65_spill]] %s9685_s6 }
   0x8   :  { %9813 = sst [smem:[#allocation66_spill]] %s9686_s7 }
   0x9   :  { %12 = vsyncpa [#allocation5], 0 }
   0xa   :  { %13 = vsyncpa [#allocation4], 0 }
   0xb   :  { %15 = vsyncpa [#allocation4 + $0x1], 0  ;;  %s6307_s24 = smov 0   ;;  %s6309_s25 = smov 0  }
   0xc   :  { %s6311_s26 = smov 0   ;;  %s6313_s27 = smov 0  }
   0xd LB: > { %9814 = sst [smem:[#allocation9_spill]] %s6236_s24  ;;  %s6328_s28 = sadd.s32 4294967295, %s6248_s27   ;;  %s6248_s27 = sphi %s6313_s27, %s10004_s27   ;;  %s6244_s26 = sphi %s6311_s26, %s10007_s26   ;;  %s6240_s25 = sphi %s6309_s25, %s10006_s25   ;;  %s6236_s24 = sphi %s6307_s24, %s10005_s24  }
   0xe   : > { %9815 = sst [smem:[#allocation10_spill]] %s6240_s25  ;;  %s5276_s29 = sadd.s32 4294967294, %s6248_s27  }
   0xf   : > { %9816 = sst [smem:[#allocation11_spill]] %s6244_s26  ;;  %s6332_s30 = sadd.s32 1, %s6248_s27  }
  0x10   : > { %9817 = sst [smem:[#allocation12_spill]] %s6248_s27  ;;  %s185_s8 = sadd.s32 1, %s6244_s26 }
  0x11   : > { %9818 = sst [smem:[#allocation13_spill]] %s6328_s28  ;;  %s182_s9 = ssub.s32 %s6248_s27, %s6332_s30 }
  0x12   : > { %9819 = sst [smem:[#allocation14_spill]] %s6332_s30  ;;  %p195_p0 = scmp.ne.s32.totalorder %s6244_s26, %s6240_s25 }
  0x13   : > { %p183_p1 = scmp.eq.s32.totalorder %s182_s9, 0  ;;  %p196_p2 = scmp.eq.s32.totalorder %s6328_s28, 1 }
  0x14   : > { %p201_p3 = scmp.ne.s32.totalorder %s6240_s25, %s6236_s24  ;;  %p202_p4 = scmp.eq.s32.totalorder %s5276_s29, 1 }
  0x15   : > { %s6343_s10 = scalar_select %p183_p1, %s6244_s26, %s185_s8  }
  0x16   : > { %p6345_p5 = por %p196_p2, %p195_p0  ;;  %p6349_p6 = por %p202_p4, %p201_p3 }
  0x17   : > { %9820 = sst [smem:[#allocation15_spill]] %s6343_s10  ;;  %p5277_p7 = scmp.ge.s32.totalorder %s6248_s27, 1 }
  0x18   : > { %s9821_s11 = scalar_select %p6345_p5, 1, 0 }
  0x19   : > { %s9823_s12 = scalar_select %p6349_p6, 1, 0 }
  0x1a   : > { %9822 = sst [smem:[#allocation16_spill]] %s9821_s11  ;;  %p209_p8 = scmp.lt.s32.totalorder %s6248_s27, 3 }
  0x1b   : > { %9824 = sst [smem:[#allocation17_spill]] %s9823_s12  ;;  %p5916_p9 = scmp.eq.s32.totalorder %s6328_s28, 0 }
  0x1c   : > { %p6356_p10 = pnand %p5277_p7, %p209_p8  ;;  %s9826_s6 = sld [smem:[#allocation65_spill]] }
  0x1e   : > { %p5908_p11 = pneg %p6356_p10 }
  0x20   : > { %p5909_p12 = pnand %p5916_p9, %p5908_p11 }
  0x22   : > { %s234_s16 = sshll.u32 %s9826_s6, 4  ;;  %p6169_p0 = pneg %p5909_p12  ;;  %s235_s16 = int_to_ptr.vmem [resolvable:$true] %s234_s16 }
  0x23   : > { %s6167_s17 = scalar_lea.vmem %s235_s16, 16  ;;  %p6175_p3 = scmp.lt.s32.totalorder %s235_s16, %s235_s16 }
  0x24   : > { %p6168_p13 = scmp.ne.s32.totalorder %s235_s16, %s6167_s17  ;;  %p6176_p4 = scmp.lt.s32.totalorder %s6167_s17, %s6167_s17 }
  0x26   : > { %p6170_p1 = pnand %p6169_p0, %p6168_p13  ;;  %p6177_p7 = por %p6176_p4, %p6175_p3 }
  0x28   : > { %p6171_p2 = pneg %p6170_p1 }
  0x2a   : > { %p6178_p8 = pnand %p6177_p7, %p6171_p2 }
  0x2c   : > { %6181 = shalt.err (!%p6178_p8)
}
  0x2d   : > { %s6250_s18 = smov [#allocation3]   ;;  %263 = sbr.rel (%p6356_p10) target bundleno = 1465 (0x5b9), region = 48 }
  0x2e   : > { %5911 = dma.vmem_to_smem (!%p5909_p12), %s235_s16, 16, %s6250_s18, [#allocation5]  }
  0x34   : > { %6227 = dma.done.wait (%p5916_p9), [#allocation5], 16  }
  0x35   : > { %6229 = vsyncadd (%p5916_p9), [#allocation5], 4294967280 }
  0x36   : > { %269 = sfence }
  0x37   : > { %p301_p11 = scmp.lt.s32.totalorder %s6328_s28, 1  ;;  %s9827_s2 = sld [smem:[#allocation61_spill]]  ;;  %vm907_vm0 = vcmask 1046528   ;;  %vm634_vm1 = vsmask.f32 7424  ;;  %vm1948_vm2 = vcmask 261120  }
  0x38   : > { %s9829_s0 = sld [smem:[#allocation59_spill]]  ;;  %s6251_s23 = smov 64   ;;  %vm1981_vm3 = vcmask 523264   ;;  %vm2014_vm4 = vcmask 785408   ;;  %vm6255_vm5 = vmmov 0   ;;  %vm2744_vm6 = vcmask 130048  }
  0x39   : > { %s6378_s21 = scalar_select %p301_p11, %s6328_s28, 1  ;;  %vm2885_vm7 = vcmask 1040384   ;;  %vm3212_vm8 = vcmask 154712   ;;  %vm3349_vm9 = vcmask 1041409   ;;  %vm3351_vm10 = vcmask 1042434  }
  0x3a   : > { %s6252_s29 = smov 32   ;;  %s6253_s8 = smov 96   ;;  %vm3353_vm11 = vcmask 1043459   ;;  %vm3355_vm12 = vcmask 1044484   ;;  %vm3357_vm13 = vcmask 1045509   ;;  %vm3359_vm14 = vcmask 1046534  }
  0x3b   : > { %9828 = sst [smem:[#allocation18_spill]] %s6378_s21  ;;  %s5901_s9 = smul.u32 216, %s6378_s21  ;;  %vm3361_vm15 = vcmask 1047559  }
  0x3c   : > { %s9867_s4 = sld [smem:[#allocation63_spill]]  ;;  %s9868_s3 = sld [smem:[#allocation62_spill]] }
  0x3d   : > { %v6046_v0 = vld [vmem:[%s9827_s2 + $0x40] sm:$0xff]   ;;  %v6050_v2 = vld [vmem:[%s9827_s2 + $0x48] sm:$0xff]   ;;  %v6054_v4 = vld [vmem:[%s9827_s2 + $0x50] sm:$0xff]   ;;  %s9869_s5 = sld [smem:[#allocation64_spill]]  ;;  %s8080_s13 = sld [smem:[#allocation3 + $0x7]] }
  0x3e   : > { %5703 = vmatprep.subr.bf16.mxu0 %v6046_v0  ;;  %v6047_v1 = vld [vmem:[%s9827_s2] sm:$0xff]   ;;  %5885 = vmatprep.subr.bf16.mxu1 %v6046_v0  ;;  %v6051_v3 = vld [vmem:[%s9827_s2 + $0x8] sm:$0xff]   ;;  %s6396_s19 = scalar_lea.vmem %s9829_s0, %s5901_s9  ;;  %v6057_v10 = vld [vmem:[%s9827_s2 + $0x10] sm:$0xff]   ;;  %s8082_s14 = sld [smem:[#allocation3 + $0x5]] }
  0x3f   : > { %5704 = vmatpush3.bf16.msra.mxu0 %v6047_v1  ;;  %5893 = vmatpush3.bf16.msra.mxu1 %v6047_v1  ;;  %v5352_v5 = vld [vmem:[%s6396_s19 + $0x24] sm:$0xf]  ;;  %v6400_v6 = vld [vmem:[%s6396_s19 + $0x28] sm:$0xf]  ;;  %v5350_v8 = vld [vmem:[%s6396_s19 + $0x18] sm:$0xf] }
  0x40   : > { %5705 = vmatprep.subr.bf16.mxu0 %v6050_v2  ;;  %5886 = vmatprep.subr.bf16.mxu1 %v6050_v2  ;;  %v6403_v7 = vcombine.low %v5352_v5, %v6400_v6  ;;  %v5351_v9 = vld [vmem:[%s6396_s19 + $0x1c] sm:$0xf]  ;;  %v5287_v12 = vld [vmem:[%s6396_s19 + $0x10] sm:$0xf]  ;;  %v5334_v13 = vld [vmem:[%s6396_s19 + $0xc] sm:$0xe] }
  0x41   : > { %v6410_v11 = vcombine.low %v5350_v8, %v5351_v9  ;;  %v6417_v14 = vld [vmem:[%s6396_s19 + $0x14] ss:$0 sps:$4 sm:$0x11]   ;;  %v5494_v15 = vcombine.low %v5334_v13, %v5287_v12  ;;  %v5286_v18 = vld [vmem:[%s6396_s19 + $0xc] sm:$0xf]  ;;  %s8093_s15 = sld [smem:[#allocation3 + $0x9]] }
  0x42   : > { %1550 = vrot.lane.b32.xlu0 %v6403_v7, %s6251_s23  ;;  %v1643_v16 = vshll.u32 %v6403_v7, 16  ;;  %v6425_v19 = vld [vmem:[%s6396_s19 + $0x1c] sm:$0xf]  ;;  %v1389_v21 = vrot.slane %v6417_v14, 1  ;;  %v6428_v22 = vcombine.low %v5286_v18, %v5287_v12  ;;  %v5335_v23 = vld [vmem:[%s6396_s19 + $0x18] sm:$0xe] }
  0x43   : > { %5706 = vmatpush3.bf16.msra.mxu0 %v6051_v3  ;;  %5894 = vmatpush3.bf16.msra.mxu1 %v6051_v3  ;;  %v1631_v17 = vshll.u32 %v6410_v11, 16  ;;  %v1388_v20 = vrot.slane %v5494_v15, 1  ;;  %v6432_v24 = vld [vmem:[%s6396_s19 + $0x20] ss:$0 sps:$4 sm:$0x11]   ;;  %v5495_v25 = vcombine.low %v5335_v23, %v6425_v19  ;;  %v1641_v29 = vshrl.u32 %v6403_v7, 16 }
  0x44   : > { %5707 = vmatprep.subr.bf16.mxu0 %v6054_v4  ;;  %5887 = vmatprep.subr.bf16.mxu1 %v6054_v4  ;;  %v313_v26 = vld [vmem:[%s6396_s19 + $0x4] sm:$0xf]  ;;  %v360_v28 = vld [vmem:[%s6396_s19] sm:$0xe]  ;;  %v1392_v31 = vrot.slane %v6432_v24, 1  ;;  %v1629_v34 = vshrl.u32 %v6410_v11, 16 }
  0x45   : > { %1548 = vrot.lane.b32.xlu1 %v6410_v11, %s6251_s23  ;;  %v1390_v27 = vsel %vm907_vm0, %v1388_v20, %v1389_v21  ;;  %v1391_v30 = vrot.slane %v5495_v25, 1  ;;  %v5976_v32 = vld [vmem:[%s6396_s19 + $0x8] ss:$0 sps:$4 sm:$0x11]   ;;  %v5446_v33 = vcombine.low %v360_v28, %v313_v26  ;;  %v312_v35 = vld [vmem:[%s6396_s19] sm:$0xf] }
  0x46   : > { %1436 = vrot.lane.b32.xlu0 %v1390_v27, %s6252_s29  ;;  %v314_v36 = vld [vmem:[%s6396_s19 + $0xc] sm:$0xf]  ;;  %v1633_v37 = vrot.slane %v1631_v17, 1  ;;  %v1645_v38 = vrot.slane %v1643_v16, 1  ;;  %v909_v41 = vrot.slane %v5976_v32, 1  ;;  %v6448_v42 = vcombine.low %v312_v35, %v313_v26  ;;  %v6060_v21 = vld [vmem:[%s9827_s2 + $0x58] sm:$0xff]  }
  0x47   : > { %5708 = vmatpush3.bf16.msra.mxu0 %v6057_v10  ;;  %5895 = vmatpush3.bf16.msra.mxu1 %v6057_v10  ;;  %v1393_v39 = vsel %vm907_vm0, %v1391_v30, %v1392_v31  ;;  %v908_v40 = vrot.slane %v5446_v33, 1  ;;  %v315_v43 = vld [vmem:[%s6396_s19 + $0x10] sm:$0xf]  ;;  %v361_v44 = vld [vmem:[%s6396_s19 + $0xc] sm:$0xe]  ;;  %v643_v47 = vshll.u32 %v5976_v32, 16 }
  0x48   : > { %v6452_v45 = vcombine.low %v314_v36, %v315_v43  ;;  %v5980_v46 = vld [vmem:[%s6396_s19 + $0x14] ss:$0 sps:$4 sm:$0x11]   ;;  %v5447_v49 = vcombine.low %v361_v44, %v315_v43  ;;  %v636_v50 = vshrl.u32 %v6448_v42, 16  ;;  %v638_v51 = vshll.u32 %v6448_v42, 16  ;;  %5709 = vmatprep.subr.bf16.mxu0 %v6060_v21  ;;  %5888 = vmatprep.subr.bf16.mxu1 %v6060_v21  ;;  %s8095_s16 = sld [smem:[#allocation3 + $0x4]] }
  0x49   : > { %1068 = vrot.lane.b32.xlu1 %v6428_v22, %s6253_s8  ;;  %v910_v48 = vsel %vm907_vm0, %v908_v40, %v909_v41  ;;  %v912_v52 = vrot.slane %v5980_v46, 1  ;;  %v645_v53 = vrot.slane %v643_v47, 1  ;;  %v655_v58 = vshll.u32 %v5980_v46, 16  ;;  %v5982_v59 = vld [vmem:[%s6396_s19 + $0x20] ss:$0 sps:$4 sm:$0x11]  }
  0x4a   : > { %1438 = vrot.lane.b32.xlu0 %v1393_v39, %s6252_s29  ;;  %v648_v54 = vshrl.u32 %v6452_v45, 16  ;;  %v650_v55 = vshll.u32 %v6452_v45, 16  ;;  %v911_v56 = vrot.slane %v5447_v49, 1  ;;  %v640_v57 = vrot.slane %v638_v51, 1  ;;  %v316_v63 = vld [vmem:[%s6396_s19 + $0x18] sm:$0xf] }
  0x4b   : > { %v1634_v61 = vor.u32 %v1633_v37, %v1629_v34  ;;  %v6464_v62 = vld [vmem:[%s6396_s19 + $0x2c] ss:$0 sps:$4 sm:$0x11]   ;;  %v657_v2 = vrot.slane %v655_v58, 1  ;;  %v1636_v3 = vshll.u32 %v5982_v59, 16  ;;  %v1646_v16 = vor.u32 %v1645_v38, %v1641_v29  ;;  %v6062_v29 = vld [vmem:[%s9827_s2 + $0x18] sm:$0xff]  }
  0x4c   : > { %v652_v60 = vrot.slane %v650_v55, 1  ;;  %v913_v0 = vsel %vm907_vm0, %v911_v56, %v912_v52  ;;  %v641_v1 = vor.u32 %v640_v57, %v636_v50  ;;  %v317_v4 = vld [vmem:[%s6396_s19 + $0x1c] sm:$0xf]  ;;  %v5288_v7 = vld [vmem:[%s6396_s19 + $0x18] sm:$0xf]  ;;  %v1648_v8 = vshll.u32 %v6464_v62, 16  ;;  %5710 = vmatpush3.bf16.msra.mxu0 %v6062_v29  ;;  %5896 = vmatpush3.bf16.msra.mxu1 %v6062_v29 }
  0x4d   : > { %956 = vrot.lane.b32.xlu1 %v910_v48, %s6251_s23  ;;  %v6473_v9 = vld [vmem:[%s6396_s19 + $0x20] ss:$0 sps:$4 sm:$0x11]   ;;  %v1638_v11 = vrot.slane %v1636_v3, 1  ;;  %v6476_v12 = vcombine.low %v316_v63, %v317_v4  ;;  %v6479_v13 = vld [vmem:[%s6396_s19 + $0x28] sm:$0xf]  ;;  %v6500_v30 = vcombine.low %v5288_v7, %v6425_v19 }
  0x4e   : > { %v653_v5 = vor.u32 %v652_v60, %v648_v54  ;;  %v646_v10 = vsel %vm634_vm1, %v641_v1, %v645_v53  ;;  %v1650_v17 = vrot.slane %v1648_v8, 1  ;;  %v667_v18 = vshll.u32 %v6473_v9, 16  ;;  %v5336_v20 = vld [vmem:[%s6396_s19 + $0x24] sm:$0xe]  ;;  %v362_v31 = vld [vmem:[%s6396_s19 + $0x18] sm:$0xe] }
  0x4f   : > { %827 = vrot.lane.b32.xlu0 %v646_v10, %s6252_s29  ;;  %v1639_v23 = vsel %vm634_vm1, %v1634_v61, %v1638_v11  ;;  %v660_v25 = vshrl.u32 %v6476_v12, 16  ;;  %v662_v26 = vshll.u32 %v6476_v12, 16  ;;  %v6492_v27 = vld [vmem:[%s6396_s19 + $0x2c] ss:$0 sps:$4 sm:$0x11]   ;;  %v5496_v28 = vcombine.low %v5336_v20, %v6479_v13  ;;  %v6064_v37 = vld [vmem:[%s9827_s2 + $0x60] sm:$0xff]  }
  0x50   : > { %v658_v15 = vsel %vm634_vm1, %v653_v5, %v657_v2  ;;  %v5354_v32 = vld [vmem:[%s6396_s19 + $0x30] sm:$0xf]  ;;  %v669_v34 = vrot.slane %v667_v18, 1  ;;  %v5448_v35 = vcombine.low %v362_v31, %v317_v4  ;;  %v5355_v36 = vld [vmem:[%s6396_s19 + $0x34] sm:$0xf]  ;;  %v1651_v39 = vsel %vm634_vm1, %v1646_v16, %v1650_v17  ;;  %5711 = vmatprep.subr.bf16.mxu0 %v6064_v37  ;;  %5889 = vmatprep.subr.bf16.mxu1 %v6064_v37  ;;  %v6066_v53 = vld [vmem:[%s9827_s2 + $0x20] sm:$0xff]  }
  0x51   : > { %958 = vrot.lane.b32.xlu1 %v913_v0, %s6251_s23  ;;  %v664_v33 = vrot.slane %v662_v26, 1  ;;  %v1394_v19 = vrot.slane %v5496_v28, 1  ;;  %v5512_v38 = vcombine.low %v5354_v32, %v5355_v36  ;;  %v1395_v41 = vrot.slane %v6492_v27, 1  ;;  %v5993_v43 = vld [vmem:[%s6396_s19 + $0x38] ss:$0 sps:$4 sm:$0x11]   ;;  %5712 = vmatpush3.bf16.msra.mxu0 %v6066_v53 }
  0x52   : > { %v318_v44 = vld [vmem:[%s6396_s19 + $0x24] sm:$0xf]  ;;  %v1151_v46 = vshll.u32 %v6428_v22, 16  ;;  %v319_v48 = vld [vmem:[%s6396_s19 + $0x28] sm:$0xf]  ;;  %v914_v50 = vrot.slane %v5448_v35, 1  ;;  %5897 = vmatpush3.bf16.msra.mxu1 %v6066_v53 }
  0x53   : > { %1820 = vrot.lane.b32.xlu0 %v1639_v23, %s6253_s8  ;;  %v665_v40 = vor.u32 %v664_v33, %v660_v25  ;;  %v1655_v47 = vshll.u32 %v5512_v38, 16  ;;  %v915_v51 = vrot.slane %v6473_v9, 1  ;;  %v6520_v52 = vld [vmem:[%s6396_s19 + $0x2c] ss:$0 sps:$4 sm:$0x11]   ;;  %v1653_v54 = vshrl.u32 %v5512_v38, 16 }
  0x54   : > { %v1660_v56 = vshll.u32 %v5993_v43, 16  ;;  %v6526_v57 = vcombine.low %v318_v44, %v319_v48  ;;  %v6069_v58 = vld [vmem:[%s9827_s2 + $0x68] sm:$0xff]   ;;  %v1149_v59 = vshrl.u32 %v6428_v22, 16  ;;  %v1396_v60 = vsel %vm907_vm0, %v1394_v19, %v1395_v41  ;;  %v6536_v0 = vld [vmem:[%s6396_s19 + $0x34] sm:$0xf]  ;;  %9870 = sst [smem:[#allocation33_spill]] %s8095_s16 }
  0x55   : > { %829 = vrot.lane.b32.xlu1 %v658_v15, %s6252_s29  ;;  %v670_v49 = vsel %vm634_vm1, %v665_v40, %v669_v34  ;;  %v1657_v55 = vrot.slane %v1655_v47, 1  ;;  %v1153_v61 = vrot.slane %v1151_v46, 1  ;;  %v5337_v1 = vld [vmem:[%s6396_s19 + $0x30] sm:$0xe]  ;;  %5713 = vmatprep.subr.bf16.mxu0 %v6069_v58  ;;  %v916_v2 = vsel %vm907_vm0, %v914_v50, %v915_v51  ;;  %v5290_v3 = vld [vmem:[%s6396_s19 + $0x24] sm:$0xf] }
  0x56   : > { %v674_v63 = vshll.u32 %v6526_v57, 16  ;;  %v672_v22 = vshrl.u32 %v6526_v57, 16  ;;  %v679_v4 = vshll.u32 %v6520_v52, 16  ;;  %v5356_v5 = vld [vmem:[%s6396_s19 + $0x3c] sm:$0xf]  ;;  %5890 = vmatprep.subr.bf16.mxu1 %v6069_v58  ;;  %v1662_v8 = vrot.slane %v1660_v56, 1 }
  0x57   : > { %1822 = vrot.lane.b32.xlu0 %v1651_v39, %s6253_s8  ;;  %v1658_v7 = vor.u32 %v1657_v55, %v1653_v54  ;;  %v363_v10 = vld [vmem:[%s6396_s19 + $0x24] sm:$0xe]  ;;  %v5357_v11 = vld [vmem:[%s6396_s19 + $0x40] sm:$0xf]  ;;  %v5497_v16 = vcombine.low %v5337_v1, %v6536_v0  ;;  %v1156_v18 = vshll.u32 %v6417_v14, 16  ;;  %v6556_v20 = vcombine.low %v5290_v3, %v6479_v13  ;;  %v6072_v31 = vld [vmem:[%s9827_s2 + $0x28] sm:$0xff]  }
  0x58   : > { %v676_v9 = vrot.slane %v674_v63, 1  ;;  %v6548_v15 = vld [vmem:[%s6396_s19 + $0x38] ss:$0 sps:$4 sm:$0x11]   ;;  %v6551_v17 = vcombine.low %v5356_v5, %v5357_v11  ;;  %v338_v21 = vld [vmem:[%s6396_s19 + $0x9c] sm:$0xf]  ;;  %v5449_v28 = vcombine.low %v363_v10, %v319_v48  ;;  %v1154_v33 = vor.u32 %v1153_v61, %v1149_v59  ;;  %5714 = vmatpush3.bf16.msra.mxu0 %v6072_v31  ;;  %5898 = vmatpush3.bf16.msra.mxu1 %v6072_v31 }
  0x59   : > { %1070 = vrot.lane.b32.xlu1 %v6500_v30, %s6253_s8  ;;  %v1163_v23 = vshll.u32 %v6500_v30, 16  ;;  %v681_v26 = vrot.slane %v679_v4, 1  ;;  %v6561_v29 = vld [vmem:[%s6396_s19 + $0xa0] sm:$0xf]  ;;  %v1663_v14 = vsel %vm634_vm1, %v1658_v7, %v1662_v8  ;;  %v1397_v34 = vrot.slane %v5497_v16, 1  ;;  %s8103_s17 = sld [smem:[#allocation3 + $0xb]] }
  0x5a   : > { %v677_v25 = vor.u32 %v676_v9, %v672_v22  ;;  %v1667_v13 = vshll.u32 %v6551_v17, 16  ;;  %v6002_v32 = vld [vmem:[%s6396_s19 + $0x44] ss:$0 sps:$4 sm:$0x11]   ;;  %v1398_v35 = vrot.slane %v6548_v15, 1  ;;  %v6572_v36 = vcombine.low %v338_v21, %v6561_v29  ;;  %v6077_v21 = vld [vmem:[%s9827_s2 + $0x30] sm:$0xff]  }
  0x5b   : > { %1440 = vrot.lane.b32.xlu0 %v1396_v60, %s6252_s29  ;;  %v1158_v37 = vrot.slane %v1156_v18, 1  ;;  %v1161_v19 = vshrl.u32 %v6500_v30, 16  ;;  %v917_v39 = vrot.slane %v5449_v28, 1  ;;  %v918_v40 = vrot.slane %v6520_v52, 1  ;;  %v5292_v50 = vld [vmem:[%s6396_s19 + $0x30] sm:$0xf] }
  0x5c   : > { %v6580_v41 = vld [vmem:[%s6396_s19 + $0xa4] ss:$0 sps:$4 sm:$0x11]   ;;  %v794_v43 = vshll.u32 %v6572_v36, 16  ;;  %v1665_v44 = vshrl.u32 %v6551_v17, 16  ;;  %v1669_v30 = vrot.slane %v1667_v13, 1  ;;  %v6618_v8 = vcombine.low %v5292_v50, %v6536_v0 }
  0x5d   : > { %831 = vrot.lane.b32.xlu1 %v670_v49, %s6252_s29  ;;  %v1672_v46 = vshll.u32 %v6002_v32, 16  ;;  %v6586_v47 = vsel %vm634_vm1, %v1154_v33, %v1158_v37  ;;  %v1165_v48 = vrot.slane %v1163_v23, 1  ;;  %v1399_v49 = vsel %vm907_vm0, %v1397_v34, %v1398_v35  ;;  %v6591_v51 = vld [vmem:[%s6396_s19 + $0xac] sm:$0xf]  ;;  %v5347_v52 = vld [vmem:[%s6396_s19 + $0xa8] sm:$0xe] }
  0x5e   : > { %v1168_v53 = vshll.u32 %v6432_v24, 16  ;;  %v5376_v54 = vld [vmem:[%s6396_s19 + $0xb4] sm:$0xf]  ;;  %v5377_v55 = vld [vmem:[%s6396_s19 + $0xb8] sm:$0xf]  ;;  %v919_v56 = vsel %vm907_vm0, %v917_v39, %v918_v40  ;;  %v792_v58 = vshrl.u32 %v6572_v36, 16  ;;  %v1670_v63 = vor.u32 %v1669_v30, %v1665_v44 }
  0x5f   : > { %1552 = vrot.lane.b32.xlu0 %v5512_v38, %s6251_s23  ;;  %v682_v38 = vsel %vm634_vm1, %v677_v25, %v681_v26  ;;  %v796_v59 = vrot.slane %v794_v43, 1  ;;  %v799_v60 = vshll.u32 %v6580_v41, 16  ;;  %v373_v61 = vld [vmem:[%s6396_s19 + $0x9c] sm:$0xe]  ;;  %v1674_v1 = vrot.slane %v1672_v46, 1  ;;  %v6075_v24 = vld [vmem:[%s9827_s2 + $0x70] sm:$0xff]  }
  0x60   : > { %v6605_v3 = vld [vmem:[%s6396_s19 + $0x34] sm:$0xf]  ;;  %v6611_v22 = vld [vmem:[%s6396_s19 + $0xb0] ss:$0 sps:$4 sm:$0x11]   ;;  %v5507_v4 = vcombine.low %v5347_v52, %v6591_v51  ;;  %v6614_v5 = vcombine.low %v5376_v54, %v5377_v55  ;;  %v1166_v7 = vor.u32 %v1165_v48, %v1161_v19  ;;  %v5459_v9 = vcombine.low %v373_v61, %v6561_v29  ;;  %5715 = vmatprep.subr.bf16.mxu0 %v6075_v24  ;;  %v6079_v40 = vld [vmem:[%s9827_s2 + $0x78] sm:$0xff]  }
  0x61   : > { %960 = vrot.lane.b32.xlu1 %v916_v2, %s6251_s23  ;;  %v320_v2 = vld [vmem:[%s6396_s19 + $0x30] sm:$0xf]  ;;  %v1170_v10 = vrot.slane %v1168_v53, 1  ;;  %v797_v11 = vor.u32 %v796_v59, %v792_v58  ;;  %v801_v16 = vrot.slane %v799_v60, 1  ;;  %5891 = vmatprep.subr.bf16.mxu1 %v6075_v24  ;;  %v1675_v0 = vsel %vm634_vm1, %v1670_v63, %v1674_v1  ;;  %v6646_v33 = vld [vmem:[%s6396_s19 + $0x40] sm:$0xf] }
  0x62   : > { %v6622_v18 = vcombine.low %v320_v2, %v6605_v3  ;;  %v1427_v23 = vrot.slane %v5507_v4, 1  ;;  %v1428_v25 = vrot.slane %v6611_v22, 1  ;;  %v1787_v26 = vshll.u32 %v6614_v5, 16  ;;  %v6011_v28 = vld [vmem:[%s6396_s19 + $0xbc] ss:$0 sps:$4 sm:$0x11]   ;;  %5716 = vmatpush3.bf16.msra.mxu0 %v6077_v21  ;;  %5899 = vmatpush3.bf16.msra.mxu1 %v6077_v21 }
  0x63   : > { %1824 = vrot.lane.b32.xlu0 %v1663_v14, %s6253_s8  ;;  %v6634_v29 = vsel %vm634_vm1, %v1166_v7, %v1170_v10  ;;  %v948_v31 = vrot.slane %v6580_v41, 1  ;;  %v802_v14 = vsel %vm634_vm1, %v797_v11, %v801_v16  ;;  %v6641_v13 = vld [vmem:[%s6396_s19 + $0x38] ss:$0 sps:$4 sm:$0x11]   ;;  %v5312_v35 = vld [vmem:[%s6396_s19 + $0xa8] sm:$0xf]  ;;  %5717 = vmatprep.subr.bf16.mxu0 %v6079_v40 }
  0x64   : > { %9830 = vst [vmem:[#allocation19_spill] sm:$0xff] %v6622_v18  ;;  %v686_v32 = vshll.u32 %v6622_v18, 16  ;;  %v1429_v34 = vsel %vm907_vm0, %v1427_v23, %v1428_v25  ;;  %v1785_v37 = vshrl.u32 %v6614_v5, 16  ;;  %v1789_v19 = vrot.slane %v1787_v26, 1  ;;  %v5338_v39 = vld [vmem:[%s6396_s19 + $0x3c] sm:$0xe]  ;;  %5892 = vmatprep.subr.bf16.mxu1 %v6079_v40 }
  0x65   : > { %1072 = vrot.lane.b32.xlu1 %v6556_v20, %s6253_s8  ;;  %v5358_v41 = vld [vmem:[%s6396_s19 + $0x48] sm:$0xf]  ;;  %v5359_v43 = vld [vmem:[%s6396_s19 + $0x4c] sm:$0xf]  ;;  %v684_v30 = vshrl.u32 %v6622_v18, 16  ;;  %v691_v48 = vshll.u32 %v6641_v13, 16  ;;  %v5498_v58 = vcombine.low %v5338_v39, %v6646_v33  ;;  %v6676_v60 = vcombine.low %v5312_v35, %v6591_v51 }
  0x66   : > { %v688_v46 = vrot.slane %v686_v32, 1  ;;  %v6081_v50 = vld [vmem:[%s9827_s2 + $0x38] sm:$0xff]   ;;  %v340_v52 = vld [vmem:[%s6396_s19 + $0xa8] sm:$0xf]  ;;  %v6668_v53 = vld [vmem:[%s6396_s19 + $0xac] sm:$0xf]  ;;  %v1790_v54 = vor.u32 %v1789_v19, %v1785_v37  ;;  %v5514_v59 = vcombine.low %v5358_v41, %v5359_v43 }
  0x67   : > { %1442 = vrot.lane.b32.xlu0 %v1399_v49, %s6252_s29  ;;  %v364_v49 = vld [vmem:[%s6396_s19 + $0x30] sm:$0xe]  ;;  %5718 = vmatpush3.bf16.msra.mxu0 %v6081_v50  ;;  %v693_v1 = vrot.slane %v691_v48, 1  ;;  %v6680_v2 = vcombine.low %v340_v52, %v6668_v53  ;;  %v1400_v4 = vrot.slane %v5498_v58, 1  ;;  %v921_v10 = vrot.slane %v6641_v13, 1  ;;  %s8121_s18 = sld [smem:[#allocation3 + $0xd]] }
  0x68   : > { %5900 = vmatpush3.bf16.msra.mxu1 %v6081_v50  ;;  %v5450_v61 = vcombine.low %v364_v49, %v6605_v3  ;;  %v689_v63 = vor.u32 %v688_v46, %v684_v30  ;;  %v6020_v51 = vld [vmem:[%s6396_s19 + $0x50] ss:$0 sps:$4 sm:$0x11]   ;;  %v1175_v21 = vshll.u32 %v6556_v20, 16  ;;  %v1677_v23 = vshrl.u32 %v5514_v59, 16  ;;  %s9701_s20 = smov 126  }
  0x69   : > { %833 = vrot.lane.b32.xlu1 %v682_v38, %s6252_s29  ;;  %v1792_v38 = vshll.u32 %v6011_v28, 16  ;;  %9831 = vst [vmem:[#allocation20_spill] sm:$0xff] %v6680_v2  ;;  %v6692_v11 = vld [vmem:[%s6396_s19 + $0xb0] ss:$0 sps:$4 sm:$0x11]   ;;  %v806_v16 = vshll.u32 %v6680_v2, 16 }
  0x6a   : > { %v920_v3 = vrot.slane %v5450_v61, 1  ;;  %v6699_v25 = vld [vmem:[%s6396_s19 + $0xb8] sm:$0xf]  ;;  %v6706_v13 = vld [vmem:[%s6396_s19 + $0xbc] ss:$0 sps:$4 sm:$0x11]  }
  0x6b   : > { %1554 = vrot.lane.b32.xlu0 %v6551_v17, %s6251_s23  ;;  %v947_v17 = vrot.slane %v5459_v9, 1  ;;  %v1794_v55 = vrot.slane %v1792_v38, 1  ;;  %v1679_v9 = vshll.u32 %v5514_v59, 16  ;;  %v5378_v32 = vld [vmem:[%s6396_s19 + $0xc0] sm:$0xf]  ;;  %v804_v37 = vshrl.u32 %v6680_v2, 16 }
  0x6c   : > { %v922_v35 = vsel %vm907_vm0, %v920_v3, %v921_v10  ;;  %v808_v19 = vrot.slane %v806_v16, 1  ;;  %v811_v38 = vshll.u32 %v6692_v11, 16  ;;  %v374_v39 = vld [vmem:[%s6396_s19 + $0xa8] sm:$0xe]  ;;  %v1173_v40 = vshrl.u32 %v6556_v20, 16  ;;  %s9699_s22 = smov 122  }
  0x6d   : > { %962 = vrot.lane.b32.xlu1 %v919_v56, %s6251_s23  ;;  %v949_v44 = vsel %vm907_vm0, %v947_v17, %v948_v31  ;;  %v6671_v56 = vld [vmem:[%s6396_s19 + $0x44] ss:$0 sps:$4 sm:$0x11]   ;;  %v1795_v24 = vsel %vm634_vm1, %v1790_v54, %v1794_v55  ;;  %v1681_v28 = vrot.slane %v1679_v9, 1  ;;  %v1684_v17 = vshll.u32 %v6020_v51, 16  ;;  %s8170_s9 = sld [smem:[#allocation3 + $0x15]] }
  0x6e   : > { %v1401_v7 = vrot.slane %v6671_v56, 1  ;;  %v5348_v31 = vld [vmem:[%s6396_s19 + $0xb4] sm:$0xe]  ;;  %v1177_v41 = vrot.slane %v1175_v21, 1  ;;  %v6719_v30 = vld [vmem:[%s6396_s19 + $0x40] sm:$0xf]  ;;  %v5460_v55 = vcombine.low %v374_v39, %v6668_v53  ;;  %v809_v58 = vor.u32 %v808_v19, %v804_v37 }
  0x6f   : > { %1826 = vrot.lane.b32.xlu0 %v1675_v0, %s6253_s8  ;;  %v1187_v0 = vshll.u32 %v6618_v8, 16  ;;  %v5508_v43 = vcombine.low %v5348_v31, %v6699_v25  ;;  %v1682_v46 = vor.u32 %v1681_v28, %v1677_v23  ;;  %v1686_v48 = vrot.slane %v1684_v17, 1  ;;  %v6029_v53 = vld [vmem:[%s6396_s19 + $0xc8] ss:$0 sps:$4 sm:$0x11]   ;;  %s8200_s0 = sld [smem:[#allocation3 + $0x1b]] }
  0x70   : > { %v1402_v26 = vsel %vm907_vm0, %v1400_v4, %v1401_v7  ;;  %v1180_v50 = vshll.u32 %v6492_v27, 16  ;;  %v1185_v52 = vshrl.u32 %v6618_v8, 16  ;;  %v813_v61 = vrot.slane %v811_v38, 1  ;;  %v6752_v23 = vld [vmem:[%s6396_s19 + $0x4c] sm:$0xf]  ;;  %s8296_s6 = sld [smem:[#allocation3 + $0x29]] }
  0x71   : > { %1074 = vrot.lane.b32.xlu1 %v6618_v8, %s6253_s8  ;;  %v1189_v54 = vrot.slane %v1187_v0, 1  ;;  %v1430_v27 = vrot.slane %v5508_v43, 1  ;;  %v1431_v8 = vrot.slane %v6706_v13, 1  ;;  %v1687_v4 = vsel %vm634_vm1, %v1682_v46, %v1686_v48  ;;  %v5314_v17 = vld [vmem:[%s6396_s19 + $0xb4] sm:$0xf]  ;;  %s8318_s10 = sld [smem:[#allocation3 + $0x2b]] }
  0x72   : > { %v1182_v7 = vrot.slane %v1180_v50, 1  ;;  %v1307_v9 = vshll.u32 %v6676_v60, 16  ;;  %v814_v10 = vsel %vm634_vm1, %v809_v58, %v813_v61  ;;  %v342_v19 = vld [vmem:[%s6396_s19 + $0xb4] sm:$0xf]  ;;  %v6767_v38 = vld [vmem:[%s6396_s19 + $0xb8] sm:$0xf] }
  0x73   : > { %1462 = vrot.lane.b32.xlu0 %v1429_v34, %s6252_s29  ;;  %v5379_v34 = vld [vmem:[%s6396_s19 + $0xc4] sm:$0xf]  ;;  %v1190_v51 = vor.u32 %v1189_v54, %v1185_v52  ;;  %v1432_v0 = vsel %vm907_vm0, %v1430_v27, %v1431_v8  ;;  %v365_v48 = vld [vmem:[%s6396_s19 + $0x3c] sm:$0xe]  ;;  %v1305_v50 = vshrl.u32 %v6676_v60, 16  ;;  %v6788_v27 = vcombine.low %v5314_v17, %v6699_v25  ;;  %s9878_s26 = smov 124  }
  0x74   : > { %v6721_v49 = vcombine.low %v5378_v32, %v5379_v34  ;;  %v1804_v32 = vshll.u32 %v6029_v53, 16  ;;  %v1309_v58 = vrot.slane %v1307_v9, 1  ;;  %v5399_v9 = vld [vmem:[%s6396_s19 + $0x24] sm:$0xe]  ;;  %v5296_v17 = vld [vmem:[%s6396_s19 + $0x48] sm:$0xf] }
  0x75   : > { %853 = vrot.lane.b32.xlu1 %v802_v14, %s6252_s29  ;;  %v5294_v14 = vld [vmem:[%s6396_s19 + $0x3c] sm:$0xf]  ;;  %s8340_s30 = sld [smem:[#allocation3 + $0x2d]]  ;;  %s8351_s12 = sld [smem:[#allocation3 + $0x2f]] }
  0x76   : > { %v6727_v20 = vcombine.low %v5294_v14, %v6646_v33  ;;  %v1799_v33 = vshll.u32 %v6721_v49, 16  ;;  %v1797_v31 = vshrl.u32 %v6721_v49, 16  ;;  %v1806_v54 = vrot.slane %v1804_v32, 1  ;;  %9876 = sst [smem:[#allocation38_spill]] %s8296_s6  ;;  %s9881_s24 = smov 122  }
  0x77   : > { %1574 = vrot.lane.b32.xlu0 %v6614_v5, %s6251_s23  ;;  %v694_v5 = vsel %vm634_vm1, %v689_v63, %v693_v1  ;;  %v1192_v1 = vshll.u32 %v6548_v15, 16  ;;  %v950_v15 = vrot.slane %v5460_v55, 1  ;;  %v6783_v55 = vcombine.low %v342_v19, %v6767_v38  ;;  %v6825_v19 = vld [vmem:[%s6396_s19 + $0xc8] ss:$0 sps:$4 sm:$0x11]   ;;  %9877 = sst [smem:[#allocation39_spill]] %s8318_s10 }
  0x78   : > { %v1199_v3 = vshll.u32 %v6727_v20, 16  ;;  %v1801_v14 = vrot.slane %v1799_v33, 1  ;;  %v1197_v61 = vshrl.u32 %v6727_v20, 16  ;;  %v1319_v33 = vshll.u32 %v6788_v27, 16  ;;  %s8358_s27 = sld [smem:[#allocation3 + $0x33]]  ;;  %s9883_s7 = smov 1  }
  0x79   : > { %982 = vrot.lane.b32.xlu1 %v949_v44, %s6251_s23  ;;  %v322_v44 = vld [vmem:[%s6396_s19 + $0x3c] sm:$0xf]  ;;  %v1194_v21 = vrot.slane %v1192_v1, 1  ;;  %9833 = vst [vmem:[#allocation22_spill] sm:$0xff] %v6783_v55  ;;  %s8371_s11 = sld [smem:[#allocation3 + $0x37]]  ;;  %s9885_s28 = smov 127  }
  0x7a   : > { %v6731_v63 = vcombine.low %v322_v44, %v6719_v30  ;;  %v1802_v52 = vor.u32 %v1801_v14, %v1797_v31  ;;  %v1201_v1 = vrot.slane %v1199_v3, 1  ;;  %v1204_v3 = vshll.u32 %v6671_v56, 16  ;;  %v5349_v56 = vld [vmem:[%s6396_s19 + $0xc0] sm:$0xe]  ;;  %s9887_s25 = smov 125   ;;  %s8399_s1 = sld [smem:[#allocation3 + $0x8]] }
  0x7b   : > { %1846 = vrot.lane.b32.xlu0 %v1795_v24, %s6253_s8  ;;  %v1178_v24 = vor.u32 %v1177_v41, %v1173_v40  ;;  %v6771_v41 = vld [vmem:[%s6396_s19 + $0x50] ss:$0 sps:$4 sm:$0x11]   ;;  %v6776_v44 = vsel %vm634_vm1, %v1190_v51, %v1194_v21  ;;  %v1310_v51 = vor.u32 %v1309_v58, %v1305_v50  ;;  %v816_v14 = vshrl.u32 %v6783_v55, 16  ;;  %9879 = sst [smem:[#allocation40_spill]] %s8340_s30  ;;  %s8401_s21 = sld [smem:[#allocation3 + $0xa]] }
  0x7c   : > { %9832 = vst [vmem:[#allocation21_spill] sm:$0xff] %v6731_v63  ;;  %v698_v16 = vshll.u32 %v6731_v63, 16  ;;  %v696_v34 = vshrl.u32 %v6731_v63, 16  ;;  %v1807_v25 = vsel %vm634_vm1, %v1802_v52, %v1806_v54  ;;  %v324_v52 = vld [vmem:[%s6396_s19 + $0x48] sm:$0xf]  ;;  %9880 = sst [smem:[#allocation41_spill]] %s8351_s12 }
  0x7d   : > { %1094 = vrot.lane.b32.xlu1 %v6676_v60, %s6253_s8  ;;  %v6757_v28 = vsel %vm634_vm1, %v1178_v24, %v1182_v7  ;;  %v5451_v60 = vcombine.low %v365_v48, %v6719_v30  ;;  %v6038_v7 = vld [vmem:[%s6396_s19 + $0x5c] ss:$0 sps:$4 sm:$0x11]   ;;  %v818_v30 = vshll.u32 %v6783_v55, 16  ;;  %v1206_v48 = vrot.slane %v1204_v3, 1 }
  0x7e   : > { %v700_v39 = vrot.slane %v698_v16, 1  ;;  %v1696_v31 = vshll.u32 %v6038_v7, 16  ;;  %v6864_v3 = vld [vmem:[%s6396_s19 + $0x50] ss:$0 sps:$4 sm:$0x11]   ;;  %9882 = sst [smem:[#allocation42_spill]] %s8358_s27 }
  0x7f   : > { %1444 = vrot.lane.b32.xlu0 %v1402_v26, %s6252_s29  ;;  %v5361_v26 = vld [vmem:[%s6396_s19 + $0x58] sm:$0xf]  ;;  %v5369_v55 = vld [vmem:[%s6396_s19 + $0x88] sm:$0xf]  ;;  %9884 = sst [smem:[#allocation43_spill]] %s8371_s11 }
  0x80   : > { %v701_v8 = vor.u32 %v700_v39, %v696_v34  ;;  %v375_v39 = vld [vmem:[%s6396_s19 + $0xb4] sm:$0xe]  ;;  %v5304_v63 = vld [vmem:[%s6396_s19 + $0x78] sm:$0xf] }
  0x81   : > { %835 = vrot.lane.b32.xlu1 %v694_v5, %s6252_s29  ;;  %v6746_v5 = vld [vmem:[%s6396_s19 + $0x44] ss:$0 sps:$4 sm:$0x11]  }
  0x82   : > { %v703_v40 = vshll.u32 %v6746_v5, 16 }
  0x83   : > { %1556 = vrot.lane.b32.xlu0 %v5514_v59, %s6251_s23  ;;  %v951_v59 = vrot.slane %v6692_v11, 1  ;;  %v5360_v11 = vld [vmem:[%s6396_s19 + $0x54] sm:$0xf] }
  0x84   : > { %v6773_v43 = vcombine.low %v5360_v11, %v5361_v26  ;;  %v705_v24 = vrot.slane %v703_v40, 1  ;;  %v6814_v11 = vld [vmem:[%s6396_s19 + $0xc4] sm:$0xf]  ;;  %v1202_v26 = vor.u32 %v1201_v1, %v1197_v61  ;;  %v5380_v40 = vld [vmem:[%s6396_s19 + $0xcc] sm:$0xf]  ;;  %v1698_v1 = vrot.slane %v1696_v31, 1 }
  0x85   : > { %964 = vrot.lane.b32.xlu1 %v922_v35, %s6251_s23  ;;  %v5339_v35 = vld [vmem:[%s6396_s19 + $0x48] sm:$0xe]  ;;  %v952_v37 = vsel %vm907_vm0, %v950_v15, %v951_v59  ;;  %v924_v15 = vrot.slane %v6746_v5, 1  ;;  %v6801_v59 = vld [vmem:[%s6396_s19 + $0xbc] ss:$0 sps:$4 sm:$0x11]   ;;  %v5509_v58 = vcombine.low %v5349_v56, %v6814_v11 }
  0x86   : > { %v5499_v46 = vcombine.low %v5339_v35, %v6752_v23  ;;  %v706_v16 = vsel %vm634_vm1, %v701_v8, %v705_v24  ;;  %v923_v5 = vrot.slane %v5451_v60, 1  ;;  %v1689_v21 = vshrl.u32 %v6773_v43, 16  ;;  %v6877_v56 = vld [vmem:[%s6396_s19 + $0x58] sm:$0xf]  ;;  %v5316_v31 = vld [vmem:[%s6396_s19 + $0xc0] sm:$0xf] }
  0x87   : > { %1828 = vrot.lane.b32.xlu0 %v1687_v4, %s6253_s8  ;;  %v1691_v4 = vshll.u32 %v6773_v43, 16  ;;  %v823_v32 = vshll.u32 %v6801_v59, 16  ;;  %v5543_v35 = vcombine.low %v5399_v9, %v6400_v6  ;;  %v6838_v6 = vld [vmem:[%s6396_s19 + $0x4c] sm:$0xf]  ;;  %v6843_v24 = vsel %vm634_vm1, %v1202_v26, %v1206_v48  ;;  %v5340_v26 = vld [vmem:[%s6396_s19 + $0x54] sm:$0xe] }
  0x88   : > { %v1403_v53 = vrot.slane %v5499_v46, 1  ;;  %v5381_v46 = vld [vmem:[%s6396_s19 + $0xd0] sm:$0xf]  ;;  %v925_v50 = vsel %vm907_vm0, %v923_v5, %v924_v15  ;;  %9835 = vst [vmem:[#allocation24_spill] sm:$0xff] %v6843_v24  ;;  %v6855_v15 = vcombine.low %v324_v52, %v6838_v6  ;;  %v954_v5 = vrot.slane %v6801_v59, 1 }
  0x89   : > { %1076 = vrot.lane.b32.xlu1 %v6727_v20, %s6253_s8  ;;  %v1404_v20 = vrot.slane %v6771_v41, 1  ;;  %v6840_v8 = vcombine.low %v5380_v40, %v5381_v46  ;;  %v6845_v60 = vrot.slane %v5543_v35, 1  ;;  %v825_v9 = vrot.slane %v823_v32, 1  ;;  %v6052_v40 = vld [vmem:[%s6396_s19 + $0x5c] ss:$0 sps:$4 sm:$0x11]  }
  0x8a   : > { %9836 = vst [vmem:[#allocation25_spill] sm:$0xff] %v6855_v15  ;;  %v708_v46 = vshrl.u32 %v6855_v15, 16  ;;  %v366_v52 = vld [vmem:[%s6396_s19 + $0x48] sm:$0xe] }
  0x8b   : > { %1464 = vrot.lane.b32.xlu0 %v1432_v0, %s6252_s29  ;;  %v1693_v0 = vrot.slane %v1691_v4, 1  ;;  %v1904_v4 = vrot.slane %v6464_v62, 1 }
  0x8d   : > { %855 = vrot.lane.b32.xlu1 %v814_v10, %s6252_s29  ;;  %v6127_v10 = vld [vmem:[%s9827_s2 + $0x80] sm:$0xff]   ;;  %v1694_v61 = vor.u32 %v1693_v0, %v1689_v21  ;;  %v710_v21 = vshll.u32 %v6855_v15, 16 }
  0x8e   : > { %5837 = vmatprep.subr.bf16.mxu1 %v6127_v10  ;;  %v5362_v0 = vld [vmem:[%s6396_s19 + $0x60] sm:$0xf] }
  0x8f   : > { %1576 = vrot.lane.b32.xlu0 %v6721_v49, %s6251_s23  ;;  %v1312_v49 = vshll.u32 %v6611_v22, 16  ;;  %v1405_v22 = vsel %vm907_vm0, %v1403_v53, %v1404_v20  ;;  %v1317_v53 = vshrl.u32 %v6788_v27, 16  ;;  %v6851_v20 = vcombine.low %v5296_v17, %v6752_v23  ;;  %v5363_v17 = vld [vmem:[%s6396_s19 + $0x64] sm:$0xf] }
  0x90   : > { %v1699_v23 = vsel %vm634_vm1, %v1694_v61, %v1698_v1  ;;  %v712_v48 = vrot.slane %v710_v21, 1  ;;  %v7050_v15 = vld [vmem:[%s6396_s19 + $0x80] ss:$0 sps:$4 sm:$0x11]  }
  0x91   : > { %984 = vrot.lane.b32.xlu1 %v952_v37, %s6251_s23  ;;  %v1314_v34 = vrot.slane %v1312_v49, 1  ;;  %v820_v37 = vrot.slane %v818_v30, 1  ;;  %v1321_v30 = vrot.slane %v1319_v33, 1  ;;  %v1433_v49 = vrot.slane %v5509_v58, 1  ;;  %v6895_v58 = vld [vmem:[%s6396_s19 + $0x58] sm:$0xf] }
  0x92   : > { %v1209_v10 = vshrl.u32 %v6851_v20, 16  ;;  %v1211_v33 = vshll.u32 %v6851_v20, 16 }
  0x93   : > { %1848 = vrot.lane.b32.xlu0 %v1807_v25, %s6253_s8  ;;  %v6833_v54 = vsel %vm634_vm1, %v1310_v51, %v1314_v34  ;;  %v821_v7 = vor.u32 %v820_v37, %v816_v14  ;;  %v5461_v25 = vcombine.low %v375_v39, %v6767_v38  ;;  %v6049_v51 = vld [vmem:[%s6396_s19 + $0xd4] ss:$0 sps:$4 sm:$0x11]   ;;  %v1811_v38 = vshll.u32 %v6840_v8, 16 }
  0x94   : > { %9834 = vst [vmem:[#allocation23_spill] sm:$0xff] %v6833_v54  ;;  %v1809_v14 = vshrl.u32 %v6840_v8, 16  ;;  %v1816_v59 = vshll.u32 %v6049_v51, 16  ;;  %v1324_v34 = vshll.u32 %v6706_v13, 16  ;;  %v1213_v35 = vrot.slane %v1211_v33, 1 }
  0x95   : > { %1096 = vrot.lane.b32.xlu1 %v6788_v27, %s6253_s8  ;;  %v1434_v27 = vrot.slane %v6825_v19, 1  ;;  %v1813_v32 = vrot.slane %v1811_v38, 1  ;;  %v715_v37 = vshll.u32 %v6864_v3, 16  ;;  %v326_v13 = vld [vmem:[%s6396_s19 + $0x54] sm:$0xf]  ;;  %v1322_v61 = vor.u32 %v1321_v30, %v1317_v53 }
  0x96   : > { %v6063_v51 = vld [vmem:[%s6396_s19 + $0x68] ss:$0 sps:$4 sm:$0x11]   ;;  %v5452_v53 = vcombine.low %v366_v52, %v6838_v6  ;;  %v5301_v30 = vld [vmem:[%s6396_s19 + $0x64] sm:$0xf]  ;;  %v6923_v6 = vsel %vm907_vm0, %v6845_v60, %v1904_v4 }
  0x97   : > { %1446 = vrot.lane.b32.xlu0 %v1405_v22, %s6252_s29  ;;  %v1435_v22 = vsel %vm907_vm0, %v1433_v49, %v1434_v27  ;;  %v1814_v1 = vor.u32 %v1813_v32, %v1809_v14  ;;  %v6900_v49 = vcombine.low %v5316_v31, %v6814_v11  ;;  %v717_v27 = vrot.slane %v715_v37, 1  ;;  %v5341_v33 = vld [vmem:[%s6396_s19 + $0x60] sm:$0xe]  ;;  %9839 = vst [vmem:[#allocation28_spill] sm:$0xff] %v6923_v6  ;;  %v5298_v52 = vld [vmem:[%s6396_s19 + $0x54] sm:$0xf] }
  0x98   : > { %v1708_v31 = vshll.u32 %v6063_v51, 16  ;;  %v6933_v60 = vld [vmem:[%s6396_s19 + $0x68] ss:$0 sps:$4 sm:$0x11]   ;;  %v5501_v4 = vcombine.low %v5341_v33, %v5301_v30  ;;  %v926_v32 = vrot.slane %v5452_v53, 1 }
  0x99   : > { %837 = vrot.lane.b32.xlu1 %v706_v16, %s6252_s29  ;;  %v953_v16 = vrot.slane %v5461_v25, 1  ;;  %v1326_v25 = vrot.slane %v1324_v34, 1  ;;  %v1331_v11 = vshll.u32 %v6900_v49, 16 }
  0x9b   : > { %1558 = vrot.lane.b32.xlu0 %v6773_v43, %s6251_s23  ;;  %v826_v43 = vsel %vm634_vm1, %v821_v7, %v825_v9  ;;  %v955_v39 = vsel %vm907_vm0, %v953_v16, %v954_v5  ;;  %v1818_v7 = vrot.slane %v1816_v59, 1  ;;  %v5500_v9 = vcombine.low %v5340_v26, %v6877_v56  ;;  %v6914_v16 = vld [vmem:[%s6396_s19 + $0x5c] ss:$0 sps:$4 sm:$0x11]   ;;  %v5364_v26 = vld [vmem:[%s6396_s19 + $0x6c] sm:$0xf] }
  0x9c   : > { %v6917_v5 = vsel %vm634_vm1, %v1322_v61, %v1326_v25  ;;  %v6949_v61 = vld [vmem:[%s6396_s19 + $0x74] ss:$0 sps:$4 sm:$0x11]   ;;  %v1409_v25 = vrot.slane %v5501_v4, 1 }
  0x9d   : > { %966 = vrot.lane.b32.xlu1 %v925_v50, %s6251_s23  ;;  %v6889_v50 = vcombine.low %v5362_v0, %v5363_v17  ;;  %9838 = vst [vmem:[#allocation27_spill] sm:$0xff] %v6917_v5  ;;  %v1819_v21 = vsel %vm634_vm1, %v1814_v1, %v1818_v7  ;;  %v1406_v0 = vrot.slane %v5500_v9, 1  ;;  %v927_v17 = vrot.slane %v6864_v3, 1  ;;  %v5405_v3 = vld [vmem:[%s6396_s19 + $0x6c] sm:$0xe] }
  0x9e   : > { %v5300_v1 = vld [vmem:[%s6396_s19 + $0x60] sm:$0xf]  ;;  %v1214_v7 = vor.u32 %v1213_v35, %v1209_v10  ;;  %v1710_v9 = vrot.slane %v1708_v31, 1  ;;  %v7105_v5 = vld [vmem:[%s6396_s19 + $0x88] sm:$0xf] }
  0x9f   : > { %1830 = vrot.lane.b32.xlu0 %v1699_v23, %s6253_s8  ;;  %v713_v23 = vor.u32 %v712_v48, %v708_v46  ;;  %v1703_v38 = vshll.u32 %v6889_v50, 16  ;;  %v1701_v62 = vshrl.u32 %v6889_v50, 16  ;;  %v367_v46 = vld [vmem:[%s6396_s19 + $0x54] sm:$0xe] }
  0xa1   : > { %1078 = vrot.lane.b32.xlu1 %v6851_v20, %s6253_s8  ;;  %v718_v14 = vsel %vm634_vm1, %v713_v23, %v717_v27  ;;  %v1705_v59 = vrot.slane %v1703_v38, 1  ;;  %v1410_v27 = vrot.slane %v6933_v60, 1  ;;  %v6958_v23 = vld [vmem:[%s6396_s19 + $0x70] sm:$0xf]  ;;  %v928_v38 = vsel %vm907_vm0, %v926_v32, %v927_v17 }
  0xa2   : > { %v1216_v20 = vshll.u32 %v6771_v41, 16  ;;  %v1720_v41 = vshll.u32 %v6949_v61, 16 }
  0xa3   : > { %1466 = vrot.lane.b32.xlu0 %v1435_v22, %s6252_s29  ;;  %v1407_v22 = vrot.slane %v6052_v40, 1  ;;  %v1706_v53 = vor.u32 %v1705_v59, %v1701_v62  ;;  %v930_v62 = vrot.slane %v6914_v16, 1  ;;  %v1411_v37 = vsel %vm907_vm0, %v1409_v25, %v1410_v27 }
  0xa4   : > { %v1218_v31 = vrot.slane %v1216_v20, 1 }
  0xa5   : > { %857 = vrot.lane.b32.xlu1 %v826_v43, %s6252_s29  ;;  %v6908_v43 = vcombine.low %v326_v13, %v6895_v58  ;;  %v1408_v48 = vsel %vm907_vm0, %v1406_v0, %v1407_v22  ;;  %v727_v13 = vshll.u32 %v6914_v16, 16  ;;  %v6966_v0 = vcombine.low %v5300_v1, %v5301_v30  ;;  %v328_v22 = vld [vmem:[%s6396_s19 + $0x60] sm:$0xf]  ;;  %v7001_v1 = vld [vmem:[%s6396_s19 + $0x74] ss:$0 sps:$4 sm:$0x11]  }
  0xa6   : > { %v9844_v24 = vrot.slane %v7001_v1, 1 }
  0xa7   : > { %9837 = vst [vmem:[#allocation26_spill] sm:$0xff] %v6908_v43  ;;  %1578 = vrot.lane.b32.xlu0 %v6840_v8, %s6251_s23  ;;  %v5365_v8 = vld [vmem:[%s6396_s19 + $0x70] sm:$0xf]  ;;  %v722_v34 = vshll.u32 %v6908_v43, 16  ;;  %v720_v51 = vshrl.u32 %v6908_v43, 16  ;;  %v729_v17 = vrot.slane %v727_v13, 1 }
  0xa8   : > { %v6942_v40 = vcombine.low %v5364_v26, %v5365_v8  ;;  %v5549_v35 = vcombine.low %v5405_v3, %v5365_v8  ;;  %v6970_v26 = vld [vmem:[%s6396_s19 + $0x64] sm:$0xf]  ;;  %v1235_v30 = vshll.u32 %v6966_v0, 16  ;;  %v5366_v3 = vld [vmem:[%s6396_s19 + $0x78] sm:$0xf] }
  0xa9   : > { %986 = vrot.lane.b32.xlu1 %v955_v39, %s6251_s23  ;;  %v6938_v39 = vrot.slane %v1331_v11, 1  ;;  %v724_v33 = vrot.slane %v722_v34, 1  ;;  %v5342_v11 = vld [vmem:[%s6396_s19 + $0x6c] sm:$0xe]  ;;  %v6989_v34 = vcombine.low %v328_v22, %v6970_v26  ;;  %v5343_v43 = vld [vmem:[%s6396_s19 + $0x78] sm:$0xe] }
  0xaa   : > { %v1715_v10 = vshll.u32 %v6942_v40, 16  ;;  %v5502_v8 = vcombine.low %v5342_v11, %v6958_v23  ;;  %v1713_v59 = vshrl.u32 %v6942_v40, 16  ;;  %v5406_v11 = vld [vmem:[%s6396_s19 + $0x78] sm:$0xe] }
  0xab   : > { %1850 = vrot.lane.b32.xlu0 %v1819_v21, %s6253_s8  ;;  %v5453_v21 = vcombine.low %v367_v46, %v6895_v58  ;;  %v6978_v58 = vcombine.low %v5298_v52, %v6877_v56  ;;  %v725_v16 = vor.u32 %v724_v33, %v720_v51  ;;  %9841 = vst [vmem:[#allocation30_spill] sm:$0xff] %v6989_v34  ;;  %v5367_v46 = vld [vmem:[%s6396_s19 + $0x7c] sm:$0xf]  ;;  %v734_v22 = vshll.u32 %v6989_v34, 16 }
  0xac   : > { %v6994_v56 = vsel %vm634_vm1, %v1214_v7, %v1218_v31  ;;  %v1717_v13 = vrot.slane %v1715_v10, 1  ;;  %v1711_v51 = vsel %vm634_vm1, %v1706_v53, %v1710_v9  ;;  %v7010_v7 = vrot.slane %v1235_v30, 1  ;;  %v368_v9 = vld [vmem:[%s6396_s19 + $0x60] sm:$0xe]  ;;  %v5302_v31 = vld [vmem:[%s6396_s19 + $0x6c] sm:$0xf] }
  0xad   : > { %1098 = vrot.lane.b32.xlu1 %v6900_v49, %s6253_s8  ;;  %9840 = vst [vmem:[#allocation29_spill] sm:$0xff] %v6978_v58  ;;  %9842 = vst [vmem:[#allocation31_spill] sm:$0xff] %v6994_v56  ;;  %v929_v52 = vrot.slane %v5453_v21, 1  ;;  %v7015_v10 = vcombine.low %v5366_v3, %v5367_v46  ;;  %v730_v21 = vsel %vm634_vm1, %v725_v16, %v729_v17  ;;  %v7032_v33 = vld [vmem:[%s6396_s19 + $0x7c] sm:$0xf]  ;;  %v736_v25 = vrot.slane %v734_v22, 1 }
  0xae   : > { %v5550_v3 = vcombine.low %v5406_v11, %v5367_v46  ;;  %v330_v17 = vld [vmem:[%s6396_s19 + $0x6c] sm:$0xf]  ;;  %v7038_v16 = vld [vmem:[%s6396_s19 + $0x70] sm:$0xf] }
  0xaf   : > { %1448 = vrot.lane.b32.xlu0 %v1408_v48, %s6252_s29  ;;  %v6998_v48 = vrot.slane %v5549_v35, 1  ;;  %v1727_v6 = vshll.u32 %v7015_v10, 16  ;;  %v931_v46 = vsel %vm907_vm0, %v929_v52, %v930_v62  ;;  %v5503_v62 = vcombine.low %v5343_v43, %v7032_v33  ;;  %v7064_v22 = vld [vmem:[%s6396_s19 + $0x74] ss:$0 sps:$4 sm:$0x11]  }
  0xb0   : > { %v7060_v52 = vcombine.low %v330_v17, %v7038_v16  ;;  %v369_v43 = vld [vmem:[%s6396_s19 + $0x6c] sm:$0xe] }
  0xb1   : > { %839 = vrot.lane.b32.xlu1 %v718_v14, %s6252_s29  ;;  %v6983_v14 = vld [vmem:[%s6396_s19 + $0x68] ss:$0 sps:$4 sm:$0x11]   ;;  %v5455_v18 = vcombine.low %v369_v43, %v7038_v16 }
  0xb2   : > { %v739_v20 = vshll.u32 %v6983_v14, 16  ;;  %v933_v30 = vrot.slane %v6983_v14, 1 }
  0xb3   : > { %1560 = vrot.lane.b32.xlu0 %v6889_v50, %s6251_s23  ;;  %v7012_v50 = vrot.slane %v5502_v8, 1  ;;  %v732_v8 = vshrl.u32 %v6989_v34, 16  ;;  %v7045_v34 = vcombine.low %v5302_v31, %v6958_v23  ;;  %v1729_v31 = vrot.slane %v1727_v6, 1 }
  0xb4   : > { %v6975_v4 = vpop.permute.xlu0 %1550  ;;  %v741_v27 = vrot.slane %v739_v20, 1  ;;  %v1718_v20 = vor.u32 %v1717_v13, %v1713_v59  ;;  %v7094_v59 = vld [vmem:[%s6396_s19 + $0x8c] ss:$0 sps:$4 sm:$0x11]  }
  0xb5   : > { %968 = vrot.lane.b32.xlu1 %v928_v38, %s6251_s23  ;;  %v7004_v38 = vrot.slane %v1720_v41, 1  ;;  %v7025_v41 = vld [vmem:[%s6396_s19 + $0x80] ss:$0 sps:$4 sm:$0x11]   ;;  %v1247_v23 = vshll.u32 %v7045_v34, 16 }
  0xb6   : > { %v1732_v11 = vshll.u32 %v7025_v41, 16 }
  0xb7   : > { %v6985_v32 = vpop.permute.xlu1 %1548  ;;  %1832 = vrot.lane.b32.xlu0 %v1711_v51, %s6253_s8  ;;  %v5454_v51 = vcombine.low %v368_v9, %v6970_v26  ;;  %v7055_v9 = vrot.slane %v5550_v3, 1  ;;  %v5368_v3 = vld [vmem:[%s6396_s19 + $0x84] sm:$0xf]  ;;  %v7077_v17 = vrot.slane %v1247_v23, 1  ;;  %v751_v23 = vshll.u32 %v7064_v22, 16 }
  0xb8   : > { %v7018_v53 = vpop.permute.xlu0 %1436  ;;  %v7069_v56 = vrot.slane %v1732_v11, 1  ;;  %v7086_v11 = vcombine.low %v5368_v3, %v5369_v55 }
  0xb9   : > { %1080 = vrot.lane.b32.xlu1 %v6978_v58, %s6253_s8  ;;  %v737_v58 = vor.u32 %v736_v25, %v732_v8  ;;  %v746_v8 = vshll.u32 %v7060_v52, 16  ;;  %v5407_v25 = vld [vmem:[%s6396_s19 + $0x84] sm:$0xe] }
  0xbb   : > { %v7020_v35 = vpop.permute.xlu1 %1068  ;;  %1450 = vrot.lane.b32.xlu0 %v1411_v37, %s6252_s29  ;;  %v932_v37 = vrot.slane %v5454_v51, 1  ;;  %v7079_v51 = vrot.slane %v5503_v62, 1  ;;  %v742_v3 = vsel %vm634_vm1, %v737_v58, %v741_v27  ;;  %v9843_v62 = vshrl.u32 %v6900_v49, 16  ;;  %v5344_v27 = vld [vmem:[%s6396_s19 + $0x84] sm:$0xe] }
  0xbc   : > { %v7053_v26 = vpop.permute.xlu0 %1438  ;;  %v7121_v49 = vld [vmem:[%s6396_s19 + $0x7c] sm:$0xf] }
  0xbd   : > { %841 = vrot.lane.b32.xlu1 %v730_v21, %s6252_s29  ;;  %v1725_v21 = vshrl.u32 %v7015_v10, 16  ;;  %v7110_v2 = vor.u32 %v6938_v39, %v9843_v62  ;;  %v1739_v62 = vshll.u32 %v7086_v11, 16  ;;  %v2068_v16 = vsel %vm1948_vm2, %v6634_v29, %v7053_v26  ;;  %v7156_v26 = vld [vmem:[%s6396_s19 + $0x80] ss:$0 sps:$4 sm:$0x11]  }
  0xbe   : > { %v1737_v29 = vshrl.u32 %v7086_v11, 16 }
  0xbf   : > { %v957_v14 = vpop.permute.xlu1 %956  ;;  %1562 = vrot.lane.b32.xlu0 %v6942_v40, %s6251_s23  ;;  %v1730_v58 = vor.u32 %v1729_v31, %v1725_v21  ;;  %v5370_v21 = vld [vmem:[%s6396_s19 + $0x90] sm:$0xf]  ;;  %v5504_v31 = vcombine.low %v5344_v27, %v7105_v5  ;;  %v2114_v27 = vsel %vm1981_vm3, %v2068_v16, %v6975_v4  ;;  %v763_v16 = vshll.u32 %v7156_v26, 16 }
  0xc1   : > { %970 = vrot.lane.b32.xlu1 %v931_v46, %s6251_s23  ;;  %v1723_v46 = vsel %vm634_vm1, %v1718_v20, %v7004_v38  ;;  %v828_v40 = vpop.permute.xlu0 %827  ;;  %v2065_v38 = vsel %vm1948_vm2, %v6586_v47, %v7018_v53  ;;  %v1414_v47 = vsel %vm907_vm0, %v7012_v50, %v9844_v24  ;;  %v5551_v53 = vcombine.low %v5407_v25, %v5369_v55 }
  0xc2   : > { %v1950_v20 = vsel %vm1948_vm2, %v6448_v42, %v828_v40  ;;  %v934_v42 = vsel %vm907_vm0, %v932_v37, %v933_v30  ;;  %v332_v40 = vld [vmem:[%s6396_s19 + $0x78] sm:$0xf]  ;;  %v2112_v24 = vsel %vm1981_vm3, %v2065_v38, %v6985_v32  ;;  %v753_v50 = vrot.slane %v751_v23, 1  ;;  %v7142_v32 = vld [vmem:[%s6396_s19 + $0x8c] ss:$0 sps:$4 sm:$0x11]  }
  0xc3   : > { %v7075_v13 = vpop.permute.xlu1 %958  ;;  %1834 = vrot.lane.b32.xlu0 %v1723_v46, %s6253_s8  ;;  %v1983_v39 = vsel %vm1981_vm3, %v1950_v20, %v957_v14  ;;  %v748_v46 = vrot.slane %v746_v8, 1  ;;  %v1744_v55 = vshll.u32 %v7094_v59, 16  ;;  %v7131_v30 = vcombine.low %v5304_v63, %v7032_v33  ;;  %v7135_v14 = vld [vmem:[%s6396_s19 + $0x94] sm:$0xf]  ;;  %v5408_v38 = vld [vmem:[%s6396_s19 + $0x90] sm:$0xe] }
  0xc4   : > { %v7146_v43 = vcombine.low %v332_v40, %v7121_v49  ;;  %v2016_v63 = vsel %vm2014_vm4, %v1983_v39, %v7020_v35  ;;  %v7151_v8 = vrot.slane %v5551_v53, 1  ;;  %v935_v25 = vrot.slane %v5455_v18, 1 }
  0xc5   : > { %1082 = vrot.lane.b32.xlu1 %v6966_v0, %s6253_s8  ;;  %v1821_v54 = vpop.permute.xlu0 %1820  ;;  %v1741_v23 = vrot.slane %v1739_v62, 1  ;;  %v7160_v20 = vcombine.low %v5370_v21, %v7135_v14  ;;  %v9846_v35 = vshrl.u32 %v6966_v0, 16  ;;  %v1735_v18 = vsel %vm634_vm1, %v1730_v58, %v7069_v56 }
  0xc6   : > { %v2144_v37 = vsel %vm2014_vm4, %v2112_v24, %v1821_v54  ;;  %9845 = vst [vmem:[#allocation32_spill] sm:$0xff] %v7146_v43  ;;  %v1259_v54 = vshll.u32 %v7131_v30, 16  ;;  %v9847_v40 = vshrl.u32 %v7060_v52, 16  ;;  %v1746_v62 = vrot.slane %v1744_v55, 1 }
  0xc7   : > { %v830_v6 = vpop.permute.xlu1 %829  ;;  %1452 = vrot.lane.b32.xlu0 %v1414_v47, %s6252_s29  ;;  %2422 = vmatprep.mubr.bf16.mxu0 %v2144_v37  ;;  %v7166_v47 = vor.u32 %v7010_v7, %v9846_v35  ;;  %v7176_v24 = vld [vmem:[%s6396_s19 + $0x98] ss:$0 sps:$4 sm:$0x11]   ;;  %v1418_v21 = vrot.slane %v5504_v31, 1  ;;  %v758_v37 = vshll.u32 %v7146_v43, 16  ;;  %v1419_v58 = vrot.slane %v7142_v32, 1 }
  0xc8   : > { %2423 = vmatmul.mubr.bf16.vlgmr.msra.gmra.mrb[0].mxu0 %v2016_v63  ;;  %v749_v39 = vor.u32 %v748_v46, %v9847_v40  ;;  %v1952_v4 = vsel %vm1948_vm2, %v6452_v45, %v830_v6  ;;  %v756_v55 = vshrl.u32 %v7146_v43, 16  ;;  %v1751_v45 = vshll.u32 %v7160_v20, 16  ;;  %v5306_v35 = vld [vmem:[%s6396_s19 + $0x84] sm:$0xf] }
  0xc9   : > { %843 = vrot.lane.b32.xlu1 %v742_v3, %s6252_s29  ;;  %v370_v3 = vld [vmem:[%s6396_s19 + $0x78] sm:$0xe]  ;;  %v1823_v53 = vpop.permute.xlu0 %1822  ;;  %v9848_v31 = vrot.slane %v7050_v15, 1  ;;  %v334_v40 = vld [vmem:[%s6396_s19 + $0x84] sm:$0xf] }
  0xca   : > { %v2147_v0 = vsel %vm2014_vm4, %v2114_v27, %v1823_v53  ;;  %v5456_v46 = vcombine.low %v370_v3, %v7121_v49  ;;  %v754_v49 = vsel %vm634_vm1, %v749_v39, %v753_v50  ;;  %v1756_v3 = vshll.u32 %v7176_v24, 16  ;;  %v5309_v53 = vld [vmem:[%s6396_s19 + $0x94] sm:$0xf] }
  0xcb   : > { %v1071_v33 = vpop.permute.xlu1 %1070  ;;  %1564 = vrot.lane.b32.xlu0 %v7015_v10, %s6251_s23  ;;  %2430 = vmatprep.mubr.bf16.mxu0 %v2147_v0  ;;  %v5552_v10 = vcombine.low %v5408_v38, %v7135_v14  ;;  %v1417_v63 = vsel %vm907_vm0, %v7079_v51, %v9848_v31  ;;  %v1985_v14 = vsel %vm1981_vm3, %v1952_v4, %v7075_v13  ;;  %v760_v27 = vrot.slane %v758_v37, 1  ;;  %v7208_v0 = vld [vmem:[%s6396_s19 + $0x88] sm:$0xf]  ;;  %v5345_v13 = vld [vmem:[%s6396_s19 + $0x90] sm:$0xe] }
  0xcc   : > { %v1742_v38 = vor.u32 %v1741_v23, %v1737_v29  ;;  %v9849_v51 = vshll.u32 %v6825_v19, 16  ;;  %v2019_v50 = vsel %vm2014_vm4, %v1985_v14, %v1071_v33  ;;  %v9850_v39 = vrot.slane %v7064_v22, 1  ;;  %v7219_v29 = vld [vmem:[%s6396_s19 + $0x8c] ss:$0 sps:$4 sm:$0x11]  }
  0xcd   : > { %972 = vrot.lane.b32.xlu1 %v934_v42, %s6251_s23  ;;  %v7185_v42 = vrot.slane %v1259_v54, 1  ;;  %v1441_v6 = vpop.permute.xlu0 %1440  ;;  %v939_v54 = vrot.slane %v7156_v26, 1  ;;  %v938_v43 = vrot.slane %v5456_v46, 1  ;;  %v9851_v23 = vshrl.u32 %v7045_v34, 16  ;;  %v5373_v14 = vld [vmem:[%s6396_s19 + $0xa0] sm:$0xf] }
  0xce   : > { %v1338_v31 = vrot.slane %v9849_v51, 1  ;;  %v937_v7 = vsel %vm907_vm0, %v935_v25, %v9850_v39  ;;  %v765_v19 = vrot.slane %v763_v16, 1  ;;  %v7226_v33 = vrot.slane %v5552_v10, 1  ;;  %v7278_v39 = vld [vmem:[%s6396_s19 + $0xac] sm:$0xf] }
  0xcf   : > { %v832_v56 = vpop.permute.xlu1 %831  ;;  %1836 = vrot.lane.b32.xlu0 %v1735_v18, %s6253_s8  ;;  %v7224_v37 = vor.u32 %v7077_v17, %v9851_v23  ;;  %v1749_v22 = vshrl.u32 %v7160_v20, 16  ;;  %v1753_v18 = vrot.slane %v1751_v45, 1  ;;  %v7230_v25 = vrot.slane %v1756_v3, 1  ;;  %v5308_v17 = vld [vmem:[%s6396_s19 + $0x90] sm:$0xf] }
  0xd0   : > { %2431 = vmatmul.mubr.bf16.gmra.mrb[4].mxu0 %v2019_v50  ;;  %v7233_v46 = vcombine.low %v5306_v35, %v7105_v5  ;;  %v7241_v16 = vsel %vm634_vm1, %v7110_v2, %v1338_v31  ;;  %v1747_v10 = vsel %vm634_vm1, %v1742_v38, %v1746_v62  ;;  %v7245_v45 = vsel %vm907_vm0, %v1418_v21, %v1419_v58  ;;  %v5409_v5 = vld [vmem:[%s6396_s19 + $0x9c] sm:$0xe] }
  0xd1   : > { %1084 = vrot.lane.b32.xlu1 %v7045_v34, %s6253_s8  ;;  %v1553_v4 = vpop.permute.xlu0 %1552  ;;  %v7236_v34 = vcombine.low %v334_v40, %v7208_v0  ;;  %v5505_v3 = vcombine.low %v5345_v13, %v5309_v53  ;;  %v1954_v35 = vsel %vm1948_vm2, %v6476_v12, %v832_v56  ;;  %v7253_v2 = vsel %vm907_vm0, %v938_v43, %v939_v54  ;;  %v5372_v58 = vld [vmem:[%s6396_s19 + $0x9c] sm:$0xf]  ;;  %v5410_v56 = vld [vmem:[%s6396_s19 + $0xa8] sm:$0xe] }
  0xd2   : > { %v1271_v62 = vshll.u32 %v7233_v46, 16  ;;  %v775_v21 = vshll.u32 %v7219_v29, 16  ;;  %v7263_v12 = vcombine.low %v5308_v17, %v5309_v53  ;;  %v5553_v31 = vcombine.low %v5409_v5, %v5373_v14 }
  0xd3   : > { %v961_v26 = vpop.permute.xlu1 %960  ;;  %1454 = vrot.lane.b32.xlu0 %v1417_v63, %s6252_s29  ;;  %v770_v51 = vshll.u32 %v7236_v34, 16  ;;  %v1269_v53 = vshrl.u32 %v7233_v46, 16  ;;  %v7282_v23 = vrot.slane %v5505_v3, 1 }
  0xd4   : > { %v1987_v38 = vsel %vm1981_vm3, %v1954_v35, %v961_v26  ;;  %v1283_v26 = vshll.u32 %v7263_v12, 16  ;;  %v1273_v13 = vrot.slane %v1271_v62, 1  ;;  %v7288_v17 = vrot.slane %v775_v21, 1 }
  0xd5   : > { %845 = vrot.lane.b32.xlu1 %v754_v49, %s6252_s29  ;;  %v761_v49 = vor.u32 %v760_v27, %v756_v55  ;;  %v2071_v55 = vsel %vm1948_vm2, %v6757_v28, %v1441_v6  ;;  %v7261_v27 = vor.u32 %v1753_v18, %v1749_v22  ;;  %v1825_v43 = vpop.permute.xlu0 %1824  ;;  %v7271_v28 = vld [vmem:[%s6396_s19 + $0x84] sm:$0xe]  ;;  %v5554_v22 = vcombine.low %v5410_v56, %v7278_v39  ;;  %v5310_v18 = vld [vmem:[%s6396_s19 + $0x9c] sm:$0xf] }
  0xd6   : > { %v2116_v63 = vsel %vm1981_vm3, %v2071_v55, %v1553_v4  ;;  %v768_v4 = vshrl.u32 %v7236_v34, 16  ;;  %v772_v3 = vrot.slane %v770_v51, 1  ;;  %v1933_v35 = vrot.slane %v5553_v31, 1 }
  0xd7   : > { %v1073_v40 = vpop.permute.xlu1 %1072  ;;  %v2150_v6 = vsel %vm2014_vm4, %v2116_v63, %v1825_v43  ;;  %v766_v50 = vsel %vm634_vm1, %v761_v49, %v765_v19  ;;  %1566 = vrot.lane.b32.xlu0 %v7086_v11, %s6251_s23  ;;  %v1240_v19 = vshll.u32 %v6933_v60, 16  ;;  %v7290_v49 = vcombine.low %v5372_v58, %v5373_v14 }
  0xd8   : > { %v2022_v54 = vsel %vm2014_vm4, %v1987_v38, %v1073_v40  ;;  %2438 = vmatprep.mubr.bf16.mxu0 %v2150_v6  ;;  %v5457_v11 = vcombine.low %v7271_v28, %v7208_v0  ;;  %v7297_v40 = vld [vmem:[%s6396_s19 + $0xa0] sm:$0xf]  ;;  %v9852_v62 = vshrl.u32 %v7131_v30, 16  ;;  %v1281_v14 = vshrl.u32 %v7263_v12, 16 }
  0xd9   : > { %974 = vrot.lane.b32.xlu1 %v937_v7, %s6251_s23  ;;  %2439 = vmatmul.mubr.bf16.gmra.mrb[8].mxu0 %v2022_v54  ;;  %v1443_v5 = vpop.permute.xlu0 %1442  ;;  %v1242_v60 = vrot.slane %v1240_v19, 1  ;;  %v1285_v58 = vrot.slane %v1283_v26, 1  ;;  %v7304_v55 = vcombine.low %v5310_v18, %v7297_v40  ;;  %v1252_v38 = vshll.u32 %v7001_v1, 16  ;;  %v7319_v1 = vld [vmem:[%s6396_s19 + $0xa4] ss:$0 sps:$4 sm:$0x11]  }
  0xda   : > { %v1262_v21 = vor.u32 %v7185_v42, %v9852_v62  ;;  %v1936_v63 = vrot.slane %v5554_v22, 1  ;;  %v1264_v42 = vshll.u32 %v7050_v15, 16  ;;  %v2074_v51 = vsel %vm1948_vm2, %v6776_v44, %v1443_v5 }
  0xdb   : > { %v834_v7 = vpop.permute.xlu1 %833  ;;  %1838 = vrot.lane.b32.xlu0 %v1747_v10, %s6253_s8  ;;  %v7310_v43 = vsel %vm634_vm1, %v7166_v47, %v1242_v60  ;;  %v1295_v10 = vshll.u32 %v7304_v55, 16  ;;  %v1254_v31 = vrot.slane %v1252_v38, 1  ;;  %v6109_v47 = vld [vmem:[%s6396_s19 + $0x98] ss:$0 sps:$4 sm:$0x11]   ;;  %v1928_v44 = vrot.slane %v7094_v59, 1 }
  0xdc   : > { %v1956_v54 = vsel %vm1948_vm2, %v6526_v57, %v834_v7  ;;  %v1925_v57 = vrot.slane %v7025_v41, 1  ;;  %v336_v7 = vld [vmem:[%s6396_s19 + $0x90] sm:$0xf]  ;;  %v1931_v18 = vrot.slane %v7176_v24, 1  ;;  %v7342_v41 = vld [vmem:[%s6396_s19 + $0x94] sm:$0xf]  ;;  %v1274_v62 = vor.u32 %v1273_v13, %v1269_v53 }
  0xdd   : > { %1086 = vrot.lane.b32.xlu1 %v7131_v30, %s6253_s8  ;;  %v1922_v30 = vrot.slane %v6949_v61, 1  ;;  %v1555_v6 = vpop.permute.xlu0 %1554  ;;  %v1266_v61 = vrot.slane %v1264_v42, 1  ;;  %v7334_v22 = vsel %vm634_vm1, %v7224_v37, %v1254_v31  ;;  %v7345_v59 = vld [vmem:[%s6396_s19 + $0xb0] ss:$0 sps:$4 sm:$0x11]   ;;  %v7356_v24 = vsel %vm907_vm0, %v7151_v8, %v1928_v44 }
  0xde   : > { %v2118_v19 = vsel %vm1981_vm3, %v2074_v51, %v1555_v6  ;;  %v7352_v37 = vsel %vm907_vm0, %v7055_v9, %v1925_v57  ;;  %v7360_v60 = vsel %vm907_vm0, %v7226_v33, %v1931_v18  ;;  %v1276_v38 = vshll.u32 %v7142_v32, 16  ;;  %v7400_v6 = vld [vmem:[%s6396_s19 + $0x98] ss:$0 sps:$4 sm:$0x11]  }
  0xdf   : > { %v963_v56 = vpop.permute.xlu1 %962  ;;  %v7326_v15 = vsel %vm907_vm0, %v6998_v48, %v1922_v30  ;;  %1456 = vrot.lane.b32.xlu0 %v7245_v45, %s6252_s29  ;;  %v7348_v5 = vsel %vm634_vm1, %v1262_v21, %v1266_v61  ;;  %v1286_v8 = vor.u32 %v1285_v58, %v1281_v14  ;;  %v1288_v30 = vshll.u32 %v6109_v47, 16  ;;  %v5346_v61 = vld [vmem:[%s6396_s19 + $0x9c] sm:$0xe] }
  0xe0   : > { %v1989_v26 = vsel %vm1981_vm3, %v1956_v54, %v963_v56  ;;  %v1937_v56 = vrot.slane %v7345_v59, 1  ;;  %v773_v33 = vor.u32 %v772_v3, %v768_v4  ;;  %v7372_v54 = vcombine.low %v336_v7, %v7342_v41  ;;  %v5374_v7 = vld [vmem:[%s6396_s19 + $0xa8] sm:$0xf] }
  0xe1   : > { %847 = vrot.lane.b32.xlu1 %v766_v50, %s6252_s29  ;;  %v1934_v50 = vrot.slane %v7319_v1, 1  ;;  %v1827_v21 = vpop.permute.xlu0 %1826  ;;  %v1763_v53 = vshll.u32 %v7290_v49, 16  ;;  %v1290_v4 = vrot.slane %v1288_v30, 1  ;;  %v1422_v3 = vrot.slane %v6109_v47, 1 }
  0xe2   : > { %v2153_v42 = vsel %vm2014_vm4, %v2118_v19, %v1827_v21  ;;  %v7381_v13 = vsel %vm907_vm0, %v1936_v63, %v1937_v56  ;;  %v1293_v14 = vshrl.u32 %v7304_v55, 16  ;;  %v1297_v58 = vrot.slane %v1295_v10, 1  ;;  %v6118_v63 = vld [vmem:[%s6396_s19 + $0xa4] ss:$0 sps:$4 sm:$0x11]   ;;  %v9853_v56 = vld [vmem:[#allocation23_spill] sm:$0xff] }
  0xe3   : > { %v1075_v48 = vpop.permute.xlu1 %1074  ;;  %v7363_v45 = vsel %vm907_vm0, %v1933_v35, %v1934_v50  ;;  %v1278_v35 = vrot.slane %v1276_v38, 1  ;;  %1568 = vrot.lane.b32.xlu0 %v7160_v20, %s6251_s23  ;;  %2446 = vmatprep.mubr.bf16.mxu0 %v2153_v42  ;;  %v7395_v31 = vsel %vm634_vm1, %v1286_v8, %v1290_v4  ;;  %v778_v10 = vsel %vm634_vm1, %v773_v33, %v7288_v17 }
  0xe4   : > { %v2025_v9 = vsel %vm2014_vm4, %v1989_v26, %v1075_v48  ;;  %v782_v47 = vshll.u32 %v7372_v54, 16  ;;  %v1761_v0 = vshrl.u32 %v7290_v49, 16  ;;  %v1765_v28 = vrot.slane %v1763_v53, 1 }
  0xe5   : > { %976 = vrot.lane.b32.xlu1 %v7253_v2, %s6251_s23  ;;  %v1759_v2 = vsel %vm634_vm1, %v7261_v27, %v7230_v25  ;;  %2447 = vmatmul.mubr.bf16.gmra.mrb[12].mxu0 %v2025_v9  ;;  %v7385_v20 = vsel %vm634_vm1, %v1274_v62, %v1278_v35  ;;  %v1463_v51 = vpop.permute.xlu0 %1462  ;;  %v941_v25 = vrot.slane %v5457_v11, 1  ;;  %v942_v27 = vrot.slane %v7219_v29, 1  ;;  %v372_v9 = vld [vmem:[%s6396_s19 + $0x90] sm:$0xe] }
  0xe6   : > { %v1768_v29 = vshll.u32 %v7319_v1, 16  ;;  %v1423_v11 = vsel %vm907_vm0, %v7282_v23, %v1422_v3  ;;  %v1298_v57 = vor.u32 %v1297_v58, %v1293_v14  ;;  %v1300_v44 = vshll.u32 %v6118_v63, 16 }
  0xe7   : > { %v854_v32 = vpop.permute.xlu1 %853  ;;  %1840 = vrot.lane.b32.xlu0 %v1759_v2, %s6253_s8  ;;  %v943_v26 = vsel %vm907_vm0, %v941_v25, %v942_v27  ;;  %v780_v18 = vshrl.u32 %v7372_v54, 16  ;;  %v784_v50 = vrot.slane %v782_v47, 1  ;;  %v787_v19 = vshll.u32 %v7400_v6, 16 }
  0xe8   : > { %v1302_v48 = vrot.slane %v1300_v44, 1  ;;  %v1976_v1 = vsel %vm1948_vm2, %v6572_v36, %v854_v32  ;;  %v1766_v62 = vor.u32 %v1765_v28, %v1761_v0  ;;  %v1770_v38 = vrot.slane %v1768_v29, 1  ;;  %v9855_v44 = vld [vmem:[#allocation24_spill] sm:$0xff] }
  0xe9   : > { %1088 = vrot.lane.b32.xlu1 %v7233_v46, %s6253_s8  ;;  %v1575_v17 = vpop.permute.xlu0 %1574  ;;  %v5506_v21 = vcombine.low %v5346_v61, %v7297_v40  ;;  %v2104_v8 = vsel %vm1948_vm2, %v9853_v56, %v1463_v51  ;;  %v5522_v42 = vcombine.low %v5374_v7, %v7278_v39  ;;  %v785_v2 = vor.u32 %v784_v50, %v780_v18  ;;  %v6128_v39 = vld [vmem:[%s9827_s2 + $0x88] sm:$0xff]   ;;  %v9854_v61 = vld [vmem:[#allocation19_spill] sm:$0xff] }
  0xea   : > { %v7424_v33 = vsel %vm634_vm1, %v1298_v57, %v1302_v48  ;;  %v2138_v36 = vsel %vm1981_vm3, %v2104_v8, %v1575_v17  ;;  %v789_v53 = vrot.slane %v787_v19, 1  ;;  %v5458_v4 = vcombine.low %v372_v9, %v7342_v41  ;;  %v6142_v41 = vld [vmem:[%s9827_s2 + $0x80] sm:$0xff]   ;;  %v9856_v9 = vld [vmem:[#allocation20_spill] sm:$0xff]  ;;  %s8203_s2 = sld [smem:[#allocation3 + $0x21]] }
  0xeb   : > { %v983_v46 = vpop.permute.xlu1 %982  ;;  %1458 = vrot.lane.b32.xlu0 %v1423_v11, %s6252_s29  ;;  %v1771_v14 = vsel %vm634_vm1, %v1766_v62, %v1770_v38  ;;  %v1424_v58 = vrot.slane %v5506_v21, 1  ;;  %v1425_v51 = vrot.slane %v6118_v63, 1  ;;  %v1775_v25 = vshll.u32 %v5522_v42, 16 }
  0xec   : > { %v2009_v30 = vsel %vm1981_vm3, %v1976_v1, %v983_v46  ;;  %v945_v47 = vrot.slane %v7400_v6, 1  ;;  %v1773_v0 = vshrl.u32 %v5522_v42, 16 }
  0xed   : > { %849 = vrot.lane.b32.xlu1 %v778_v10, %s6252_s29  ;;  %v1847_v35 = vpop.permute.xlu0 %1846  ;;  %v790_v10 = vsel %vm634_vm1, %v785_v2, %v789_v53  ;;  %v1426_v63 = vsel %vm907_vm0, %v1424_v58, %v1425_v51  ;;  %v1777_v28 = vrot.slane %v1775_v25, 1  ;;  %v9859_v51 = vld [vmem:[#allocation31_spill] sm:$0xff] }
  0xee   : > { %v2183_v40 = vsel %vm2014_vm4, %v2138_v36, %v1847_v35 }
  0xef   : > { %v1095_v23 = vpop.permute.xlu1 %1094  ;;  %1570 = vrot.lane.b32.xlu0 %v7290_v49, %s6251_s23  ;;  %2526 = vmatprep.mubr.bf16.mxu1 %v2183_v40  ;;  %v944_v49 = vrot.slane %v5458_v4, 1  ;;  %v1778_v7 = vor.u32 %v1777_v28, %v1773_v0  ;;  %v9860_v0 = vld [vmem:[#allocation29_spill] sm:$0xff] }
  0xf0   : > { %v2055_v32 = vsel %vm2014_vm4, %v2009_v30, %v1095_v23  ;;  %v9857_v30 = vld [vmem:[#allocation27_spill] sm:$0xff]  ;;  %v1223_v28 = vshll.u32 %v9860_v0, 16  ;;  %9871 = sst [smem:[#allocation34_spill]] %s8203_s2 }
  0xf1   : > { %978 = vrot.lane.b32.xlu1 %v943_v26, %s6251_s23  ;;  %2527 = vmatmul.mubr.bf16.vlgmr.msra.gmra.mrb[0].mxu1 %v2055_v32  ;;  %v1445_v27 = vpop.permute.xlu0 %1444  ;;  %v946_v11 = vsel %vm907_vm0, %v944_v49, %v945_v47 }
  0xf2   : > { %5838 = vmatpush3.bf16.msra.mxu1 %v6142_v41  ;;  %v2077_v17 = vsel %vm1948_vm2, %v9855_v44, %v1445_v27 }
  0xf3   : > { %v836_v3 = vpop.permute.xlu1 %835  ;;  %5839 = vmatprep.subr.bf16.mxu1 %v6128_v39  ;;  %1842 = vrot.lane.b32.xlu0 %v1771_v14, %s6253_s8 }
  0xf4   : > { %v1958_v57 = vsel %vm1948_vm2, %v9854_v61, %v836_v3  ;;  %v9858_v3 = vld [vmem:[#allocation21_spill] sm:$0xff] }
  0xf5   : > { %1090 = vrot.lane.b32.xlu1 %v7263_v12, %s6253_s8  ;;  %v1780_v12 = vshll.u32 %v7345_v59, 16  ;;  %v1557_v29 = vpop.permute.xlu0 %1556 }
  0xf6   : > { %5840 = vmatpush3.bf16.msra.mxu1 %v6128_v39  ;;  %v2120_v59 = vsel %vm1981_vm3, %v2077_v17, %v1557_v29  ;;  %v6143_v29 = vld [vmem:[%s6396_s19 + $0x1c] sm:$0xf] }
  0xf7   : > { %v965_v46 = vpop.permute.xlu1 %964  ;;  %1460 = vrot.lane.b32.xlu0 %v1426_v63, %s6252_s29  ;;  %v1782_v18 = vrot.slane %v1780_v12, 1  ;;  %v6144_v17 = vld [vmem:[%s6396_s19 + $0x5c] ss:$0 sps:$4 sm:$0x11]  }
  0xf8   : > { %v1991_v26 = vsel %vm1981_vm3, %v1958_v57, %v965_v46  ;;  %v5398_v46 = vld [vmem:[%s6396_s19 + $0x18] sm:$0xe]  ;;  %v1221_v57 = vshrl.u32 %v9860_v0, 16 }
  0xf9   : > { %851 = vrot.lane.b32.xlu1 %v790_v10, %s6252_s29  ;;  %v1829_v50 = vpop.permute.xlu0 %1828  ;;  %v1783_v23 = vsel %vm634_vm1, %v1778_v7, %v1782_v18  ;;  %v6145_v18 = vld [vmem:[%s6396_s19 + $0x20] ss:$0 sps:$4 sm:$0x11]   ;;  %s8146_s29 = sld [smem:[#allocation3 + $0x11]] }
  0xfa   : > { %v2156_v48 = vsel %vm2014_vm4, %v2120_v59, %v1829_v50  ;;  %v1901_v59 = vrot.slane %v6145_v18, 1  ;;  %v5400_v50 = vld [vmem:[%s6396_s19 + $0x30] sm:$0xe]  ;;  %v5404_v18 = vld [vmem:[%s6396_s19 + $0x60] sm:$0xe] }
  0xfb   : > { %v1077_v6 = vpop.permute.xlu1 %1076  ;;  %1572 = vrot.lane.b32.xlu0 %v5522_v42, %s6251_s23  ;;  %2454 = vmatprep.mubr.bf16.mxu0 %v2156_v48 }
  0xfc   : > { %v2028_v19 = vsel %vm2014_vm4, %v1991_v26, %v1077_v6  ;;  %v1225_v6 = vrot.slane %v1223_v28, 1  ;;  %v1228_v26 = vshll.u32 %v6144_v17, 16  ;;  %v9863_v28 = vld [vmem:[#allocation28_spill] sm:$0xff] }
  0xfd   : > { %980 = vrot.lane.b32.xlu1 %v946_v11, %s6251_s23  ;;  %2455 = vmatmul.mubr.bf16.gmra.mrb[16].mxu0 %v2028_v19  ;;  %v1465_v62 = vpop.permute.xlu0 %1464  ;;  %v5542_v11 = vcombine.low %v5398_v46, %v6143_v29  ;;  %v9861_v19 = vld [vmem:[#allocation22_spill] sm:$0xff]  ;;  %s9697_s23 = smov 124  }
  0xfe   : > { %v2107_v42 = vsel %vm1948_vm2, %v9857_v30, %v1465_v62  ;;  %v6146_v30 = vld [vmem:[%s6396_s19 + $0x34] sm:$0xf] }
  0xff   : > { %v856_v1 = vpop.permute.xlu1 %855  ;;  %1844 = vrot.lane.b32.xlu0 %v1783_v23, %s6253_s8  ;;  %v1900_v7 = vrot.slane %v5542_v11, 1  ;;  %v6150_v11 = vld [vmem:[%s6396_s19 + $0x44] ss:$0 sps:$4 sm:$0x11]  }
 0x100   : > { %v1978_v56 = vsel %vm1948_vm2, %v9856_v9, %v856_v1 }
 0x101   : > { %1092 = vrot.lane.b32.xlu1 %v7304_v55, %s6253_s8  ;;  %v1577_v21 = vpop.permute.xlu0 %1576  ;;  %s8159_s8 = sld [smem:[#allocation3 + $0x13]] }
 0x102   : > { %v2140_v35 = vsel %vm1981_vm3, %v2107_v42, %v1577_v21  ;;  %v5544_v42 = vcombine.low %v5400_v50, %v6146_v30  ;;  %v6152_v50 = vld [vmem:[%s6396_s19 + $0x58] sm:$0xf] }
 0x103   : > { %v985_v38 = vpop.permute.xlu1 %984 }
 0x104   : > { %v2011_v36 = vsel %vm1981_vm3, %v1978_v56, %v985_v38  ;;  %v1226_v56 = vor.u32 %v1225_v6, %v1221_v57 }
 0x105   : > { %v1849_v32 = vpop.permute.xlu0 %1848 }
 0x106   : > { %v2186_v55 = vsel %vm2014_vm4, %v2140_v35, %v1849_v32  ;;  %v1902_v35 = vsel %vm907_vm0, %v1900_v7, %v1901_v59 }
 0x107   : > { %v1097_v8 = vpop.permute.xlu1 %1096  ;;  %2534 = vmatprep.mubr.bf16.mxu1 %v2186_v55  ;;  %v1906_v55 = vrot.slane %v5544_v42, 1 }
 0x108   : > { %v2058_v40 = vsel %vm2014_vm4, %v2011_v36, %v1097_v8  ;;  %v1230_v8 = vrot.slane %v1228_v26, 1  ;;  %v6151_v26 = vld [vmem:[%s6396_s19 + $0x50] ss:$0 sps:$4 sm:$0x11]  }
 0x109   : > { %2535 = vmatmul.mubr.bf16.gmra.mrb[4].mxu1 %v2058_v40  ;;  %v1447_v53 = vpop.permute.xlu0 %1446  ;;  %v1913_v7 = vrot.slane %v6151_v26, 1 }
 0x10a   : > { %v2080_v25 = vsel %vm1948_vm2, %v9859_v51, %v1447_v53  ;;  %v1231_v32 = vsel %vm634_vm1, %v1226_v56, %v1230_v8  ;;  %v6147_v53 = vld [vmem:[%s6396_s19 + $0x38] ss:$0 sps:$4 sm:$0x11]   ;;  %vm2942_vm1 = vcmask 7168  }
 0x10b   : > { %v838_v2 = vpop.permute.xlu1 %837 }
 0x10c   : > { %v1960_v14 = vsel %vm1948_vm2, %v9858_v3, %v838_v2  ;;  %v5401_v2 = vld [vmem:[%s6396_s19 + $0x3c] sm:$0xe]  ;;  %v9862_v3 = vld [vmem:[#allocation25_spill] sm:$0xff] }
 0x10d   : > { %v1559_v39 = vpop.permute.xlu0 %1558 }
 0x10e   : > { %v2122_v41 = vsel %vm1981_vm3, %v2080_v25, %v1559_v39  ;;  %v5402_v39 = vld [vmem:[%s6396_s19 + $0x48] sm:$0xe]  ;;  %v6148_v25 = vld [vmem:[%s6396_s19 + $0x40] sm:$0xf] }
 0x10f   : > { %v967_v4 = vpop.permute.xlu1 %966 }
 0x110   : > { %v1993_v27 = vsel %vm1981_vm3, %v1960_v14, %v967_v4  ;;  %v1907_v4 = vrot.slane %v6147_v53, 1 }
 0x111   : > { %v1831_v10 = vpop.permute.xlu0 %1830 }
 0x112   : > { %v2159_v47 = vsel %vm2014_vm4, %v2122_v41, %v1831_v10  ;;  %v6149_v10 = vld [vmem:[%s6396_s19 + $0x4c] sm:$0xf]  ;;  %v1908_v46 = vsel %vm907_vm0, %v1906_v55, %v1907_v4 }
 0x113   : > { %v1079_v58 = vpop.permute.xlu1 %1078  ;;  %2462 = vmatprep.mubr.bf16.mxu0 %v2159_v47 }
 0x114   : > { %v2031_v49 = vsel %vm2014_vm4, %v1993_v27, %v1079_v58  ;;  %v5545_v27 = vcombine.low %v5401_v2, %v6148_v25  ;;  %v9865_v25 = vld [vmem:[#allocation30_spill] sm:$0xff] }
 0x115   : > { %2463 = vmatmul.mubr.bf16.gmra.mrb[20].mxu0 %v2031_v49  ;;  %v1467_v12 = vpop.permute.xlu0 %1466  ;;  %v5546_v49 = vcombine.low %v5402_v39, %v6149_v10 }
 0x116   : > { %v2110_v23 = vsel %vm1948_vm2, %v7241_v16, %v1467_v12  ;;  %v1909_v12 = vrot.slane %v5545_v27, 1 }
 0x117   : > { %v858_v63 = vpop.permute.xlu1 %857  ;;  %v1912_v6 = vrot.slane %v5546_v49, 1 }
 0x118   : > { %v1980_v48 = vsel %vm1948_vm2, %v9861_v19, %v858_v63 }
 0x119   : > { %v1579_v44 = vpop.permute.xlu0 %1578 }
 0x11a   : > { %v2142_v38 = vsel %vm1981_vm3, %v2110_v23, %v1579_v44  ;;  %v5403_v44 = vld [vmem:[%s6396_s19 + $0x54] sm:$0xe]  ;;  %v6153_v23 = vld [vmem:[%s6396_s19 + $0x64] sm:$0xf] }
 0x11b   : > { %v987_v61 = vpop.permute.xlu1 %986  ;;  %v5547_v19 = vcombine.low %v5403_v44, %v6152_v50  ;;  %v5412_v44 = vld [vmem:[%s6396_s19 + $0xc0] sm:$0xe] }
 0x11c   : > { %v2013_v62 = vsel %vm1981_vm3, %v1980_v48, %v987_v61  ;;  %v1910_v61 = vrot.slane %v6150_v11, 1 }
 0x11d   : > { %v1851_v21 = vpop.permute.xlu0 %1850  ;;  %v1915_v30 = vrot.slane %v5547_v19, 1 }
 0x11e   : > { %v2189_v36 = vsel %vm2014_vm4, %v2142_v38, %v1851_v21  ;;  %v1914_v38 = vsel %vm907_vm0, %v1912_v6, %v1913_v7  ;;  %v9864_v21 = vld [vmem:[#allocation26_spill] sm:$0xff] }
 0x11f   : > { %v1099_v1 = vpop.permute.xlu1 %1098  ;;  %2542 = vmatprep.mubr.bf16.mxu1 %v2189_v36  ;;  %v6154_v36 = vld [vmem:[%s6396_s19 + $0x5c] ss:$0 sps:$4 sm:$0x11]  }
 0x120   : > { %v2061_v9 = vsel %vm2014_vm4, %v2013_v62, %v1099_v1  ;;  %v1911_v1 = vsel %vm907_vm0, %v1909_v12, %v1910_v61  ;;  %v5548_v62 = vcombine.low %v5404_v18, %v6153_v23 }
 0x121   : > { %2543 = vmatmul.mubr.bf16.gmra.mrb[8].mxu1 %v2061_v9  ;;  %v1449_v40 = vpop.permute.xlu0 %1448 }
 0x122   : > { %5841 = vmatprep.mubr.msk.bf16.mxu1 %vm1948_vm2, %v1902_v35  ;;  %v2083_v51 = vsel %vm1948_vm2, %v1231_v32, %v1449_v40  ;;  %v1916_v35 = vrot.slane %v6154_v36, 1  ;;  %v6155_v40 = vld [vmem:[%s6396_s19 + $0x68] ss:$0 sps:$4 sm:$0x11]  }
 0x123   : > { %v840_v16 = vpop.permute.xlu1 %839  ;;  %v1919_v55 = vrot.slane %v6155_v40, 1 }
 0x124   : > { %v1962_v14 = vsel %vm1948_vm2, %v9862_v3, %v840_v16  ;;  %v1918_v16 = vrot.slane %v5548_v62, 1  ;;  %v1917_v39 = vsel %vm907_vm0, %v1915_v30, %v1916_v35 }
 0x125   : > { %v1561_v41 = vpop.permute.xlu0 %1560 }
 0x126   : > { %v2124_v63 = vsel %vm1981_vm3, %v2083_v51, %v1561_v41 }
 0x127   : > { %v969_v58 = vpop.permute.xlu1 %968 }
 0x128   : > { %v1995_v47 = vsel %vm1981_vm3, %v1962_v14, %v969_v58  ;;  %v1920_v14 = vsel %vm907_vm0, %v1918_v16, %v1919_v55 }
 0x129   : > { %5842 = vmatmul.mubr.msk.bf16.vlgmr.msra.gmra.mrb[12].mxu1 %vm1948_vm2, %v9863_v28  ;;  %v1833_v29 = vpop.permute.xlu0 %1832 }
 0x12a   : > { %5845 = vmatprep.mubr.msk.bf16.mxu1 %vm1948_vm2, %v1908_v46  ;;  %v2162_v17 = vsel %vm2014_vm4, %v2124_v63, %v1833_v29 }
 0x12b   : > { %v1081_v0 = vpop.permute.xlu1 %1080  ;;  %2470 = vmatprep.mubr.bf16.mxu0 %v2162_v17 }
 0x12c   : > { %v2034_v57 = vsel %vm2014_vm4, %v1995_v47, %v1081_v0 }
 0x12d   : > { %2471 = vmatmul.mubr.bf16.gmra.mrb[24].mxu0 %v2034_v57  ;;  %v1451_v48 = vpop.permute.xlu0 %1450 }
 0x12e   : > { %v2086_v8 = vsel %vm1948_vm2, %v7310_v43, %v1451_v48 }
 0x12f   : > { %v842_v59 = vpop.permute.xlu1 %841 }
 0x130   : > { %v1964_v9 = vsel %vm1948_vm2, %v9864_v21, %v842_v59  ;;  %v6159_v21 = vld [vmem:[%s6396_s19 + $0xc8] ss:$0 sps:$4 sm:$0x11]  }
 0x131   : > { %5846 = vmatmul.mubr.msk.bf16.gmra.mrb[16].mxu1 %vm1948_vm2, %v1911_v1  ;;  %v1563_v42 = vpop.permute.xlu0 %1562  ;;  %v6158_v1 = vld [vmem:[%s6396_s19 + $0xbc] ss:$0 sps:$4 sm:$0x11]  }
 0x132   : > { %5849 = vmatprep.mubr.msk.bf16.mxu1 %vm1948_vm2, %v1914_v38  ;;  %v2126_v2 = vsel %vm1981_vm3, %v2086_v8, %v1563_v42  ;;  %v1940_v23 = vrot.slane %v6158_v1, 1  ;;  %v5413_v38 = vld [vmem:[%s6396_s19 + $0xcc] sm:$0xe] }
 0x133   : > { %v971_v56 = vpop.permute.xlu1 %970 }
 0x134   : > { %v1997_v32 = vsel %vm1981_vm3, %v1964_v9, %v971_v56  ;;  %v1943_v9 = vrot.slane %v6159_v21, 1  ;;  %v9866_v56 = vld [vmem:[#allocation32_spill] sm:$0xff] }
 0x135   : > { %v1835_v4 = vpop.permute.xlu0 %1834 }
 0x136   : > { %v2165_v3 = vsel %vm2014_vm4, %v2126_v2, %v1835_v4 }
 0x137   : > { %v1083_v53 = vpop.permute.xlu1 %1082  ;;  %2478 = vmatprep.mubr.bf16.mxu0 %v2165_v3 }
 0x138   : > { %v2037_v43 = vsel %vm2014_vm4, %v1997_v32, %v1083_v53 }
 0x139   : > { %5850 = vmatmul.mubr.msk.bf16.gmra.mrb[20].mxu1 %vm1948_vm2, %v1917_v39  ;;  %2479 = vmatmul.mubr.bf16.gmra.mrb[28].mxu0 %v2037_v43  ;;  %v1453_v51 = vpop.permute.xlu0 %1452 }
 0x13a   : > { %5853 = vmatprep.mubr.msk.bf16.mxu1 %vm1948_vm2, %v1920_v14  ;;  %v2089_v10 = vsel %vm1948_vm2, %v7334_v22, %v1453_v51 }
 0x13b   : > { %v844_v58 = vpop.permute.xlu1 %843 }
 0x13c   : > { %v1966_v27 = vsel %vm1948_vm2, %v9865_v25, %v844_v58 }
 0x13d   : > { %v1565_v49 = vpop.permute.xlu0 %1564 }
 0x13e   : > { %v2128_v46 = vsel %vm1981_vm3, %v2089_v10, %v1565_v49 }
 0x13f   : > { %v973_v41 = vpop.permute.xlu1 %972 }
 0x140   : > { %v1999_v47 = vsel %vm1981_vm3, %v1966_v27, %v973_v41 }
 0x141   : > { %5854 = vmatmul.mubr.msk.bf16.gmra.mrb[24].mxu1 %vm1948_vm2, %v7326_v15  ;;  %v1837_v0 = vpop.permute.xlu0 %1836 }
 0x142   : > { %5857 = vmatprep.mubr.msk.bf16.mxu1 %vm1948_vm2, %v7352_v37  ;;  %v2168_v12 = vsel %vm2014_vm4, %v2128_v46, %v1837_v0  ;;  %v5411_v37 = vld [vmem:[%s6396_s19 + $0xb4] sm:$0xe] }
 0x143   : > { %v1085_v63 = vpop.permute.xlu1 %1084  ;;  %2486 = vmatprep.mubr.bf16.mxu0 %v2168_v12 }
 0x144   : > { %v2040_v28 = vsel %vm2014_vm4, %v1999_v47, %v1085_v63 }
 0x145   : > { %2487 = vmatmul.mubr.bf16.gmra.mrb[32].mxu0 %v2040_v28  ;;  %v1455_v29 = vpop.permute.xlu0 %1454 }
 0x146   : > { %v2092_v15 = vsel %vm1948_vm2, %v7348_v5, %v1455_v29 }
 0x147   : > { %v846_v22 = vpop.permute.xlu1 %845 }
 0x148   : > { %v1968_v11 = vsel %vm1948_vm2, %v7060_v52, %v846_v22  ;;  %v6156_v52 = vld [vmem:[%s6396_s19 + $0xb8] sm:$0xf] }
 0x149   : > { %5858 = vmatmul.mubr.msk.bf16.gmra.mrb[28].mxu1 %vm1948_vm2, %v7356_v24  ;;  %v1567_v57 = vpop.permute.xlu0 %1566  ;;  %v5555_v7 = vcombine.low %v5411_v37, %v6156_v52  ;;  %v6157_v24 = vld [vmem:[%s6396_s19 + $0xc4] sm:$0xf] }
 0x14a   : > { %5861 = vmatprep.mubr.msk.bf16.mxu1 %vm1948_vm2, %v7360_v60  ;;  %v2130_v17 = vsel %vm1981_vm3, %v2092_v15, %v1567_v57  ;;  %v5556_v59 = vcombine.low %v5412_v44, %v6157_v24 }
 0x14b   : > { %v975_v61 = vpop.permute.xlu1 %974  ;;  %v1939_v19 = vrot.slane %v5555_v7, 1 }
 0x14c   : > { %v2001_v6 = vsel %vm1981_vm3, %v1968_v11, %v975_v61  ;;  %v1942_v62 = vrot.slane %v5556_v59, 1 }
 0x14d   : > { %v1839_v18 = vpop.permute.xlu0 %1838  ;;  %v1941_v16 = vsel %vm907_vm0, %v1939_v19, %v1940_v23 }
 0x14e   : > { %v2171_v50 = vsel %vm2014_vm4, %v2130_v17, %v1839_v18  ;;  %v1944_v32 = vsel %vm907_vm0, %v1942_v62, %v1943_v9 }
 0x14f   : > { %v1087_v26 = vpop.permute.xlu1 %1086  ;;  %2494 = vmatprep.mubr.bf16.mxu0 %v2171_v50 }
 0x150   : > { %v2043_v5 = vsel %vm2014_vm4, %v2001_v6, %v1087_v26 }
 0x151   : > { %2495 = vmatmul.mubr.bf16.gmra.mrb[36].mxu0 %v2043_v5  ;;  %5862 = vmatmul.mubr.msk.bf16.gmra.mrb[32].mxu1 %vm1948_vm2, %v7363_v45  ;;  %v1457_v48 = vpop.permute.xlu0 %1456  ;;  %v6160_v45 = vld [vmem:[%s6396_s19 + $0xd0] sm:$0xf] }
 0x152   : > { %5865 = vmatprep.mubr.msk.bf16.mxu1 %vm1948_vm2, %v7381_v13  ;;  %v2095_v42 = vsel %vm1948_vm2, %v7385_v20, %v1457_v48  ;;  %v5557_v36 = vcombine.low %v5413_v38, %v6160_v45  ;;  %v6161_v20 = vld [vmem:[%s6396_s19 + $0xd4] ss:$0 sps:$4 sm:$0x11]   ;;  %s8136_s19 = sld [smem:[#allocation3 + $0xf]] }
 0x153   : > { %v848_v60 = vpop.permute.xlu1 %847  ;;  %v1946_v39 = vrot.slane %v6161_v20, 1 }
 0x154   : > { %v1970_v8 = vsel %vm1948_vm2, %v9866_v56, %v848_v60  ;;  %v1945_v2 = vrot.slane %v5557_v36, 1 }
 0x155   : > { %v1569_v35 = vpop.permute.xlu0 %1568 }
 0x156   : > { %v2132_v40 = vsel %vm1981_vm3, %v2095_v42, %v1569_v35  ;;  %v1947_v58 = vsel %vm907_vm0, %v1945_v2, %v1946_v39  ;;  %vm3372_vm0 = vcmask 154648  }
 0x157   : > { %v977_v30 = vpop.permute.xlu1 %976 }
 0x158   : > { %v2003_v13 = vsel %vm1981_vm3, %v1970_v8, %v977_v30 }
 0x159   : > { %5866 = vmatmul.mubr.msk.bf16.gmra.mrb[36].mxu1 %vm1948_vm2, %v1941_v16  ;;  %v1841_v53 = vpop.permute.xlu0 %1840 }
 0x15a   : > { %5869 = vmatprep.mubr.msk.bf16.mxu1 %vm1948_vm2, %v1944_v32  ;;  %v2174_v43 = vsel %vm2014_vm4, %v2132_v40, %v1841_v53 }
 0x15b   : > { %v1089_v55 = vpop.permute.xlu1 %1088  ;;  %2502 = vmatprep.mubr.bf16.mxu0 %v2174_v43 }
 0x15c   : > { %v2046_v4 = vsel %vm2014_vm4, %v2003_v13, %v1089_v55 }
 0x15d   : > { %2503 = vmatmul.mubr.bf16.gmra.mrb[40].mxu0 %v2046_v4  ;;  %v1459_v14 = vpop.permute.xlu0 %1458 }
 0x15e   : > { %v2098_v27 = vsel %vm1948_vm2, %v7395_v31, %v1459_v14 }
 0x15f   : > { %v850_v3 = vpop.permute.xlu1 %849 }
 0x160   : > { %v1972_v51 = vsel %vm1948_vm2, %v7236_v34, %v850_v3 }
 0x161   : > { %5870 = vmatmul.mubr.msk.bf16.gmra.mrb[40].mxu1 %vm1948_vm2, %v1947_v58  ;;  %v1571_v41 = vpop.permute.xlu0 %1570 }
 0x162   : > { %v2134_v49 = vsel %vm1981_vm3, %v2098_v27, %v1571_v41 }
 0x163   : > { %v979_v25 = vpop.permute.xlu1 %978 }
 0x164   : > { %v2005_v10 = vsel %vm1981_vm3, %v1972_v51, %v979_v25 }
 0x165   : > { %v1843_v46 = vpop.permute.xlu0 %1842 }
 0x166   : > { %v2177_v0 = vsel %vm2014_vm4, %v2134_v49, %v1843_v46  ;;  %v6254_v46 = vmov 0.0  }
 0x167   : > { %v1091_v47 = vpop.permute.xlu1 %1090  ;;  %2510 = vmatprep.mubr.bf16.mxu0 %v2177_v0  ;;  %5873 = vmatprep.subr.bf16.mxu1 %v6254_v46  ;;  %3162 = vst [vmem:[#allocation2] sm:$0xff] %v6254_v46  ;;  %3163 = vst [vmem:[#allocation2 + $0x8] sm:$0xff] %v6254_v46 }
 0x168   : > { %v2049_v63 = vsel %vm2014_vm4, %v2005_v10, %v1091_v47  ;;  %v6129_v47 = vld [vmem:[%s9867_s4] sm:$0xff]   ;;  %3164 = vst [vmem:[#allocation2 + $0x10] sm:$0x3f] %v6254_v46  ;;  %3165 = vst [vmem:[#allocation2 + $0x18] sm:$0xff] %v6254_v46  ;;  %5875 = vmatprep.mubr.msk.bf16.mxu1 %vm6255_vm5, %v6254_v46  ;;  %s9707_s4 = smov 125  }
 0x169   : > { %2511 = vmatmul.mubr.bf16.gmra.mrb[44].mxu0 %v2049_v63  ;;  %v1461_v34 = vpop.permute.xlu0 %1460  ;;  %3166 = vst [vmem:[#allocation2 + $0x20] sm:$0xff] %v6254_v46  ;;  %3167 = vst [vmem:[#allocation2 + $0x28] sm:$0x3f] %v6254_v46  ;;  %5874 = vmatpush3.bf16.msra.mxu1 %v6129_v47 }
 0x16a   : > { %v2101_v22 = vsel %vm1948_vm2, %v7424_v33, %v1461_v34  ;;  %5879 = vmatprep.subr.bf16.mxu1 %v6254_v46 }
 0x16b   : > { %v852_v28 = vpop.permute.xlu1 %851 }
 0x16c   : > { %v1974_v31 = vsel %vm1948_vm2, %v7372_v54, %v852_v28 }
 0x16d   : > { %v1573_v29 = vpop.permute.xlu0 %1572 }
 0x16e   : > { %v2136_v61 = vsel %vm1981_vm3, %v2101_v22, %v1573_v29  ;;  %v7654_v22 = vld [vmem:[%s9868_s3] ss:$0 sm:$0xff]  ;;  %s8205_s3 = sld [smem:[#allocation3 + $0x23]] }
 0x16f   : > { %v981_v12 = vpop.permute.xlu1 %980 }
 0x170   : > { %v2007_v11 = vsel %vm1981_vm3, %v1974_v31, %v981_v12 }
 0x171   : > { %v1845_v57 = vpop.permute.xlu0 %1844 }
 0x172   : > { %v2180_v6 = vsel %vm2014_vm4, %v2136_v61, %v1845_v57 }
 0x173   : > { %v1093_v15 = vpop.permute.xlu1 %1092  ;;  %2518 = vmatprep.mubr.bf16.mxu0 %v2180_v6 }
 0x174   : > { %v2052_v37 = vsel %vm2014_vm4, %v2007_v11, %v1093_v15  ;;  %9872 = sst [smem:[#allocation35_spill]] %s8205_s3 }
 0x175   : > { %2519 = vmatmul.mubr.bf16.gmra.mrb[48].mxu0 %v2052_v37 }
 0x19b   : > { %v5719_v44 = vpop.f32.mrb[0].mxu0 }
 0x19c   : > { %v5720_v17 = vpop.f32.mrb[1].mxu0 }
 0x19d   : > { %v7606_v54 = vadd.f32 %v5720_v17, %v5719_v44  ;;  %v5722_v26 = vpop.f32.mrb[2].mxu0 }
 0x19e   : > { %v5723_v52 = vpop.f32.mrb[3].mxu0 }
 0x19f   : > { %v7608_v33 = vadd.f32 %v5723_v52, %v5722_v26  ;;  %v2425_v61 = vadd.f32 %v7606_v54, %v7654_v22 }
 0x1a1   : > { %v2428_v17 = vadd.f32 %v7608_v33, %v7654_v22 }
 0x1a3   : > { %v5725_v7 = vpop.f32.mrb[4].mxu0 }
 0x1a4   : > { %v5726_v18 = vpop.f32.mrb[5].mxu0 }
 0x1a5   : > { %v5727_v5 = vadd.f32 %v5726_v18, %v5725_v7  ;;  %v5728_v24 = vpop.f32.mrb[6].mxu0 }
 0x1a6   : > { %v5729_v59 = vpop.f32.mrb[7].mxu0 }
 0x1a7   : > { %v5730_v50 = vadd.f32 %v5729_v59, %v5728_v24  ;;  %v2433_v29 = vadd.f32 %v5727_v5, %v7654_v22 }
 0x1a9   : > { %v2436_v37 = vadd.f32 %v5730_v50, %v7654_v22 }
 0x1ac   : > { %v5731_v60 = vpop.f32.mrb[8].mxu0 }
 0x1ad   : > { %v5732_v19 = vpop.f32.mrb[9].mxu0 }
 0x1ae   : > { %v7610_v48 = vadd.f32 %v5732_v19, %v5731_v60  ;;  %v5734_v1 = vpop.f32.mrb[10].mxu0 }
 0x1af   : > { %v5735_v23 = vpop.f32.mrb[11].mxu0 }
 0x1b0   : > { %v7612_v62 = vadd.f32 %v5735_v23, %v5734_v1  ;;  %v2441_v23 = vadd.f32 %v7610_v48, %v7654_v22 }
 0x1b2   : > { %v2444_v48 = vadd.f32 %v7612_v62, %v7654_v22 }
 0x1b8   : > { %v5737_v38 = vpop.f32.mrb[12].mxu0 }
 0x1b9   : > { %v5738_v21 = vpop.f32.mrb[13].mxu0 }
 0x1ba   : > { %v7614_v9 = vadd.f32 %v5738_v21, %v5737_v38  ;;  %v5740_v56 = vpop.f32.mrb[14].mxu0 }
 0x1bb   : > { %v5741_v8 = vpop.f32.mrb[15].mxu0 }
 0x1bc   : > { %v7616_v30 = vadd.f32 %v5741_v8, %v5740_v56  ;;  %v2449_v33 = vadd.f32 %v7614_v9, %v7654_v22 }
 0x1c4   : > { %v5797_v42 = vpop.f32.mrb[0].mxu1 }
 0x1c5   : > { %v5798_v45 = vpop.f32.mrb[1].mxu1 }
 0x1c6   : > { %v7618_v36 = vadd.f32 %v5798_v45, %v5797_v42  ;;  %v5800_v35 = vpop.f32.mrb[2].mxu1 }
 0x1c7   : > { %v5801_v16 = vpop.f32.mrb[3].mxu1 }
 0x1c8   : > { %v7620_v13 = vadd.f32 %v5801_v16, %v5800_v35 }
 0x1d0   : > { %v5743_v32 = vpop.f32.mrb[16].mxu0 }
 0x1d1   : > { %v5744_v40 = vpop.f32.mrb[17].mxu0 }
 0x1d2   : > { %v7622_v55 = vadd.f32 %v5744_v40, %v5743_v32  ;;  %v5746_v2 = vpop.f32.mrb[18].mxu0  ;;  %v2452_v40 = vadd.f32 %v7616_v30, %v7654_v22 }
 0x1d3   : > { %v5747_v53 = vpop.f32.mrb[19].mxu0 }
 0x1d4   : > { %v7624_v4 = vadd.f32 %v5747_v53, %v5746_v2 }
 0x1dc   : > { %v5803_v20 = vpop.f32.mrb[4].mxu1 }
 0x1dd   : > { %v5804_v39 = vpop.f32.mrb[5].mxu1 }
 0x1de   : > { %v7626_v43 = vadd.f32 %v5804_v39, %v5803_v20  ;;  %v5806_v3 = vpop.f32.mrb[6].mxu1  ;;  %v2457_v20 = vadd.f32 %v7622_v55, %v7654_v22 }
 0x1df   : > { %v5807_v14 = vpop.f32.mrb[7].mxu1 }
 0x1e0   : > { %v7628_v58 = vadd.f32 %v5807_v14, %v5806_v3 }
 0x1e8   : > { %v5749_v51 = vpop.f32.mrb[20].mxu0 }
 0x1e9   : > { %v5750_v25 = vpop.f32.mrb[21].mxu0 }
 0x1ea   : > { %v7630_v27 = vadd.f32 %v5750_v25, %v5749_v51  ;;  %v5752_v41 = vpop.f32.mrb[22].mxu0  ;;  %v2460_v25 = vadd.f32 %v7624_v4, %v7654_v22 }
 0x1eb   : > { %v5753_v10 = vpop.f32.mrb[23].mxu0 }
 0x1ec   : > { %v7632_v49 = vadd.f32 %v5753_v10, %v5752_v41  ;;  %v2465_v47 = vadd.f32 %v7630_v27, %v7654_v22 }
 0x1ee   : > { %v2468_v62 = vadd.f32 %v7632_v49, %v7654_v22 }
 0x1f4   : > { %v5809_v63 = vpop.f32.mrb[8].mxu1 }
 0x1f5   : > { %v5810_v0 = vpop.f32.mrb[9].mxu1 }
 0x1f6   : > { %v7647_v28 = vadd.f32 %v5810_v0, %v5809_v63  ;;  %v5812_v34 = vpop.f32.mrb[10].mxu1 }
 0x1f7   : > { %v5813_v31 = vpop.f32.mrb[11].mxu1 }
 0x1f8   : > { %v7649_v12 = vadd.f32 %v5813_v31, %v5812_v34 }
 0x1fc   : > { %v5843_v11 = vpop.f32.mrb[12].mxu1 }
 0x1fd   : > { %v2594_v15 = vadd.f32 %v5843_v11, %v2433_v29  ;;  %v2585_v57 = vpop.f32.mrb[13].mxu1 }
 0x1fe   : > { %v2586_v6 = vadd.f32 %v2585_v57, %v2425_v61  ;;  %v5844_v44 = vpop.f32.mrb[14].mxu1 }
 0x1ff   : > { %v2714_v26 = vmax.f32 %v2594_v15, 0.0  ;;  %v2597_v52 = vadd.f32 %v5844_v44, %v2436_v37  ;;  %v2588_v7 = vpop.f32.mrb[15].mxu1 }
 0x200   : > { %v2712_v18 = vmax.f32 %v2586_v6, 0.0  ;;  %v2589_v24 = vadd.f32 %v2588_v7, %v2428_v17  ;;  %v5755_v5 = vpop.f32.mrb[24].mxu0 }
 0x201   : > { %v2818_v59 = vsel %vm2744_vm6, %v2714_v26, -inf  ;;  %v2748_v54 = vsel %vm2744_vm6, %v2714_v26, 0.0  ;;  %v5756_v60 = vpop.f32.mrb[25].mxu0  ;;  %v2715_v56 = vmax.f32 %v2597_v52, 0.0 }
 0x202   : > { %v2713_v19 = vmax.f32 %v2589_v24, 0.0  ;;  %3102 = vmax.xlane.f32.xlu1 %v2818_v59  ;;  %3005 = vadd.xlane.f32.xlu0 %v2748_v54  ;;  %v7664_v50 = vadd.f32 %v5756_v60, %v5755_v5  ;;  %v5758_v1 = vpop.f32.mrb[26].mxu0  ;;  %v2745_v21 = vsel %vm2744_vm6, %v2712_v18, 0.0  ;;  %v2816_v9 = vsel %vm2744_vm6, %v2712_v18, -inf }
 0x203   : > { %v5759_v38 = vpop.f32.mrb[27].mxu0  ;;  %v2750_v10 = vsel %vm2744_vm6, %v2715_v56, 0.0  ;;  %v2819_v31 = vsel %vm2744_vm6, %v2715_v56, -inf }
 0x204   : > { %v2746_v8 = vsel %vm2744_vm6, %v2713_v19, 0.0  ;;  %v5847_v42 = vpop.f32.mrb[16].mxu1  ;;  %v7672_v45 = vadd.f32 %v5759_v38, %v5758_v1  ;;  %v2817_v61 = vsel %vm2744_vm6, %v2713_v19, -inf }
 0x205   : > { %v2747_v35 = vadd.f32 %v2746_v8, %v2745_v21  ;;  %v2610_v16 = vadd.f32 %v5847_v42, %v2449_v33  ;;  %v2601_v32 = vpop.f32.mrb[17].mxu1 }
 0x206   : > { %v2602_v2 = vadd.f32 %v2601_v32, %v2441_v23  ;;  %v5848_v53 = vpop.f32.mrb[18].mxu1  ;;  %3098 = vmax.xlane.f32.xlu1 %v2816_v9  ;;  %3001 = vadd.xlane.f32.xlu0 %v2745_v21 }
 0x207   : > { %v2749_v39 = vadd.f32 %v2748_v54, %v2747_v35  ;;  %v2718_v3 = vmax.f32 %v2610_v16, 0.0  ;;  %v2613_v14 = vadd.f32 %v5848_v53, %v2452_v40  ;;  %v2604_v51 = vpop.f32.mrb[19].mxu1  ;;  %v2473_v40 = vadd.f32 %v7664_v50, %v7654_v22 }
 0x208   : > { %v2716_v30 = vmax.f32 %v2602_v2, 0.0  ;;  %v2605_v41 = vadd.f32 %v2604_v51, %v2444_v48  ;;  %v2476_v50 = vadd.f32 %v7672_v45, %v7654_v22 }
 0x209   : > { %v2719_v63 = vmax.f32 %v2613_v14, 0.0  ;;  %v2751_v0 = vadd.f32 %v2750_v10, %v2749_v39  ;;  %v2824_v55 = vsel %vm2744_vm6, %v2718_v3, -inf  ;;  %v2756_v11 = vsel %vm2744_vm6, %v2718_v3, 0.0 }
 0x20a   : > { %v2717_v34 = vmax.f32 %v2605_v41, 0.0  ;;  %3003 = vadd.xlane.f32.xlu1 %v2746_v8  ;;  %3007 = vadd.xlane.f32.xlu0 %v2750_v10  ;;  %v2825_v4 = vmax.f32 %v2818_v59, %v2824_v55  ;;  %v2752_v29 = vsel %vm2744_vm6, %v2716_v30, 0.0  ;;  %v7704_v18 = vsel %vm2744_vm6, %v2716_v30, -inf }
 0x20b   : > { %v2753_v27 = vadd.f32 %v2752_v29, %v2751_v0  ;;  %v7694_v15 = vsel %vm2744_vm6, %v2719_v63, -inf  ;;  %v2758_v21 = vsel %vm2744_vm6, %v2719_v63, 0.0 }
 0x20c   : > { %v5851_v57 = vpop.f32.mrb[20].mxu1  ;;  %v5761_v49 = vpop.f32.mrb[28].mxu0  ;;  %v2821_v37 = vmax.f32 %v2816_v9, %v2825_v4  ;;  %v2827_v6 = vmax.f32 %v2819_v31, %v7694_v15  ;;  %v7698_v44 = vsel %vm2744_vm6, %v2717_v34, 0.0  ;;  %v7701_v17 = vsel %vm2744_vm6, %v2717_v34, -inf }
 0x20d   : > { %v2626_v26 = vadd.f32 %v5851_v57, %v2465_v47  ;;  %v2617_v52 = vpop.f32.mrb[21].mxu1  ;;  %v5762_v7 = vpop.f32.mrb[29].mxu0  ;;  %v2755_v24 = vadd.f32 %v7698_v44, %v2753_v27  ;;  %v2823_v5 = vmax.f32 %v2817_v61, %v7701_v17 }
 0x20e   : > { %v2618_v59 = vadd.f32 %v2617_v52, %v2457_v20  ;;  %v5852_v54 = vpop.f32.mrb[22].mxu1  ;;  %3013 = vadd.xlane.f32.xlu1 %v2756_v11  ;;  %3104 = vmax.xlane.f32.xlu0 %v2819_v31  ;;  %v5763_v60 = vadd.f32 %v5762_v7, %v5761_v49  ;;  %v5764_v19 = vpop.f32.mrb[30].mxu0  ;;  %v2829_v1 = vmax.f32 %v2821_v37, %v7704_v18 }
 0x20f   : > { %v2629_v33 = vadd.f32 %v5852_v54, %v2468_v62  ;;  %v2620_v23 = vpop.f32.mrb[23].mxu1  ;;  %v5765_v38 = vpop.f32.mrb[31].mxu0  ;;  %v2757_v56 = vadd.f32 %v2756_v11, %v2755_v24  ;;  %v2722_v8 = vmax.f32 %v2626_v26, 0.0 }
 0x210   : > { %v2720_v42 = vmax.f32 %v2618_v59, 0.0  ;;  %v2621_v35 = vadd.f32 %v2620_v23, %v2460_v25  ;;  %v5766_v16 = vadd.f32 %v5765_v38, %v5764_v19  ;;  %v2481_v32 = vadd.f32 %v5763_v60, %v7654_v22 }
 0x211   : > { %v2833_v9 = vmax.f32 %v2827_v6, %v2829_v1  ;;  %v2759_v2 = vadd.f32 %v2758_v21, %v2757_v56  ;;  %v2723_v53 = vmax.f32 %v2629_v33, 0.0  ;;  %v7725_v41 = vsel %vm2744_vm6, %v2722_v8, -inf }
 0x212   : > { %v2721_v48 = vmax.f32 %v2621_v35, 0.0  ;;  %3110 = vmax.xlane.f32.xlu1 %v2824_v55  ;;  %3100 = vmax.xlane.f32.xlu0 %v2817_v61  ;;  %v2760_v20 = vsel %vm2744_vm6, %v2720_v42, 0.0  ;;  %v7715_v39 = vsel %vm2744_vm6, %v2720_v42, -inf  ;;  %v2484_v3 = vadd.f32 %v5766_v16, %v7654_v22 }
 0x213   : > { %v2835_v14 = vmax.f32 %v7715_v39, %v2833_v9  ;;  %v2761_v51 = vadd.f32 %v2760_v20, %v2759_v2  ;;  %v7736_v31 = vsel %vm2744_vm6, %v2722_v8, 0.0  ;;  %v7739_v4 = vsel %vm2744_vm6, %v2723_v53, -inf }
 0x214   : > { %v5855_v25 = vpop.f32.mrb[24].mxu1  ;;  %v7722_v30 = vsel %vm2744_vm6, %v2721_v48, 0.0  ;;  %v7728_v10 = vsel %vm2744_vm6, %v2721_v48, -inf  ;;  %v7744_v52 = vsel %vm2744_vm6, %v2723_v53, 0.0 }
 0x215   : > { %v2642_v47 = vadd.f32 %v5855_v25, %v2481_v32  ;;  %v2633_v63 = vpop.f32.mrb[25].mxu1  ;;  %v2763_v0 = vadd.f32 %v7722_v30, %v2761_v51  ;;  %v2837_v62 = vmax.f32 %v7725_v41, %v2835_v14  ;;  %v7733_v55 = vmax.f32 %v2823_v5, %v7728_v10 }
 0x216   : > { %v2634_v34 = vadd.f32 %v2633_v63, %v2473_v40  ;;  %v5856_v45 = vpop.f32.mrb[26].mxu1  ;;  %3009 = vadd.xlane.f32.xlu1 %v2752_v29  ;;  %3015 = vadd.xlane.f32.xlu0 %v2758_v21 }
 0x217   : > { %v2726_v11 = vmax.f32 %v2642_v47, 0.0  ;;  %v2645_v61 = vadd.f32 %v5856_v45, %v2484_v3  ;;  %v2636_v27 = vpop.f32.mrb[27].mxu1  ;;  %v2765_v57 = vadd.f32 %v7736_v31, %v2763_v0  ;;  %v2841_v49 = vmax.f32 %v7739_v4, %v2837_v62 }
 0x218   : > { %v2724_v37 = vmax.f32 %v2634_v34, 0.0  ;;  %v2637_v6 = vadd.f32 %v2636_v27, %v2476_v50  ;;  %v5767_v26 = vpop.f32.mrb[32].mxu0 }
 0x219   : > { %v2727_v29 = vmax.f32 %v2645_v61, 0.0  ;;  %v5768_v7 = vpop.f32.mrb[33].mxu0  ;;  %v2767_v24 = vadd.f32 %v7744_v52, %v2765_v57  ;;  %v7748_v5 = vsel %vm2744_vm6, %v2726_v11, -inf  ;;  %v7761_v21 = vsel %vm2744_vm6, %v2726_v11, 0.0 }
 0x21a   : > { %v2725_v59 = vmax.f32 %v2637_v6, 0.0  ;;  %v5769_v54 = vadd.f32 %v5768_v7, %v5767_v26  ;;  %3106 = vmax.xlane.f32.xlu1 %v7704_v18  ;;  %3112 = vmax.xlane.f32.xlu0 %v7694_v15  ;;  %v5770_v60 = vpop.f32.mrb[34].mxu0  ;;  %v7753_v19 = vsel %vm2744_vm6, %v2724_v37, 0.0  ;;  %v7756_v1 = vsel %vm2744_vm6, %v2724_v37, -inf }
 0x21b   : > { %v5771_v33 = vpop.f32.mrb[35].mxu0  ;;  %v2769_v23 = vadd.f32 %v7753_v19, %v2767_v24  ;;  %v2843_v38 = vmax.f32 %v7756_v1, %v2841_v49  ;;  %v7764_v56 = vsel %vm2744_vm6, %v2727_v29, -inf  ;;  %v7780_v3 = vsel %vm2744_vm6, %v2727_v29, 0.0 }
 0x21c   : > { %v5772_v18 = vadd.f32 %v5771_v33, %v5770_v60  ;;  %v5859_v15 = vpop.f32.mrb[28].mxu1  ;;  %v2489_v8 = vadd.f32 %v5769_v54, %v7654_v22  ;;  %v7768_v42 = vsel %vm2744_vm6, %v2725_v59, 0.0  ;;  %v7771_v35 = vsel %vm2744_vm6, %v2725_v59, -inf }
 0x21d   : > { %v2649_v16 = vpop.f32.mrb[29].mxu1  ;;  %v2771_v32 = vadd.f32 %v7768_v42, %v2769_v23  ;;  %v2839_v40 = vmax.f32 %v7733_v55, %v7771_v35  ;;  %v2845_v9 = vmax.f32 %v7748_v5, %v2843_v38 }
 0x21e   : > { %v2650_v2 = vadd.f32 %v2649_v16, %v2489_v8  ;;  %v5860_v53 = vpop.f32.mrb[30].mxu1  ;;  %3017 = vadd.xlane.f32.xlu1 %v2760_v20  ;;  %3011 = vadd.xlane.f32.xlu0 %v7698_v44  ;;  %v2492_v48 = vadd.f32 %v5772_v18, %v7654_v22  ;;  %v2532_v8 = vadd.f32 %v7620_v13, %v7654_v22 }
 0x21f   : > { %v2652_v14 = vpop.f32.mrb[31].mxu1  ;;  %v2773_v51 = vadd.f32 %v7761_v21, %v2771_v32  ;;  %v2849_v25 = vmax.f32 %v7764_v56, %v2845_v9 }
 0x220   : > { %v2728_v50 = vmax.f32 %v2650_v2, 0.0  ;;  %v2653_v47 = vadd.f32 %v2652_v14, %v2492_v48 }
 0x221   : > { %v2775_v63 = vadd.f32 %v7780_v3, %v2773_v51 }
 0x222   : > { %v2729_v0 = vmax.f32 %v2653_v47, 0.0  ;;  %3114 = vmax.xlane.f32.xlu1 %v7715_v39  ;;  %3108 = vmax.xlane.f32.xlu0 %v7701_v17  ;;  %v7788_v44 = vsel %vm2744_vm6, %v2728_v50, 0.0  ;;  %v7791_v20 = vsel %vm2744_vm6, %v2728_v50, -inf  ;;  %v2545_v50 = vadd.f32 %v7647_v28, %v7654_v22 }
 0x223   : > { %v2777_v62 = vadd.f32 %v7788_v44, %v2775_v63  ;;  %v2851_v55 = vmax.f32 %v7791_v20, %v2849_v25 }
 0x224   : > { %v5773_v34 = vpop.f32.mrb[36].mxu0  ;;  %v7795_v45 = vpop.f32.mrb[32].mxu1  ;;  %v7798_v11 = vsel %vm2744_vm6, %v2729_v0, 0.0  ;;  %v7801_v39 = vsel %vm2744_vm6, %v2729_v0, -inf }
 0x225   : > { %v5774_v17 = vpop.f32.mrb[37].mxu0  ;;  %v7803_v61 = vpop.f32.mrb[33].mxu1  ;;  %v2779_v27 = vadd.f32 %v7798_v11, %v2777_v62  ;;  %v2847_v57 = vmax.f32 %v2839_v40, %v7801_v39 }
 0x226   : > { %v5775_v49 = vadd.f32 %v5774_v17, %v5773_v34  ;;  %3021 = vadd.xlane.f32.xlu1 %v7736_v31  ;;  %3019 = vadd.xlane.f32.xlu0 %v7722_v30  ;;  %v5776_v37 = vpop.f32.mrb[38].mxu0  ;;  %v7809_v6 = vpop.f32.mrb[34].mxu1  ;;  %v2529_v31 = vadd.f32 %v7618_v36, %v7654_v22  ;;  %v2548_v17 = vadd.f32 %v7649_v12, %v7654_v22 }
 0x227   : > { %v5777_v26 = vpop.f32.mrb[39].mxu0  ;;  %v2668_v29 = vpop.f32.mrb[35].mxu1  ;;  %v2859_v7 = vmax.f32 %v2851_v55, %v2847_v57 }
 0x228   : > { %v2497_v24 = vadd.f32 %v5775_v49, %v7654_v22  ;;  %v5778_v59 = vadd.f32 %v5777_v26, %v5776_v37 }
 0x22a   : > { %v2500_v54 = vadd.f32 %v5778_v59, %v7654_v22  ;;  %3118 = vmax.xlane.f32.xlu1 %v7725_v41  ;;  %3116 = vmax.xlane.f32.xlu0 %v7728_v10  ;;  %v2658_v60 = vadd.f32 %v5859_v15, %v2497_v24 }
 0x22c   : > { %v5867_v30 = vpop.f32.mrb[36].mxu1  ;;  %v2730_v33 = vmax.f32 %v2658_v60, 0.0  ;;  %v2661_v23 = vadd.f32 %v5860_v53, %v2500_v54 }
 0x22d   : > { %v7817_v38 = vadd.f32 %v5867_v30, %v2529_v31  ;;  %v7819_v18 = vpop.f32.mrb[37].mxu1 }
 0x22e   : > { %v5868_v16 = vpop.f32.mrb[38].mxu1  ;;  %3023 = vadd.xlane.f32.xlu0 %v7744_v52  ;;  %3025 = vadd.xlane.f32.xlu1 %v7753_v19  ;;  %v7826_v41 = vsel %vm2744_vm6, %v2730_v33, 0.0  ;;  %v2731_v10 = vmax.f32 %v2661_v23, 0.0  ;;  %v7855_v63 = vsel %vm2744_vm6, %v2730_v33, -inf }
 0x22f   : > { %v2738_v36 = vmax.f32 %v7817_v38, 0.0  ;;  %v7829_v15 = vadd.f32 %v5868_v16, %v2532_v8  ;;  %v7831_v32 = vpop.f32.mrb[39].mxu1  ;;  %v2781_v40 = vadd.f32 %v7826_v41, %v2779_v27  ;;  %v2540_v27 = vadd.f32 %v7628_v58, %v7654_v22 }
 0x230   : > { %v5779_v9 = vpop.f32.mrb[40].mxu0  ;;  %v7835_v13 = vsel %vm2744_vm6, %v2731_v10, 0.0  ;;  %v7868_v57 = vsel %vm2744_vm6, %v2731_v10, -inf }
 0x231   : > { %v2739_v52 = vmax.f32 %v7829_v15, 0.0  ;;  %v5780_v2 = vpop.f32.mrb[41].mxu0  ;;  %v7841_v19 = vsel %vm2744_vm6, %v2738_v36, -inf  ;;  %v2783_v53 = vadd.f32 %v7835_v13, %v2781_v40 }
 0x232   : > { %v5781_v48 = vadd.f32 %v5780_v2, %v5779_v9  ;;  %3120 = vmax.xlane.f32.xlu0 %v7739_v4  ;;  %3122 = vmax.xlane.f32.xlu1 %v7756_v1  ;;  %v5782_v14 = vpop.f32.mrb[42].mxu0  ;;  %v2867_v51 = vmax.f32 %v2859_v7, %v7841_v19  ;;  %v2537_v1 = vadd.f32 %v7626_v43, %v7654_v22  ;;  %v2796_v9 = vsel %vm2744_vm6, %v2738_v36, 0.0 }
 0x233   : > { %v5783_v25 = vpop.f32.mrb[43].mxu0  ;;  %v7852_v47 = vsel %vm2744_vm6, %v2739_v52, -inf }
 0x234   : > { %v2505_v0 = vadd.f32 %v5781_v48, %v7654_v22  ;;  %v5784_v4 = vadd.f32 %v5783_v25, %v5782_v14  ;;  %v5871_v62 = vpop.f32.mrb[40].mxu1  ;;  %v2875_v55 = vmax.f32 %v2867_v51, %v7852_v47 }
 0x235   : > { %v7861_v34 = vadd.f32 %v5871_v62, %v2545_v50  ;;  %v2697_v28 = vpop.f32.mrb[41].mxu1 }
 0x236   : > { %v2508_v49 = vadd.f32 %v5784_v4, %v7654_v22  ;;  %v7871_v37 = vadd.f32 %v2697_v28, %v2537_v1  ;;  %v5872_v26 = vpop.f32.mrb[42].mxu1  ;;  %3027 = vadd.xlane.f32.xlu0 %v7768_v42  ;;  %3029 = vadd.xlane.f32.xlu1 %v7761_v21  ;;  %v2853_v43 = vmax.f32 %v7855_v63, %v2875_v55 }
 0x237   : > { %v7876_v7 = vadd.f32 %v5872_v26, %v2548_v17  ;;  %v2700_v12 = vpop.f32.mrb[43].mxu1  ;;  %v7879_v24 = vadd.f32 %v7803_v61, %v2505_v0  ;;  %v2742_v2 = vmax.f32 %v7861_v34, 0.0  ;;  %v2798_v17 = vsel %vm2744_vm6, %v2739_v52, 0.0 }
 0x238   : > { %v7881_v58 = vadd.f32 %v2700_v12, %v2540_v27  ;;  %v2861_v59 = vmax.f32 %v2853_v43, %v7868_v57  ;;  %v7884_v54 = vadd.f32 %v2668_v29, %v2508_v49  ;;  %v2740_v51 = vmax.f32 %v7871_v37, 0.0 }
 0x239   : > { %v2732_v60 = vmax.f32 %v7879_v24, 0.0  ;;  %v2872_v0 = vsel %vm2744_vm6, %v2742_v2, -inf }
 0x23a   : > { %3124 = vmax.xlane.f32.xlu0 %v7771_v35  ;;  %3126 = vmax.xlane.f32.xlu1 %v7748_v5  ;;  %v2733_v21 = vmax.f32 %v7884_v54, 0.0  ;;  %v2741_v1 = vmax.f32 %v7881_v58, 0.0  ;;  %v2868_v49 = vsel %vm2744_vm6, %v2740_v51, -inf }
 0x23b   : > { %v7893_v42 = vsel %vm2744_vm6, %v2732_v60, 0.0 }
 0x23c   : > { %v5785_v61 = vpop.f32.mrb[44].mxu0  ;;  %v2785_v31 = vadd.f32 %v7893_v42, %v2783_v53  ;;  %v7899_v29 = vsel %vm2744_vm6, %v2733_v21, 0.0 }
 0x23d   : > { %v5786_v30 = vpop.f32.mrb[45].mxu0 }
 0x23e   : > { %v5787_v33 = vadd.f32 %v5786_v30, %v5785_v61  ;;  %3031 = vadd.xlane.f32.xlu0 %v7780_v3  ;;  %3033 = vadd.xlane.f32.xlu1 %v7788_v44  ;;  %v5788_v5 = vpop.f32.mrb[46].mxu0  ;;  %v2787_v35 = vadd.f32 %v7899_v29, %v2785_v31 }
 0x23f   : > { %v5789_v23 = vpop.f32.mrb[47].mxu0 }
 0x240   : > { %v2513_v8 = vadd.f32 %v5787_v33, %v7654_v22  ;;  %v5790_v16 = vadd.f32 %v5789_v23, %v5788_v5  ;;  %v2800_v5 = vsel %vm2744_vm6, %v2740_v51, 0.0 }
 0x242   : > { %v2516_v10 = vadd.f32 %v5790_v16, %v7654_v22  ;;  %3128 = vmax.xlane.f32.xlu0 %v7764_v56  ;;  %3130 = vmax.xlane.f32.xlu1 %v7791_v20  ;;  %v7909_v40 = vadd.f32 %v7795_v45, %v2513_v8  ;;  %v2743_v45 = vmax.f32 %v7876_v7, 0.0  ;;  %v2870_v7 = vsel %vm2744_vm6, %v2741_v1, -inf }
 0x243   : > { %v2802_v8 = vsel %vm2744_vm6, %v2741_v1, 0.0 }
 0x244   : > { %v2677_v3 = vadd.f32 %v7809_v6, %v2516_v10  ;;  %v2734_v44 = vmax.f32 %v7909_v40, 0.0  ;;  %v2874_v28 = vsel %vm2744_vm6, %v2743_v45, -inf  ;;  %v2806_v54 = vsel %vm2744_vm6, %v2743_v45, 0.0 }
 0x246   : > { %v2735_v53 = vmax.f32 %v2677_v3, 0.0  ;;  %3035 = vadd.xlane.f32.xlu0 %v7798_v11  ;;  %3053 = vadd.xlane.f32.xlu1 %v2796_v9  ;;  %v7919_v56 = vsel %vm2744_vm6, %v2734_v44, 0.0 }
 0x247   : > { %v2789_v20 = vadd.f32 %v7919_v56, %v2787_v35  ;;  %v2856_v35 = vsel %vm2744_vm6, %v2734_v44, -inf }
 0x248   : > { %v5791_v6 = vpop.f32.mrb[48].mxu0  ;;  %v7924_v48 = vsel %vm2744_vm6, %v2735_v53, -inf  ;;  %v7927_v38 = vsel %vm2744_vm6, %v2735_v53, 0.0 }
 0x249   : > { %v5792_v36 = vpop.f32.mrb[49].mxu0  ;;  %v2869_v14 = vmax.f32 %v2861_v59, %v7924_v48  ;;  %v2791_v11 = vadd.f32 %v7927_v38, %v2789_v20  ;;  %v2804_v59 = vsel %vm2744_vm6, %v2742_v2, 0.0 }
 0x24a   : > { %v5793_v25 = vadd.f32 %v5792_v36, %v5791_v6  ;;  %3132 = vmax.xlane.f32.xlu0 %v7801_v39  ;;  %3150 = vmax.xlane.f32.xlu1 %v7841_v19  ;;  %v5794_v50 = vpop.f32.mrb[50].mxu0 }
 0x24b   : > { %v5795_v4 = vpop.f32.mrb[51].mxu0  ;;  %v2855_v62 = vmax.f32 %v2872_v0, %v2869_v14 }
 0x24c   : > { %v2521_v55 = vadd.f32 %v5793_v25, %v7654_v22  ;;  %v5796_v34 = vadd.f32 %v5795_v4, %v5794_v50 }
 0x24d   : > { %v2863_v27 = vmax.f32 %v2855_v62, %v2874_v28 }
 0x24e   : > { %v2682_v39 = vadd.f32 %v7819_v18, %v2521_v55  ;;  %v2524_v19 = vadd.f32 %v5796_v34, %v7654_v22  ;;  %3055 = vadd.xlane.f32.xlu0 %v2798_v17  ;;  %3037 = vadd.xlane.f32.xlu1 %v7826_v41  ;;  %v2852_v22 = vsel %vm2744_vm6, %v2732_v60, -inf }
 0x24f   : > { %v2871_v37 = vmax.f32 %v2863_v27, %v2868_v49 }
 0x250   : > { %v2736_v26 = vmax.f32 %v2682_v39, 0.0  ;;  %v2685_v43 = vadd.f32 %v7831_v32, %v2524_v19  ;;  %v3200_v39 = vlaneseq }
 0x251   : > { %v2876_v12 = vmax.f32 %v2870_v7, %v2871_v37 }
 0x252   : > { %v2792_v15 = vsel %vm2744_vm6, %v2736_v26, 0.0  ;;  %v2737_v52 = vmax.f32 %v2685_v43, 0.0  ;;  %3152 = vmax.xlane.f32.xlu0 %v7852_v47  ;;  %3134 = vmax.xlane.f32.xlu1 %v7855_v63  ;;  %v2860_v32 = vsel %vm2744_vm6, %v2736_v26, -inf  ;;  %v2854_v47 = vsel %vm2744_vm6, %v2733_v21, -inf }
 0x253   : > { %v2857_v18 = vmax.f32 %v2852_v22, %v2876_v12  ;;  %v2793_v41 = vadd.f32 %v2792_v15, %v2791_v11  ;;  %v3201_v37 = vand.u32 127, %v3200_v39  ;;  %v7987_v12 = vshrl.u32 %v3200_v39, 7 }
 0x254   : > { %v2794_v58 = vsel %vm2744_vm6, %v2737_v52, 0.0  ;;  %v2862_v60 = vsel %vm2744_vm6, %v2737_v52, -inf }
 0x255   : > { %v2865_v61 = vmax.f32 %v2857_v18, %v2860_v32  ;;  %v2795_v31 = vadd.f32 %v2794_v58, %v2793_v41 }
 0x256   : > { %3039 = vadd.xlane.f32.xlu0 %v7835_v13  ;;  %3061 = vadd.xlane.f32.xlu1 %v2804_v59 }
 0x257   : > { %v2797_v63 = vadd.f32 %v2796_v9, %v2795_v31  ;;  %v2873_v24 = vmax.f32 %v2865_v61, %v2854_v47 }
 0x259   : > { %v2799_v30 = vadd.f32 %v2798_v17, %v2797_v63  ;;  %v2877_v33 = vmax.f32 %v2873_v24, %v2862_v60 }
 0x25a   : > { %3136 = vmax.xlane.f32.xlu0 %v7868_v57  ;;  %3158 = vmax.xlane.f32.xlu1 %v2872_v0 }
 0x25b   : > { %v2801_v23 = vadd.f32 %v2800_v5, %v2799_v30  ;;  %v2878_v13 = vmax.f32 %v2856_v35, %v2877_v33 }
 0x25d   : > { %v2803_v21 = vadd.f32 %v2802_v8, %v2801_v23  ;;  %v2879_v16 = vrot.slane %v2878_v13, 4 }
 0x25e   : > { %3063 = vadd.xlane.f32.xlu0 %v2806_v54  ;;  %3057 = vadd.xlane.f32.xlu1 %v2800_v5 }
 0x25f   : > { %v2805_v10 = vadd.f32 %v2804_v59, %v2803_v21  ;;  %v2880_v40 = vmax.f32 %v2878_v13, %v2879_v16 }
 0x261   : > { %v2807_v3 = vadd.f32 %v2806_v54, %v2805_v10  ;;  %v2881_v9 = vrot.slane %v2880_v40, 2 }
 0x262   : > { %3160 = vmax.xlane.f32.xlu0 %v2874_v28  ;;  %3154 = vmax.xlane.f32.xlu1 %v2868_v49 }
 0x263   : > { %v2808_v57 = vrot.slane %v2807_v3, 4  ;;  %v2882_v53 = vmax.f32 %v2880_v40, %v2881_v9 }
 0x265   : > { %v2809_v2 = vadd.f32 %v2808_v57, %v2807_v3  ;;  %v2883_v45 = vrot.slane %v2882_v53, 1 }
 0x266   : > { %3059 = vadd.xlane.f32.xlu0 %v2802_v8  ;;  %3041 = vadd.xlane.f32.xlu1 %v7893_v42 }
 0x267   : > { %v2810_v44 = vrot.slane %v2809_v2, 2  ;;  %v2884_v14 = vmax.f32 %v2882_v53, %v2883_v45 }
 0x269   : > { %v2811_v20 = vadd.f32 %v2810_v44, %v2809_v2 }
 0x26a   : > { %3156 = vmax.xlane.f32.xlu0 %v2870_v7  ;;  %3138 = vmax.xlane.f32.xlu1 %v2852_v22  ;;  %v3207_v7 = vadd.s32 4294967285, %v3201_v37  ;;  %v3202_v22 = vadd.s32 4294967293, %v3201_v37 }
 0x26b   : > { %v2812_v6 = vrot.slane %v2811_v20, 1 }
 0x26c   : > { %v7994_v18 = vsub.s32 %v3207_v7, %v7987_v12 }
 0x26d   : > { %v2813_v36 = vadd.f32 %v2812_v6, %v2811_v20 }
 0x26e   : > { %3043 = vadd.xlane.f32.xlu0 %v7899_v29  ;;  %3045 = vadd.xlane.f32.xlu1 %v7919_v56 }
 0x26f   : > { %v2815_v11 = vmul.f32 0.00390625, %v2813_v36 }
 0x271   : > { %v2886_v51 = vsel %vm2885_vm7, %v2815_v11, %v2884_v14 }
 0x272   : > { %3140 = vmax.xlane.f32.xlu0 %v2854_v47  ;;  %3142 = vmax.xlane.f32.xlu1 %v2856_v35  ;;  %v2887_v42 = vpack.c.bf16 %v2886_v51, %v2886_v51  ;;  %v7997_v47 = vsub.s32 %v3202_v22, %v7987_v12 }
 0x274   : > { %5876 = vmatmul.mubr.msk.bf16.vlgmr.msra.gmra.mrb[44].mxu1 %vm2744_vm6, %v2887_v42 }
 0x275   : > { %5881 = vmatprep.mubr.msk.bf16.mxu1 %vm6255_vm5, %v6254_v46 }
 0x276   : > { %3047 = vadd.xlane.f32.xlu0 %v7927_v38  ;;  %3049 = vadd.xlane.f32.xlu1 %v2792_v15 }
 0x27a   : > { %3144 = vmax.xlane.f32.xlu0 %v7924_v48  ;;  %3146 = vmax.xlane.f32.xlu1 %v2860_v32 }
 0x27e   : > { %3051 = vadd.xlane.f32.xlu0 %v2794_v58 }
 0x282   : > { %3148 = vmax.xlane.f32.xlu0 %v2862_v60 }
 0x28f   : > { %v7975_v29 = vpop.xlane.xlu1 %3102  ;;  %v3006_v56 = vpop.xlane.xlu0 %3005 }
 0x290   : > { %v3068_v32 = vmul.f32 0.0625, %v3006_v56  ;;  %v3419_v16 = vrot.slane %v7975_v29, %v7997_v47 }
 0x292   : > { %v3217_v60 = vrot.slane %v3068_v32, %v7997_v47 }
 0x293   : > { %v3099_v25 = vpop.xlane.xlu1 %3098  ;;  %v3002_v50 = vpop.xlane.xlu0 %3001 }
 0x294   : > { %v3066_v59 = vmul.f32 0.0625, %v3002_v50  ;;  %v3410_v10 = vrot.slane %v3099_v25, %v7997_v47 }
 0x296   : > { %v3206_v30 = vrot.slane %v3066_v59, %v7997_v47 }
 0x297   : > { %v3004_v0 = vpop.xlane.xlu1 %3003  ;;  %v3008_v4 = vpop.xlane.xlu0 %3007 }
 0x298   : > { %v3067_v41 = vmul.f32 0.0625, %v3004_v0  ;;  %v3069_v58 = vmul.f32 0.0625, %v3008_v4 }
 0x29a   : > { %v3211_v63 = vrot.slane %v3067_v41, %v7994_v18  ;;  %v3221_v24 = vrot.slane %v3069_v58, %v7994_v18 }
 0x29b   : > { %v3014_v62 = vpop.xlane.xlu1 %3013  ;;  %v7977_v1 = vpop.xlane.xlu0 %3104 }
 0x29c   : > { %v3213_v8 = vsel %vm3212_vm8, %v3211_v63, %v3206_v30  ;;  %v3222_v54 = vsel %vm3212_vm8, %v3221_v24, %v3217_v60  ;;  %v3072_v40 = vmul.f32 0.0625, %v3014_v62  ;;  %v3423_v3 = vrot.slane %v7977_v1, %v7994_v18 }
 0x29d   : > { %v3350_v44 = vsel %vm3349_vm9, %v3222_v54, %v3213_v8  ;;  %v6256_v63 = vmov 0  }
 0x29e   : > { %v3235_v29 = vrot.slane %v3072_v40, %v7997_v47  ;;  %v3424_v0 = vsel %vm3212_vm8, %v3423_v3, %v3419_v16  ;;  %v2947_v24 = vsel %vm2885_vm7, 65535, %v6256_v63 }
 0x29f   : > { %v7979_v55 = vpop.xlane.xlu1 %3110  ;;  %v3101_v46 = vpop.xlane.xlu0 %3100 }
 0x2a0   : > { %v3414_v5 = vrot.slane %v3101_v46, %v7994_v18  ;;  %v3437_v56 = vrot.slane %v7979_v55, %v7997_v47 }
 0x2a2   : > { %v3415_v53 = vsel %vm3212_vm8, %v3414_v5, %v3410_v10 }
 0x2a3   : > { %v3010_v38 = vpop.xlane.xlu1 %3009  ;;  %v3016_v34 = vpop.xlane.xlu0 %3015  ;;  %v3551_v46 = vsel %vm3349_vm9, %v3424_v0, %v3415_v53 }
 0x2a4   : > { %v3073_v35 = vmul.f32 0.0625, %v3016_v34  ;;  %v3070_v21 = vmul.f32 0.0625, %v3010_v38 }
 0x2a6   : > { %v3239_v20 = vrot.slane %v3073_v35, %v7994_v18  ;;  %v3226_v14 = vrot.slane %v3070_v21, %v7997_v47 }
 0x2a7   : > { %v7981_v28 = vpop.xlane.xlu1 %3106  ;;  %v7983_v48 = vpop.xlane.xlu0 %3112 }
 0x2a8   : > { %v3441_v45 = vrot.slane %v7983_v48, %v7994_v18  ;;  %v3428_v11 = vrot.slane %v7981_v28, %v7997_v47  ;;  %v3240_v38 = vsel %vm3212_vm8, %v3239_v20, %v3235_v29 }
 0x2aa   : > { %v3442_v34 = vsel %vm3212_vm8, %v3441_v45, %v3437_v56 }
 0x2ab   : > { %v3018_v17 = vpop.xlane.xlu1 %3017  ;;  %v3012_v27 = vpop.xlane.xlu0 %3011 }
 0x2ac   : > { %v3071_v33 = vmul.f32 0.0625, %v3012_v27  ;;  %v3074_v51 = vmul.f32 0.0625, %v3018_v17 }
 0x2ae   : > { %v3230_v57 = vrot.slane %v3071_v33, %v7994_v18  ;;  %v3244_v17 = vrot.slane %v3074_v51, %v7997_v47 }
 0x2af   : > { %v7985_v19 = vpop.xlane.xlu1 %3114  ;;  %v3109_v49 = vpop.xlane.xlu0 %3108 }
 0x2b0   : > { %v3432_v9 = vrot.slane %v3109_v49, %v7994_v18  ;;  %v3231_v4 = vsel %vm3212_vm8, %v3230_v57, %v3226_v14  ;;  %v3446_v27 = vrot.slane %v7985_v19, %v7997_v47  ;;  %v2941_v19 = vld [vmem:[%s9869_s5] sm:$0x1]  ;;  %s8210_s5 = sld [smem:[#allocation3 + $0x27]] }
 0x2b1   : > { %v3352_v37 = vsel %vm3351_vm10, %v3231_v4, %v3350_v44  ;;  %v2949_v5 = vand.u32 %v2947_v24, %v2941_v19  ;;  %v3839_v19 = vstv %s8136_s19  ;;  %s8488_s19 = sld [smem:[#allocation3 + $0xe]] }
 0x2b2   : > { %v3433_v62 = vsel %vm3212_vm8, %v3432_v9, %v3428_v11  ;;  %v3354_v35 = vsel %vm3353_vm11, %v3240_v38, %v3352_v37  ;;  %v3757_v38 = vstv %s8093_s15  ;;  %s8406_s15 = sld [smem:[#allocation3 + $0x3d]] }
 0x2b3   : > { %v3022_v26 = vpop.xlane.xlu1 %3021  ;;  %v3020_v43 = vpop.xlane.xlu0 %3019  ;;  %5880 = vmatpush3.bf16.msra.mxu1 %v2949_v5 }
 0x2b4   : > { %v3075_v2 = vmul.f32 0.0625, %v3020_v43  ;;  %v3076_v25 = vmul.f32 0.0625, %v3022_v26  ;;  %v3552_v26 = vsel %vm3351_vm10, %v3433_v62, %v3551_v46 }
 0x2b6   : > { %v3248_v1 = vrot.slane %v3075_v2, %v7994_v18  ;;  %v3253_v43 = vrot.slane %v3076_v25, %v7997_v47  ;;  %v3731_v25 = vstv %s8080_s13  ;;  %9874 = sst [smem:[#allocation37_spill]] %s8210_s5 }
 0x2b7   : > { %v7989_v15 = vpop.xlane.xlu1 %3118  ;;  %v7991_v52 = vpop.xlane.xlu0 %3116  ;;  %s8393_s13 = sld [smem:[#allocation3 + $0x6]] }
 0x2b8   : > { %v3450_v39 = vrot.slane %v7991_v52, %v7994_v18  ;;  %v3249_v22 = vsel %vm3212_vm8, %v3248_v1, %v3244_v17  ;;  %v3455_v52 = vrot.slane %v7989_v15, %v7997_v47  ;;  %v3553_v15 = vsel %vm3353_vm11, %v3442_v34, %v3552_v26  ;;  %9888 = sst [smem:[#allocation45_spill]] %s8406_s15 }
 0x2b9   : > { %v3356_v54 = vsel %vm3355_vm12, %v3249_v22, %v3354_v35 }
 0x2ba   : > { %v3451_v60 = vsel %vm3212_vm8, %v3450_v39, %v3446_v27  ;;  %v3783_v39 = vstv %s8103_s17  ;;  %s8414_s17 = sld [smem:[#allocation3 + $0x49]] }
 0x2bb   : > { %v3026_v61 = vpop.xlane.xlu1 %3025  ;;  %v3024_v31 = vpop.xlane.xlu0 %3023  ;;  %v3554_v40 = vsel %vm3355_vm12, %v3451_v60, %v3553_v15  ;;  %v3917_v15 = vstv %s8170_s9  ;;  %s8588_s9 = sld [smem:[#allocation3 + $0x14]] }
 0x2bc   : > { %v3077_v42 = vmul.f32 0.0625, %v3024_v31  ;;  %v3078_v28 = vmul.f32 0.0625, %v3026_v61 }
 0x2be   : > { %v3257_v49 = vrot.slane %v3077_v42, %v7994_v18  ;;  %v3262_v32 = vrot.slane %v3078_v28, %v7997_v47  ;;  %v3692_v28 = vstv %s8095_s16  ;;  %s8408_s16 = sld [smem:[#allocation3 + $0x41]] }
 0x2bf   : > { %v8004_v23 = vpop.xlane.xlu1 %3122  ;;  %v8006_v13 = vpop.xlane.xlu0 %3120 }
 0x2c0   : > { %v3459_v41 = vrot.slane %v8006_v13, %v7994_v18  ;;  %v3258_v30 = vsel %vm3212_vm8, %v3257_v49, %v3253_v43  ;;  %v3464_v13 = vrot.slane %v8004_v23, %v7997_v47  ;;  %v3809_v43 = vstv %s8121_s18  ;;  %9891 = sst [smem:[#allocation48_spill]] %s8414_s17  ;;  %s8439_s18 = sld [smem:[#allocation3 + $0x5c]] }
 0x2c1   : > { %v3358_v3 = vsel %vm3357_vm13, %v3258_v30, %v3356_v54  ;;  %v3891_v30 = vstv %s8159_s8  ;;  %s8578_s8 = sld [smem:[#allocation3 + $0x12]] }
 0x2c2   : > { %v3460_v21 = vsel %vm3212_vm8, %v3459_v41, %v3455_v52 }
 0x2c3   : > { %v3030_v6 = vpop.xlane.xlu1 %3029  ;;  %v3028_v36 = vpop.xlane.xlu0 %3027  ;;  %v3555_v45 = vsel %vm3357_vm13, %v3460_v21, %v3554_v40 }
 0x2c4   : > { %v3079_v50 = vmul.f32 0.0625, %v3028_v36  ;;  %v3080_v58 = vmul.f32 0.0625, %v3030_v6  ;;  %9889 = sst [smem:[#allocation46_spill]] %s8408_s16 }
 0x2c6   : > { %v3266_v7 = vrot.slane %v3079_v50, %v7994_v18  ;;  %v3271_v16 = vrot.slane %v3080_v58, %v7997_v47  ;;  %v3705_v50 = vstv %s8082_s14  ;;  %s8382_s14 = sld [smem:[#allocation3 + $0x31]]  ;;  %9899 = sst [smem:[#allocation55_spill]] %s8439_s18 }
 0x2c7   : > { %v3127_v55 = vpop.xlane.xlu1 %3126  ;;  %v3125_v48 = vpop.xlane.xlu0 %3124 }
 0x2c8   : > { %v3468_v59 = vrot.slane %v3125_v48, %v7994_v18  ;;  %v3267_v8 = vsel %vm3212_vm8, %v3266_v7, %v3262_v32  ;;  %v3473_v44 = vrot.slane %v3127_v55, %v7997_v47 }
 0x2c9   : > { %v3360_v2 = vsel %vm3359_vm14, %v3267_v8, %v3358_v3 }
 0x2ca   : > { %v3469_v57 = vsel %vm3212_vm8, %v3468_v59, %v3464_v13 }
 0x2cb   : > { %v8055_v61 = vpop.xlane.xlu1 %3033  ;;  %v3032_v31 = vpop.xlane.xlu0 %3031  ;;  %v3556_v36 = vsel %vm3359_vm14, %v3469_v57, %v3555_v45 }
 0x2cc   : > { %v3081_v33 = vmul.f32 0.0625, %v3032_v31  ;;  %v3865_v31 = vstv %s8146_s29  ;;  %9886 = sst [smem:[#allocation44_spill]] %s8382_s14  ;;  %s8549_s29 = sld [smem:[#allocation3 + $0x10]] }
 0x2ce   : > { %v3275_v10 = vrot.slane %v3081_v33, %v7994_v18 }
 0x2cf   : > { %v8072_v9 = vpop.xlane.xlu1 %3130  ;;  %v3129_v23 = vpop.xlane.xlu0 %3128 }
 0x2d0   : > { %v3276_v53 = vsel %vm3212_vm8, %v3275_v10, %v3271_v16  ;;  %v3477_v20 = vrot.slane %v3129_v23, %v7994_v18  ;;  %v3082_v23 = vmul.f32 0.0625, %v8055_v61  ;;  %v4045_v61 = vstv %s8203_s2  ;;  %s8446_s2 = sld [smem:[#allocation3 + $0x61]] }
 0x2d1   : > { %v3362_v6 = vsel %vm3361_vm15, %v3276_v53, %v3360_v2 }
 0x2d2   : > { %3373 = vst.msk [vmem:[#allocation2 + $0x3] sm:$0xff] %vm3372_vm0, %v3362_v6  ;;  %v3478_v14 = vsel %vm3212_vm8, %v3477_v20, %v3473_v44 }
 0x2d3   : > { %v3557_v11 = vsel %vm3361_vm15, %v3478_v14, %v3556_v36  ;;  %v8088_v51 = vpop.xlane.xlu1 %3053  ;;  %v8090_v42 = vpop.xlane.xlu0 %3035  ;;  %v3995_v14 = vstv %s8200_s0  ;;  %s8622_s0 = sld [smem:[#allocation3 + $0x1a]] }
 0x2d4   : > { %3568 = vst.msk [vmem:[#allocation2 + $0x1b] sm:$0xff] %vm3372_vm0, %v3557_v11  ;;  %v3083_v40 = vmul.f32 0.0625, %v8090_v42  ;;  %v3092_v44 = vmul.f32 0.0625, %v8088_v51  ;;  %v4071_v11 = vstv %s8205_s3  ;;  %v3280_v42 = vrot.slane %v3082_v23, %v7997_v47  ;;  %s8441_s3 = sld [smem:[#allocation3 + $0x5d]] }
 0x2d6   : > { %v3284_v20 = vrot.slane %v3083_v40, %v7994_v18  ;;  %9902 = sst [smem:[#allocation58_spill]] %s8446_s2 }
 0x2d7   : > { %v8097_v29 = vpop.xlane.xlu1 %3150  ;;  %v8099_v56 = vpop.xlane.xlu0 %3132 }
 0x2d8   : > { %v3486_v51 = vrot.slane %v8099_v56, %v7994_v18 }
 0x2d9   : > { %v8118_v34 = vld [vmem:[#allocation2] sm:$0xff] }
 0x2da   : > { %v3693_v27 = vmul.f32 %v3692_v28, %v8118_v34  ;;  %9900 = sst [smem:[#allocation56_spill]] %s8441_s3 }
 0x2db   : > { %v8105_v0 = vpop.xlane.xlu1 %3037  ;;  %v8107_v4 = vpop.xlane.xlu0 %3055  ;;  %v8109_v62 = vld [vmem:[#allocation2 + $0x18] sm:$0xff] }
 0x2dc   : > { %v3732_v1 = vmul.f32 %v3731_v25, %v8109_v62  ;;  %v3706_v46 = vmul.f32 %v3705_v50, %v8109_v62  ;;  %v3758_v17 = vmul.f32 %v3757_v38, %v8109_v62  ;;  %v3784_v26 = vmul.f32 %v3783_v39, %v8109_v62  ;;  %v8156_v58 = vld [vmem:[#allocation2 + $0x19] sm:$0xff] }
 0x2dd   : > { %v3810_v41 = vmul.f32 %v3809_v43, %v8109_v62  ;;  %v3840_v59 = vmul.f32 %v3839_v19, %v8156_v58  ;;  %v3866_v60 = vmul.f32 %v3865_v31, %v8156_v58  ;;  %v3892_v35 = vmul.f32 %v3891_v30, %v8156_v58 }
 0x2de   : > { %3736 = vrot.lane.b32.xlu0 %v3732_v1, %s9701_s20  ;;  %3710 = vrot.lane.b32.xlu1 %v3706_v46, %s9701_s20  ;;  %v3918_v54 = vmul.f32 %v3917_v15, %v8156_v58  ;;  %v3093_v2 = vmul.f32 0.0625, %v8107_v4  ;;  %v3084_v4 = vmul.f32 0.0625, %v8105_v0  ;;  %v3482_v46 = vrot.slane %v8072_v9, %v7997_v47 }
 0x2df   : > { %v8125_v55 = vpop.xlane.xlu1 %3134  ;;  %v8127_v48 = vpop.xlane.xlu0 %3152  ;;  %v3996_v0 = vmul.f32 %v3995_v14, %v8156_v58  ;;  %v3527_v9 = vrot.slane %v8097_v29, %v7997_v47 }
 0x2e0   : > { %v3329_v1 = vrot.slane %v3093_v2, %v7994_v18  ;;  %v3531_v56 = vrot.slane %v8127_v48, %v7994_v18  ;;  %v3487_v48 = vsel %vm3212_vm8, %v3486_v51, %v3482_v46  ;;  %v3491_v29 = vrot.slane %v8125_v55, %v7997_v47 }
 0x2e2   : > { %3762 = vrot.lane.b32.xlu0 %v3758_v17, %s9697_s23  ;;  %3697 = vrot.lane.b32.xlu1 %v3693_v27, %s9701_s20  ;;  %s9705_s20 = smov 127   ;;  %v3325_v17 = vrot.slane %v3092_v44, %v7997_v47 }
 0x2e3   : > { %v8140_v49 = vpop.xlane.xlu1 %3061  ;;  %v3040_v37 = vpop.xlane.xlu0 %3039 }
 0x2e4   : > { %v3085_v6 = vmul.f32 0.0625, %v3040_v37  ;;  %v3096_v23 = vmul.f32 0.0625, %v8140_v49 }
 0x2e6   : > { %3788 = vrot.lane.b32.xlu0 %v3784_v26, %s9697_s23  ;;  %s9703_s23 = smov 1   ;;  %v4123_v26 = vstv %s8210_s5  ;;  %s8433_s5 = sld [smem:[#allocation3 + $0x58]] }
 0x2e7   : > { %v8149_v7 = vpop.xlane.xlu1 %3158  ;;  %v8151_v22 = vpop.xlane.xlu0 %3136 }
 0x2ea   : > { %3814 = vrot.lane.b32.xlu0 %v3810_v41, %s9699_s22  ;;  %s8181_s22 = sld [smem:[#allocation3 + $0x17]]  ;;  %v3285_v41 = vsel %vm3212_vm8, %v3284_v20, %v3280_v42 }
 0x2eb   : > { %v8162_v52 = vpop.xlane.xlu1 %3057  ;;  %v8164_v32 = vpop.xlane.xlu0 %3063 }
 0x2ec   : > { %9897 = sst [smem:[#allocation53_spill]] %s8433_s5 }
 0x2ee   : > { %3844 = vrot.lane.b32.xlu0 %v3840_v59, %s9703_s23  ;;  %s8190_s23 = sld [smem:[#allocation3 + $0x19]] }
 0x2ef   : > { %v8173_v63 = vpop.xlane.xlu1 %3154  ;;  %v8175_v24 = vpop.xlane.xlu0 %3160 }
 0x2f0   : > { %v3943_v21 = vstv %s8181_s22  ;;  %s9903_s22 = smov 123  }
 0x2f1   : > { %v3944_v3 = vmul.f32 %v3943_v21, %v8156_v58 }
 0x2f2   : > { %3870 = vrot.lane.b32.xlu0 %v3866_v60, %s9705_s20  ;;  %v8249_v60 = vld [vmem:[#allocation2 + $0x1a] sm:$0xff] }
 0x2f3   : > { %v3042_v33 = vpop.xlane.xlu1 %3041  ;;  %v8184_v5 = vpop.xlane.xlu0 %3059 }
 0x2f4   : > { %v3969_v57 = vstv %s8190_s23  ;;  %s8642_s23 = sld [smem:[#allocation3 + $0x22]] }
 0x2f5   : > { %v3970_v45 = vmul.f32 %v3969_v57, %v8156_v58  ;;  %v3330_v58 = vsel %vm3212_vm8, %v3329_v1, %v3325_v17  ;;  %v3095_v1 = vmul.f32 0.0625, %v8184_v5 }
 0x2f6   : > { %3896 = vrot.lane.b32.xlu0 %v3892_v35, %s9705_s20  ;;  %s8208_s20 = sld [smem:[#allocation3 + $0x25]]  ;;  %v3293_v35 = vrot.slane %v3085_v6, %v7994_v18 }
 0x2f7   : > { %v8193_v13 = vpop.xlane.xlu1 %3138  ;;  %v8195_v8 = vpop.xlane.xlu0 %3156 }
 0x2f8   : > { %v3500_v5 = vrot.slane %v8193_v13, %v7997_v47 }
 0x2fa   : > { %3922 = vrot.lane.b32.xlu0 %v3918_v54, %s9707_s4  ;;  %v3495_v54 = vrot.slane %v8151_v22, %v7994_v18  ;;  %v4046_v22 = vmul.f32 %v4045_v61, %v8249_v60  ;;  %9909 = sst [smem:[#allocation34_spill]] %s8642_s23 }
 0x2fb   : > { %v3046_v16 = vpop.xlane.xlu1 %3045  ;;  %v3044_v10 = vpop.xlane.xlu0 %3043 }
 0x2fc   : > { %9873 = sst [smem:[#allocation36_spill]] %s8208_s20  ;;  %v4097_v37 = vstv %s8208_s20  ;;  %v3087_v59 = vmul.f32 0.0625, %v3044_v10  ;;  %v3289_v10 = vrot.slane %v3084_v4, %v7997_v47  ;;  %v3088_v2 = vmul.f32 0.0625, %v3046_v16  ;;  %s8435_s20 = sld [smem:[#allocation3 + $0x59]] }
 0x2fd   : > { %v4098_v42 = vmul.f32 %v4097_v37, %v8249_v60  ;;  %v3496_v49 = vsel %vm3212_vm8, %v3495_v54, %v3491_v29  ;;  %v3094_v16 = vmul.f32 0.0625, %v8162_v52 }
 0x2fe   : > { %3948 = vrot.lane.b32.xlu0 %v3944_v3, %s9707_s4  ;;  %s9709_s4 = smov 123   ;;  %v3086_v3 = vmul.f32 0.0625, %v3042_v33  ;;  %v3302_v6 = vrot.slane %v3087_v59, %v7994_v18  ;;  %v4072_v33 = vmul.f32 %v4071_v11, %v8249_v60  ;;  %v3294_v55 = vsel %vm3212_vm8, %v3293_v35, %v3289_v10 }
 0x2ff   : > { %v8221_v53 = vpop.xlane.xlu0 %3140  ;;  %v8227_v36 = vpop.xlane.xlu1 %3142  ;;  %v3307_v59 = vrot.slane %v3088_v2, %v7997_v47  ;;  %v3558_v54 = vsel %vm3349_vm9, %v3496_v49, %v3487_v48 }
 0x300   : > { %v3298_v4 = vrot.slane %v3086_v3, %v7997_v47  ;;  %v3504_v46 = vrot.slane %v8221_v53, %v7994_v18 }
 0x302   : > { %3974 = vrot.lane.b32.xlu0 %v3970_v45, %s9709_s4  ;;  %v3532_v45 = vsel %vm3212_vm8, %v3531_v56, %v3527_v9  ;;  %v3097_v56 = vmul.f32 0.0625, %v8164_v32  ;;  %v3363_v9 = vsel %vm3349_vm9, %v3294_v55, %v3285_v41  ;;  %v3303_v35 = vsel %vm3212_vm8, %v3302_v6, %v3298_v4  ;;  %9898 = sst [smem:[#allocation54_spill]] %s8435_s20 }
 0x303   : > { %v3048_v27 = vpop.xlane.xlu0 %3047  ;;  %v3050_v44 = vpop.xlane.xlu1 %3049  ;;  %v3509_v32 = vrot.slane %v8227_v36, %v7997_v47  ;;  %v3338_v41 = vrot.slane %v3095_v1, %v7994_v18  ;;  %v3505_v29 = vsel %vm3212_vm8, %v3504_v46, %v3500_v5  ;;  %v3540_v36 = vrot.slane %v8195_v8, %v7994_v18 }
 0x304   : > { %v3089_v40 = vmul.f32 0.0625, %v3048_v27  ;;  %v3090_v17 = vmul.f32 0.0625, %v3050_v44  ;;  %v3343_v27 = vrot.slane %v3096_v23, %v7997_v47  ;;  %v3347_v48 = vrot.slane %v3097_v56, %v7994_v18 }
 0x305   : > { %v3364_v2 = vsel %vm3351_vm10, %v3303_v35, %v3363_v9  ;;  %v3559_v8 = vsel %vm3351_vm10, %v3505_v29, %v3558_v54  ;;  %v8348_v9 = vld [vmem:[#allocation2 + $0x1b] sm:$0xff]  ;;  %v4179_v5 = vstv %s8318_s10  ;;  %s8419_s10 = sld [smem:[#allocation3 + $0x4d]] }
 0x306   : > { %4000 = vrot.lane.b32.xlu0 %v3996_v0, %s9709_s4  ;;  %v3311_v51 = vrot.slane %v3089_v40, %v7994_v18  ;;  %s9875_s4 = smov 126   ;;  %v3334_v40 = vrot.slane %v3094_v16, %v7997_v47  ;;  %v3316_v13 = vrot.slane %v3090_v17, %v7997_v47  ;;  %v3549_v16 = vrot.slane %v8175_v24, %v7994_v18 }
 0x307   : > { %v3145_v20 = vpop.xlane.xlu0 %3144  ;;  %v3147_v3 = vpop.xlane.xlu1 %3146  ;;  %v4180_v35 = vmul.f32 %v4179_v5, %v8348_v9 }
 0x308   : > { %v3513_v52 = vrot.slane %v3145_v20, %v7994_v18  ;;  %v3312_v10 = vsel %vm3212_vm8, %v3311_v51, %v3307_v59  ;;  %v3518_v6 = vrot.slane %v3147_v3, %v7997_v47  ;;  %v3339_v4 = vsel %vm3212_vm8, %v3338_v41, %v3334_v40 }
 0x30a   : > { %4050 = vrot.lane.b32.xlu0 %v4046_v22, %s9875_s4  ;;  %v3514_v44 = vsel %vm3212_vm8, %v3513_v52, %v3509_v32  ;;  %v3365_v22 = vsel %vm3353_vm11, %v3312_v10, %v3364_v2  ;;  %v4231_v10 = vstv %s8351_s12  ;;  %s9892_s12 = smov 123  }
 0x30b   : > { %v3052_v0 = vpop.xlane.xlu0 %3051  ;;  %v3560_v1 = vsel %vm3353_vm11, %v3514_v44, %v3559_v8  ;;  %v4232_v41 = vmul.f32 %v4231_v10, %v8348_v9  ;;  %9894 = sst [smem:[#allocation50_spill]] %s8419_s10 }
 0x30c   : > { %v3091_v53 = vmul.f32 0.0625, %v3052_v0 }
 0x30e   : > { %v3320_v23 = vrot.slane %v3091_v53, %v7994_v18  ;;  %4076 = vrot.lane.b32.xlu0 %v4072_v33, %s9875_s4  ;;  %v3536_v33 = vrot.slane %v8173_v63, %v7997_v47  ;;  %v3348_v63 = vsel %vm3212_vm8, %v3347_v48, %v3343_v27  ;;  %v4149_v27 = vstv %s8296_s6  ;;  %s8426_s6 = sld [smem:[#allocation3 + $0x51]] }
 0x30f   : > { %v3149_v20 = vpop.xlane.xlu0 %3148  ;;  %v4205_v53 = vstv %s8340_s30  ;;  %v4257_v48 = vstv %s8382_s14  ;;  %s8417_s30 = sld [smem:[#allocation3 + $0x4c]]  ;;  %s8444_s14 = sld [smem:[#allocation3 + $0x60]] }
 0x310   : > { %v3321_v55 = vsel %vm3212_vm8, %v3320_v23, %v3316_v13  ;;  %v3522_v49 = vrot.slane %v3149_v20, %v7994_v18  ;;  %v3545_v18 = vrot.slane %v8149_v7, %v7997_v47  ;;  %v3541_v59 = vsel %vm3212_vm8, %v3540_v36, %v3536_v33 }
 0x311   : > { %v3366_v51 = vsel %vm3355_vm12, %v3321_v55, %v3365_v22  ;;  %v4206_v32 = vmul.f32 %v4205_v53, %v8348_v9  ;;  %v4258_v36 = vmul.f32 %v4257_v48, %v8348_v9  ;;  %v3744_v22 = vstv %s8399_s1  ;;  %s9939_s1 = sld [smem:[#allocation45_spill]] }
 0x312   : > { %v3367_v46 = vsel %vm3357_vm13, %v3330_v58, %v3366_v51  ;;  %v3523_v17 = vsel %vm3212_vm8, %v3522_v49, %v3518_v6  ;;  %4102 = vrot.lane.b32.xlu0 %v4098_v42, %s9878_s26  ;;  %v4124_v42 = vmul.f32 %v4123_v26, %v8249_v60  ;;  %v3550_v47 = vsel %vm3212_vm8, %v3549_v16, %v3545_v18 }
 0x313   : > { %v3368_v24 = vsel %vm3359_vm14, %v3339_v4, %v3367_v46  ;;  %v3561_v56 = vsel %vm3355_vm12, %v3523_v17, %v3560_v1  ;;  %v3770_v6 = vstv %s8401_s21  ;;  %v9762_v49 = vstv %s8406_s15  ;;  %s8716_s15 = sld [smem:[#allocation3 + $0x2c]]  ;;  %s8902_s21 = sld [smem:[#allocation3 + $0x3e]] }
 0x314   : > { %v3369_v52 = vsel %vm3361_vm15, %v3348_v63, %v3368_v24  ;;  %v3562_v58 = vsel %vm3357_vm13, %v3532_v45, %v3561_v56  ;;  %v4150_v45 = vmul.f32 %v4149_v27, %v8249_v60  ;;  %9896 = sst [smem:[#allocation52_spill]] %s8426_s6  ;;  %v9757_v16 = vstv %s8414_s17  ;;  %s8682_s17 = sld [smem:[#allocation3 + $0x28]] }
 0x315   : > { %3374 = vst.msk [vmem:[#allocation2 + $0xb] sm:$0xff] %vm3372_vm0, %v3369_v52  ;;  %v3563_v7 = vsel %vm3359_vm14, %v3541_v59, %v3562_v58  ;;  %9893 = sst [smem:[#allocation49_spill]] %s8417_s30  ;;  %v9756_v8 = vstv %s8417_s30  ;;  %v9755_v46 = vstv %s8419_s10  ;;  %v9753_v18 = vstv %s8426_s6  ;;  %s8654_s6 = sld [smem:[#allocation3 + $0x24]] }
 0x316   : > { %v3564_v0 = vsel %vm3361_vm15, %v3550_v47, %v3563_v7  ;;  %4128 = vrot.lane.b32.xlu0 %v4124_v42, %s9878_s26  ;;  %9901 = sst [smem:[#allocation57_spill]] %s8444_s14  ;;  %v3745_v63 = vmul.f32 %v3744_v22, %v8118_v34  ;;  %v9751_v24 = vstv %s8433_s5  ;;  %v9746_v56 = vstv %s8435_s20  ;;  %s8669_s10 = sld [smem:[#allocation3 + $0x26]] }
 0x317   : > { %3569 = vst.msk [vmem:[#allocation2 + $0x23] sm:$0xff] %vm3372_vm0, %v3564_v0  ;;  %v9741_v58 = vstv %s8439_s18  ;;  %v9736_v42 = vstv %s8441_s3  ;;  %v9738_v0 = vstv %s8444_s14  ;;  %s8598_s14 = sld [smem:[#allocation3 + $0x16]]  ;;  %s8610_s3 = sld [smem:[#allocation3 + $0x18]] }
 0x318   : > { %s8671_s30 = sld [smem:[#allocation3 + $0x3]]  ;;  %s8697_s18 = sld [smem:[#allocation3 + $0x2a]] }
 0x319   : > { %9918 = sst [smem:[#allocation39_spill]] %s8716_s15  ;;  %s8719_s5 = sld [smem:[#allocation3 + $0x1f]] }
 0x31a   : > { %4154 = vrot.lane.b32.xlu0 %v4150_v45, %s9881_s24  ;;  %v9737_v45 = vstv %s8446_s2  ;;  %s8632_s2 = sld [smem:[#allocation3 + $0x20]]  ;;  %9915 = sst [smem:[#allocation37_spill]] %s8682_s17 }
 0x31b   : > { %9911 = sst [smem:[#allocation35_spill]] %s8654_s6  ;;  %s8745_s20 = sld [smem:[#allocation3 + $0x47]] }
 0x31c   : > { %v8472_v1 = vld [vmem:[#allocation2 + $0xd] sm:$0xff]  ;;  %9913 = sst [smem:[#allocation36_spill]] %s8669_s10 }
 0x31d   : > { %v4689_v52 = vld [vmem:[#allocation2 + $0xe] sm:$0xff] }
 0x31e   : > { %4184 = vrot.lane.b32.xlu0 %v4180_v35, %s9883_s7  ;;  %v8361_v54 = vld [vmem:[#allocation2 + $0x20] sm:$0xff]  ;;  %9916 = sst [smem:[#allocation38_spill]] %s8697_s18 }
 0x31f   : > { %v3707_v40 = vmul.f32 %v3705_v50, %v8361_v54  ;;  %v3733_v3 = vmul.f32 %v3731_v25, %v8361_v54  ;;  %v4283_v50 = vstv %s8358_s27  ;;  %v3759_v29 = vmul.f32 %v3757_v38, %v8361_v54  ;;  %s8412_s27 = sld [smem:[#allocation3 + $0x45]]  ;;  %v8431_v2 = vld [vmem:[#allocation2 + $0x21] sm:$0xff] }
 0x320   : > { %v4284_v13 = vmul.f32 %v4283_v50, %v8348_v9  ;;  %v4335_v25 = vstv %s8371_s11  ;;  %v3785_v23 = vmul.f32 %v3783_v39, %v8361_v54  ;;  %v3811_v39 = vmul.f32 %v3809_v43, %v8361_v54  ;;  %s8424_s11 = sld [smem:[#allocation3 + $0x50]]  ;;  %v8459_v55 = vld [vmem:[#allocation2 + $0x24] sm:$0xff] }
 0x321   : > { %3712 = vrot.lane.b32.xlu1 %v3707_v40, %s9875_s4  ;;  %v4336_v38 = vmul.f32 %v4335_v25, %v8348_v9  ;;  %v3718_v43 = vstv %s8393_s13  ;;  %v3841_v44 = vmul.f32 %v3839_v19, %v8431_v2  ;;  %v9760_v19 = vstv %s8408_s16  ;;  %v8470_v4 = vld [vmem:[#allocation2 + $0x25] sm:$0xff]  ;;  %s8709_s16 = sld [smem:[#allocation3 + $0x3f]]  ;;  %s8930_s13 = sld [smem:[#allocation3 + $0x46]] }
 0x322   : > { %4210 = vrot.lane.b32.xlu0 %v4206_v32, %s9885_s28  ;;  %v3719_v20 = vmul.f32 %v3718_v43, %v8118_v34  ;;  %v3867_v51 = vmul.f32 %v3865_v31, %v8431_v2  ;;  %v8485_v31 = vmul.f32 %v9762_v49, %v8459_v55  ;;  %v8490_v59 = vld [vmem:[#allocation2 + $0x26] sm:$0xff]  ;;  %v8497_v47 = vmul.f32 %v9760_v19, %v8459_v55 }
 0x323   : > { %v8510_v35 = vmul.f32 %v9757_v16, %v8470_v4  ;;  %v8515_v40 = vmul.f32 %v9756_v8, %v8472_v1  ;;  %v3893_v32 = vmul.f32 %v3891_v30, %v8431_v2  ;;  %v8541_v30 = vmul.f32 %v9751_v24, %v4689_v52 }
 0x324   : > { %v9778_v8 = vstv %s8669_s10  ;;  %v3687_v16 = vstv %s8671_s30  ;;  %s8752_s10 = sld [smem:[#allocation3 + $0x30]]  ;;  %s8965_s30 = sld [smem:[#allocation3 + $0x4e]] }
 0x325   : > { %3738 = vrot.lane.b32.xlu1 %v3733_v3, %s9875_s4  ;;  %9890 = sst [smem:[#allocation47_spill]] %s8412_s27  ;;  %v9759_v33 = vstv %s8412_s27  ;;  %v8523_v3 = vmul.f32 %v9755_v46, %v8470_v4  ;;  %s8701_s27 = sld [smem:[#allocation3 + $0x1d]] }
 0x326   : > { %4236 = vrot.lane.b32.xlu0 %v4232_v41, %s9885_s28  ;;  %9895 = sst [smem:[#allocation51_spill]] %s8424_s11  ;;  %v9754_v17 = vstv %s8424_s11  ;;  %v8502_v7 = vmul.f32 %v9759_v33, %v8459_v55  ;;  %s8656_s11 = sld [smem:[#allocation3 + $0x1]] }
 0x327   : > { %v8528_v41 = vmul.f32 %v9754_v17, %v8472_v1 }
 0x329   : > { %3764 = vrot.lane.b32.xlu1 %v3759_v29, %s9878_s26  ;;  %v8533_v29 = vmul.f32 %v9753_v18, %v8470_v4 }
 0x32a   : > { %4288 = vrot.lane.b32.xlu0 %v4284_v13, %s9887_s25  ;;  %v3771_v13 = vmul.f32 %v3770_v6, %v8118_v34 }
 0x32c   : > { %v3677_v18 = vstv %s8656_s11  ;;  %s8947_s11 = sld [smem:[#allocation3 + $0x4a]] }
 0x32d   : > { %3790 = vrot.lane.b32.xlu1 %v3785_v23, %s9878_s26 }
 0x32e   : > { %4340 = vrot.lane.b32.xlu0 %v4336_v38, %s9892_s12  ;;  %s8455_s12 = sld [smem:[#allocation3 + $0xc]]  ;;  %v8546_v38 = vmul.f32 %v9746_v56, %v8490_v59  ;;  %v9782_v56 = vstv %s8632_s2 }
 0x331   : > { %3816 = vrot.lane.b32.xlu1 %v3811_v39, %s9881_s24  ;;  %v8553_v39 = vmul.f32 %v9741_v58, %v4689_v52 }
 0x332   : > { %4262 = vrot.lane.b32.xlu0 %v4258_v36, %s9887_s25  ;;  %v8558_v36 = vmul.f32 %v9736_v42, %v8490_v59  ;;  %v3826_v42 = vstv %s8488_s19  ;;  %s8967_s19 = sld [smem:[#allocation3 + $0x2]] }
 0x334   : > { %v3796_v23 = vstv %s8455_s12  ;;  %s8912_s12 = sld [smem:[#allocation3 + $0x42]] }
 0x335   : > { %3846 = vrot.lane.b32.xlu1 %v3841_v44, %s9883_s7  ;;  %v8562_v44 = vmul.f32 %v9738_v0, %v4689_v52  ;;  %v3945_v52 = vmul.f32 %v3943_v21, %v8431_v2 }
 0x336   : > { %3723 = vrot.lane.b32.xlu0 %v3719_v20, %s9875_s4  ;;  %v8567_v20 = vmul.f32 %v9737_v45, %v8490_v59 }
 0x339   : > { %3872 = vrot.lane.b32.xlu1 %v3867_v51, %s9885_s28  ;;  %v3919_v51 = vmul.f32 %v3917_v15, %v8431_v2  ;;  %v3852_v15 = vstv %s8549_s29  ;;  %s8981_s29 = sld [smem:[#allocation3 + $0x52]] }
 0x33a   : > { %3749 = vrot.lane.b32.xlu0 %v3745_v63, %s9878_s26  ;;  %v3797_v63 = vmul.f32 %v3796_v23, %v8118_v34 }
 0x33d   : > { %3898 = vrot.lane.b32.xlu1 %v3893_v32, %s9885_s28  ;;  %v3822_v32 = vld [vmem:[#allocation2 + $0x1] sm:$0xff] }
 0x33e   : > { %3775 = vrot.lane.b32.xlu0 %v3771_v13, %s9878_s26  ;;  %v3827_v13 = vmul.f32 %v3826_v42, %v3822_v32  ;;  %v3853_v21 = vmul.f32 %v3852_v15, %v3822_v32 }
 0x341   : > { %3924 = vrot.lane.b32.xlu1 %v3919_v51, %s9887_s25  ;;  %v3971_v51 = vmul.f32 %v3969_v57, %v8431_v2  ;;  %v3997_v57 = vmul.f32 %v3995_v14, %v8431_v2 }
 0x342   : > { %3801 = vrot.lane.b32.xlu0 %v3797_v63, %s9881_s24 }
 0x345   : > { %3950 = vrot.lane.b32.xlu1 %v3945_v52, %s9887_s25  ;;  %v3878_v52 = vstv %s8578_s8  ;;  %s9027_s8 = sld [smem:[#allocation3 + $0x1e]] }
 0x346   : > { %3831 = vrot.lane.b32.xlu0 %v3827_v13, %s9883_s7 }
 0x347   : > { %v2933_v34 = vpop.f32.mrb[44].mxu1 }
 0x348   : > { %v2939_v45 = vmax.f32 %v2933_v34, 0.0  ;;  %v5877_v63 = vpop.f32.mrb[45].mxu1  ;;  %v8606_v34 = vld [vmem:[#allocation2 + $0x22] sm:$0xff] }
 0x349   : > { %v2936_v0 = vpop.f32.mrb[46].mxu1  ;;  %3976 = vrot.lane.b32.xlu1 %v3971_v51, %s9903_s22  ;;  %v3904_v51 = vstv %s8588_s9  ;;  %v4073_v63 = vmul.f32 %v4071_v11, %v8606_v34  ;;  %v9784_v11 = vstv %s8622_s0  ;;  %s9930_s9 = sld [smem:[#allocation34_spill]] }
 0x34a   : > { %v2940_v13 = vpack.c.bf16 %v2939_v45, %v2939_v45  ;;  %v5878_v58 = vpop.f32.mrb[47].mxu1  ;;  %3857 = vrot.lane.b32.xlu0 %v3853_v21, %s9885_s28  ;;  %v3879_v0 = vmul.f32 %v3878_v52, %v3822_v32  ;;  %v3905_v2 = vmul.f32 %v3904_v51, %v3822_v32  ;;  %v9788_v45 = vstv %s8598_s14 }
 0x34b   : > { %v4047_v58 = vmul.f32 %v4045_v61, %v8606_v34  ;;  %v3931_v61 = vmul.f32 %v9788_v45, %v3822_v32  ;;  %9929 = sst [smem:[#allocation42_spill]] %s9027_s8 }
 0x34c   : > { %5882 = vmatmul.mubr.msk.bf16.vlgmr.msra.gmra.mrb[48].mxu1 %vm2942_vm1, %v2940_v13  ;;  %v9786_v13 = vstv %s8610_s3 }
 0x34d   : > { %4002 = vrot.lane.b32.xlu1 %v3997_v57, %s9903_s22  ;;  %v4099_v57 = vmul.f32 %v4097_v37, %v8606_v34  ;;  %v8651_v37 = vld [vmem:[#allocation2 + $0x2] sm:$0xff] }
 0x34e   : > { %3883 = vrot.lane.b32.xlu0 %v3879_v0, %s9885_s28  ;;  %v4111_v19 = vmul.f32 %v9778_v8, %v8651_v37 }
 0x350   : > { %v8616_v14 = vpop.permute.xlu0 %3736 }
 0x351   : > { %4052 = vrot.lane.b32.xlu1 %v4047_v58, %s9875_s4  ;;  %v3957_v58 = vmul.f32 %v9786_v13, %v3822_v32 }
 0x352   : > { %3909 = vrot.lane.b32.xlu0 %v3905_v2, %s9887_s25  ;;  %v4125_v2 = vmul.f32 %v4123_v26, %v8606_v34  ;;  %v4151_v26 = vmul.f32 %v4149_v27, %v8606_v34 }
 0x354   : > { %v3763_v21 = vpop.permute.xlu0 %3762 }
 0x355   : > { %4078 = vrot.lane.b32.xlu1 %v4073_v63, %s9875_s4 }
 0x356   : > { %3935 = vrot.lane.b32.xlu0 %v3931_v61, %s9887_s25  ;;  %v3983_v61 = vmul.f32 %v9784_v11, %v3822_v32  ;;  %v4033_v32 = vmul.f32 %v9782_v56, %v8651_v37  ;;  %v8850_v11 = vld [vmem:[#allocation2 + $0x1d] sm:$0xff] }
 0x358   : > { %v3789_v0 = vpop.permute.xlu0 %3788 }
 0x359   : > { %4104 = vrot.lane.b32.xlu1 %v4099_v57, %s9878_s26 }
 0x35a   : > { %3961 = vrot.lane.b32.xlu0 %v3957_v58, %s9903_s22  ;;  %v8665_v58 = vld [vmem:[#allocation2 + $0x23] sm:$0xff] }
 0x35b   : > { %v4181_v27 = vmul.f32 %v4179_v5, %v8665_v58  ;;  %v3711_v5 = vpop.permute.xlu1 %3710 }
 0x35c   : > { %v3815_v63 = vpop.permute.xlu0 %3814 }
 0x35d   : > { %4130 = vrot.lane.b32.xlu1 %v4125_v2, %s9878_s26  ;;  %v9781_v2 = vstv %s8642_s23  ;;  %s8734_s23 = sld [smem:[#allocation3 + $0x2e]] }
 0x35e   : > { %3987 = vrot.lane.b32.xlu0 %v3983_v61, %s9903_s22  ;;  %v4059_v24 = vmul.f32 %v9781_v2, %v8651_v37 }
 0x35f   : > { %v8834_v2 = vpop.permute.xlu1 %3697 }
 0x360   : > { %v3845_v57 = vpop.permute.xlu0 %3844 }
 0x361   : > { %4156 = vrot.lane.b32.xlu1 %v4151_v26, %s9881_s24  ;;  %v9779_v26 = vstv %s8654_s6  ;;  %s8728_s6 = sld [smem:[#allocation3 + $0x43]] }
 0x362   : > { %4037 = vrot.lane.b32.xlu0 %v4033_v32, %s9875_s4  ;;  %v4207_v32 = vmul.f32 %v4205_v53, %v8665_v58  ;;  %v4085_v46 = vmul.f32 %v9779_v26, %v8651_v37 }
 0x363   : > { %9920 = sst [smem:[#allocation40_spill]] %s8734_s23 }
 0x364   : > { %v3871_v61 = vpop.permute.xlu0 %3870 }
 0x365   : > { %4186 = vrot.lane.b32.xlu1 %v4181_v27, %s9883_s7  ;;  %v3678_v27 = vmul.f32 %v3677_v18, %v8109_v62 }
 0x366   : > { %4063 = vrot.lane.b32.xlu0 %v4059_v24, %s9875_s4  ;;  %v4233_v24 = vmul.f32 %v4231_v10, %v8665_v58 }
 0x367   : > { %v3716_v53 = vadd.f32 %v3711_v5, %v3678_v27  ;;  %v4285_v27 = vmul.f32 %v4283_v50, %v8665_v58  ;;  %v9787_v50 = vstv %s8701_s27 }
 0x368   : > { %v3897_v17 = vpop.permute.xlu0 %3896 }
 0x369   : > { %4212 = vrot.lane.b32.xlu1 %v4207_v32, %s9885_s28  ;;  %v3688_v32 = vmul.f32 %v3687_v16, %v8109_v62  ;;  %v3768_v49 = vadd.f32 %v3763_v21, %v3716_v53 }
 0x36a   : > { %4089 = vrot.lane.b32.xlu0 %v4085_v46, %s9878_s26  ;;  %v9775_v46 = vstv %s8682_s17  ;;  %s8772_s17 = sld [smem:[#allocation3 + $0x32]] }
 0x36b   : > { %v3742_v10 = vadd.f32 %v8616_v14, %v3688_v32  ;;  %v3820_v5 = vadd.f32 %v3815_v63, %v3768_v49  ;;  %v4137_v21 = vmul.f32 %v9775_v46, %v8651_v37  ;;  %v9774_v49 = vstv %s8697_s18  ;;  %s8765_s18 = sld [smem:[#allocation3 + $0x4b]] }
 0x36c   : > { %v3923_v33 = vpop.permute.xlu0 %3922 }
 0x36d   : > { %4238 = vrot.lane.b32.xlu1 %v4233_v24, %s9885_s28  ;;  %v3794_v53 = vadd.f32 %v3789_v0, %v3742_v10  ;;  %v3876_v24 = vadd.f32 %v3871_v61, %v3820_v5  ;;  %v4337_v0 = vmul.f32 %v4335_v25, %v8665_v58  ;;  %v4411_v10 = vstv %s8709_s16  ;;  %s8853_s16 = sld [smem:[#allocation3 + $0x3b]] }
 0x36e   : > { %4115 = vrot.lane.b32.xlu0 %v4111_v19, %s9878_s26  ;;  %v8731_v19 = vld [vmem:[#allocation2 + $0x3] sm:$0xff]  ;;  %v9785_v25 = vstv %s8719_s5 }
 0x36f   : > { %v3850_v14 = vadd.f32 %v3845_v57, %v3794_v53  ;;  %v3928_v63 = vadd.f32 %v3923_v33, %v3876_v24  ;;  %v4167_v32 = vmul.f32 %v9774_v49, %v8731_v19  ;;  %v9773_v57 = vstv %s8716_s15  ;;  %s8786_s15 = sld [smem:[#allocation3 + $0x36]] }
 0x370   : > { %v3949_v62 = vpop.permute.xlu0 %3948  ;;  %v4018_v33 = vmul.f32 %v9787_v50, %v8249_v60  ;;  %v4413_v53 = vmul.f32 %v4411_v10, %v8459_v55  ;;  %9921 = sst [smem:[#allocation41_spill]] %s8772_s17 }
 0x371   : > { %4290 = vrot.lane.b32.xlu1 %v4285_v27, %s9887_s25  ;;  %v3902_v5 = vadd.f32 %v3897_v17, %v3850_v14  ;;  %v4193_v14 = vmul.f32 %v9773_v57, %v8731_v19 }
 0x372   : > { %4141 = vrot.lane.b32.xlu0 %v4137_v21, %s9881_s24 }
 0x373   : > { %v3954_v21 = vadd.f32 %v3949_v62, %v3902_v5  ;;  %v4028_v62 = vmul.f32 %v9785_v25, %v8249_v60  ;;  %v9771_v60 = vstv %s8752_s10 }
 0x374   : > { %v3975_v61 = vpop.permute.xlu0 %3974 }
 0x375   : > { %v3980_v27 = vadd.f32 %v3975_v61, %v3928_v63  ;;  %4342 = vrot.lane.b32.xlu1 %v4337_v0, %s9903_s22  ;;  %v4463_v63 = vstv %s8728_s6  ;;  %v9772_v61 = vstv %s8734_s23  ;;  %s8782_s6 = sld [smem:[#allocation3 + $0x4f]]  ;;  %s8798_s23 = sld [smem:[#allocation3 + $0x34]] }
 0x376   : > { %4171 = vrot.lane.b32.xlu0 %v4167_v32, %s9883_s7  ;;  %v4465_v32 = vmul.f32 %v4463_v63, %v8459_v55 }
 0x377   : > { %v8759_v17 = vadd.f32 %v4018_v33, %v3980_v27  ;;  %v4219_v33 = vmul.f32 %v9772_v61, %v8731_v19 }
 0x378   : > { %v4001_v24 = vpop.permute.xlu0 %4000 }
 0x379   : > { %v4006_v0 = vadd.f32 %v4001_v24, %v3954_v21  ;;  %4418 = vrot.lane.b32.xlu1 %v4413_v53, %s9875_s4  ;;  %v4519_v21 = vstv %s8745_s20  ;;  %s8794_s20 = sld [smem:[#allocation3 + $0x53]] }
 0x37a   : > { %4197 = vrot.lane.b32.xlu0 %v4193_v14, %s9885_s28  ;;  %v4521_v53 = vmul.f32 %v4519_v21, %v8470_v4  ;;  %v4245_v14 = vmul.f32 %v9771_v60, %v8731_v19  ;;  %v4520_v13 = vmul.f32 %v4519_v21, %v8850_v11  ;;  %v4367_v21 = vstv %s8853_s16  ;;  %s9170_s16 = sld [smem:[#allocation3 + $0x3a]] }
 0x37b   : > { %v4030_v5 = vadd.f32 %v4028_v62, %v4006_v0  ;;  %v4571_v0 = vstv %s8765_s18  ;;  %v9777_v62 = vstv %s8772_s17  ;;  %v4623_v61 = vstv %s8782_s6  ;;  %s8808_s18 = sld [smem:[#allocation3 + $0x5b]]  ;;  %s8818_s17 = sld [smem:[#allocation3 + $0x5f]] }
 0x37c   : > { %v8776_v27 = vpop.permute.xlu0 %4050  ;;  %v4271_v60 = vmul.f32 %v9777_v62, %v8731_v19  ;;  %v4625_v57 = vmul.f32 %v4623_v61, %v8470_v4  ;;  %v9783_v62 = vstv %s8798_s23  ;;  %s9938_s6 = sld [smem:[#allocation38_spill]] }
 0x37d   : > { %4470 = vrot.lane.b32.xlu1 %v4465_v32, %s9878_s26  ;;  %v4573_v32 = vmul.f32 %v4571_v0, %v8470_v4 }
 0x37e   : > { %4223 = vrot.lane.b32.xlu0 %v4219_v33, %s9885_s28 }
 0x37f   : > { %v4675_v46 = vstv %s8794_s20  ;;  %s9060_s20 = sld [smem:[#allocation3 + $0x3c]] }
 0x380   : > { %v4077_v24 = vpop.permute.xlu0 %4076 }
 0x381   : > { %4526 = vrot.lane.b32.xlu1 %v4521_v53, %s9883_s7  ;;  %v9780_v53 = vstv %s8786_s15  ;;  %v4751_v26 = vstv %s8808_s18  ;;  %v4803_v56 = vstv %s8818_s17  ;;  %s8949_s17 = sld [smem:[#allocation3]]  ;;  %s9936_s18 = sld [smem:[#allocation37_spill]] }
 0x382   : > { %4249 = vrot.lane.b32.xlu0 %v4245_v14, %s9887_s25  ;;  %v4323_v49 = vmul.f32 %v9780_v53, %v8731_v19  ;;  %v8831_v53 = vld [vmem:[#allocation2 + $0x1c] sm:$0xff] }
 0x384   : > { %v8802_v33 = vpop.permute.xlu0 %4102 }
 0x385   : > { %4578 = vrot.lane.b32.xlu1 %v4573_v32, %s9885_s28  ;;  %v4677_v32 = vmul.f32 %v4675_v46, %v8470_v4  ;;  %v4412_v4 = vmul.f32 %v4411_v10, %v8831_v53  ;;  %v4082_v10 = vadd.f32 %v4077_v24, %v4030_v5 }
 0x386   : > { %4275 = vrot.lane.b32.xlu0 %v4271_v60, %s9887_s25  ;;  %v4297_v60 = vmul.f32 %v9783_v62, %v8731_v19 }
 0x388   : > { %v4129_v14 = vpop.permute.xlu0 %4128 }
 0x389   : > { %4630 = vrot.lane.b32.xlu1 %v4625_v57, %s9887_s25  ;;  %v4753_v57 = vmul.f32 %v4751_v26, %v8490_v59 }
 0x38a   : > { %4327 = vrot.lane.b32.xlu0 %v4323_v49, %s9903_s22 }
 0x38c   : > { %v8824_v8 = vpop.permute.xlu0 %4154 }
 0x38d   : > { %4682 = vrot.lane.b32.xlu1 %v4677_v32, %s9903_s22  ;;  %v4805_v32 = vmul.f32 %v4803_v56, %v8490_v59 }
 0x38e   : > { %4301 = vrot.lane.b32.xlu0 %v4297_v60, %s9903_s22  ;;  %v4464_v60 = vmul.f32 %v4463_v63, %v8831_v53  ;;  %v8861_v63 = vld [vmem:[#allocation2 + $0x8] sm:$0xff] }
 0x38f   : > { %v3720_v24 = vmul.f32 %v3718_v43, %v8861_v63 }
 0x390   : > { %v4185_v49 = vpop.permute.xlu0 %4184 }
 0x391   : > { %4758 = vrot.lane.b32.xlu1 %v4753_v57, %s9875_s4 }
 0x392   : > { %4416 = vrot.lane.b32.xlu0 %v4412_v4, %s9875_s4  ;;  %v4259_v4 = vmul.f32 %v4257_v48, %v8665_v58  ;;  %v4572_v48 = vmul.f32 %v4571_v0, %v8850_v11 }
 0x393   : > { %v8843_v19 = vpop.permute.xlu1 %3712 }
 0x394   : > { %v8846_v62 = vpop.permute.xlu0 %4210 }
 0x395   : > { %4810 = vrot.lane.b32.xlu1 %v4805_v32, %s9878_s26  ;;  %v4134_v32 = vadd.f32 %v4129_v14, %v4082_v10 }
 0x396   : > { %4468 = vrot.lane.b32.xlu0 %v4464_v60, %s9878_s26 }
 0x397   : > { %v8855_v57 = vpop.permute.xlu1 %3738  ;;  %v4190_v60 = vadd.f32 %v4185_v49, %v4134_v32  ;;  %v4676_v32 = vmul.f32 %v4675_v46, %v8850_v11 }
 0x398   : > { %v4237_v25 = vpop.permute.xlu0 %4236 }
 0x399   : > { %4264 = vrot.lane.b32.xlu1 %v4259_v4, %s9887_s25  ;;  %v4242_v45 = vadd.f32 %v4237_v25, %v4190_v60  ;;  %v4624_v4 = vmul.f32 %v4623_v61, %v8850_v11  ;;  %v4368_v25 = vmul.f32 %v4367_v21, %v8831_v53  ;;  %v8890_v61 = vld [vmem:[#allocation2 + $0x1e] sm:$0xff] }
 0x39a   : > { %4524 = vrot.lane.b32.xlu0 %v4520_v13, %s9883_s7  ;;  %v3746_v13 = vmul.f32 %v3744_v22, %v8861_v63 }
 0x39b   : > { %v3765_v5 = vpop.permute.xlu1 %3764 }
 0x39c   : > { %v4289_v50 = vpop.permute.xlu0 %4288 }
 0x39d   : > { %3725 = vrot.lane.b32.xlu1 %v3720_v24, %s9875_s4  ;;  %v4294_v14 = vadd.f32 %v4289_v50, %v4242_v45  ;;  %v3772_v45 = vmul.f32 %v3770_v6, %v8861_v63  ;;  %v3798_v24 = vmul.f32 %v3796_v23, %v8861_v63 }
 0x39e   : > { %4576 = vrot.lane.b32.xlu0 %v4572_v48, %s9885_s28  ;;  %v4752_v48 = vmul.f32 %v4751_v26, %v8890_v61 }
 0x39f   : > { %v3791_v10 = vpop.permute.xlu1 %3790 }
 0x3a0   : > { %v4341_v49 = vpop.permute.xlu0 %4340 }
 0x3a1   : > { %v4346_v43 = vadd.f32 %v4341_v49, %v4294_v14  ;;  %3751 = vrot.lane.b32.xlu1 %v3746_v13, %s9878_s26  ;;  %v8899_v14 = vld [vmem:[#allocation2 + $0x9] sm:$0xff]  ;;  %v4804_v49 = vmul.f32 %v4803_v56, %v8890_v61  ;;  %v3694_v56 = vmul.f32 %v3692_v28, %v8861_v63 }
 0x3a2   : > { %4628 = vrot.lane.b32.xlu0 %v4624_v4, %s9887_s25  ;;  %v3828_v13 = vmul.f32 %v3826_v42, %v8899_v14  ;;  %v3854_v4 = vmul.f32 %v3852_v15, %v8899_v14  ;;  %v3679_v42 = vmul.f32 %v3677_v18, %v8361_v54  ;;  %v3880_v18 = vmul.f32 %v3878_v52, %v8899_v14 }
 0x3a3   : > { %v3817_v0 = vpop.permute.xlu1 %3816  ;;  %v8884_v50 = vadd.f32 %v4368_v25, %v4346_v43  ;;  %v8927_v25 = vld [vmem:[#allocation2 + $0x4] sm:$0xff] }
 0x3a4   : > { %v8886_v22 = vpop.permute.xlu0 %4262 }
 0x3a5   : > { %3777 = vrot.lane.b32.xlu1 %v3772_v45, %s9878_s26  ;;  %v4398_v45 = vstv %s8902_s21  ;;  %s9958_s21 = sld [smem:[#allocation50_spill]] }
 0x3a6   : > { %4680 = vrot.lane.b32.xlu0 %v4676_v32, %s9903_s22  ;;  %v3717_v32 = vadd.f32 %v8843_v19, %v3679_v42  ;;  %v4450_v19 = vstv %s8912_s12  ;;  %s9962_s12 = sld [smem:[#allocation51_spill]] }
 0x3a7   : > { %v3847_v60 = vpop.permute.xlu1 %3846 }
 0x3a8   : > { %v8896_v6 = vpop.permute.xlu0 %3723  ;;  %v3769_v28 = vadd.f32 %v3765_v5, %v3717_v32 }
 0x3a9   : > { %3803 = vrot.lane.b32.xlu1 %v3798_v24, %s9881_s24  ;;  %v3689_v24 = vmul.f32 %v3687_v16, %v8361_v54  ;;  %v3906_v16 = vmul.f32 %v3904_v51, %v8899_v14 }
 0x3aa   : > { %4756 = vrot.lane.b32.xlu0 %v4752_v48, %s9875_s4 }
 0x3ab   : > { %v3873_v46 = vpop.permute.xlu1 %3872  ;;  %v3743_v52 = vadd.f32 %v8855_v57, %v3689_v24  ;;  %v8962_v57 = vld [vmem:[#allocation2 + $0x5] sm:$0xff] }
 0x3ac   : > { %v8908_v23 = vpop.permute.xlu0 %3749 }
 0x3ad   : > { %3833 = vrot.lane.b32.xlu1 %v3828_v13, %s9883_s7  ;;  %v4399_v13 = vmul.f32 %v4398_v45, %v8927_v25  ;;  %v3795_v5 = vadd.f32 %v3791_v10, %v3743_v52 }
 0x3ae   : > { %4808 = vrot.lane.b32.xlu0 %v4804_v49, %s9878_s26  ;;  %v3821_v49 = vadd.f32 %v3817_v0, %v3769_v28  ;;  %v9801_v0 = vstv %s8930_s13 }
 0x3af   : > { %v3899_v26 = vpop.permute.xlu1 %3898  ;;  %v3851_v32 = vadd.f32 %v3847_v60, %v3795_v5  ;;  %v4507_v52 = vmul.f32 %v9801_v0, %v8962_v57  ;;  %v9925_v60 = vstv %s8701_s27  ;;  %s9006_s27 = sld [smem:[#allocation3 + $0x1c]] }
 0x3b0   : > { %v8921_v43 = vpop.permute.xlu0 %3775 }
 0x3b1   : > { %3859 = vrot.lane.b32.xlu1 %v3854_v4, %s9885_s28  ;;  %v3877_v4 = vadd.f32 %v3873_v46, %v3821_v49  ;;  %v9924_v46 = vstv %s8598_s14  ;;  %v3903_v24 = vadd.f32 %v3899_v26, %v3851_v32  ;;  %v4019_v49 = vmul.f32 %v9925_v60, %v8606_v34  ;;  %s9024_s14 = sld [smem:[#allocation3 + $0x5e]] }
 0x3b2   : > { %3699 = vrot.lane.b32.xlu0 %v3694_v56, %s9875_s4  ;;  %v4451_v56 = vmul.f32 %v4450_v19, %v8927_v25 }
 0x3b3   : > { %v3925_v15 = vpop.permute.xlu1 %3924 }
 0x3b4   : > { %v8940_v48 = vpop.permute.xlu0 %3801  ;;  %v3929_v51 = vadd.f32 %v3925_v15, %v3877_v4  ;;  %v9800_v15 = vstv %s8947_s11 }
 0x3b5   : > { %3885 = vrot.lane.b32.xlu1 %v3880_v18, %s9885_s28  ;;  %v3932_v18 = vmul.f32 %v9924_v46, %v8899_v14  ;;  %v4559_v46 = vmul.f32 %v9800_v15, %v8962_v57 }
 0x3b6   : > { %4403 = vrot.lane.b32.xlu0 %v4399_v13, %s9875_s4 }
 0x3b7   : > { %v3951_v54 = vpop.permute.xlu1 %3950 }
 0x3b8   : > { %v8956_v42 = vpop.permute.xlu0 %3831  ;;  %v3955_v26 = vadd.f32 %v3951_v54, %v3903_v24  ;;  %v6162_v54 = vld [vmem:[#allocation2] sm:$0xff] }
 0x3b9   : > { %3911 = vrot.lane.b32.xlu1 %v3906_v16, %s9887_s25  ;;  %v9789_v16 = vstv %s8949_s17 }
 0x3ba   : > { %4455 = vrot.lane.b32.xlu0 %v4451_v56, %s9878_s26  ;;  %v9926_v56 = vstv %s8610_s3  ;;  %v3673_v24 = vmul.f32 %v6162_v54, %v9789_v16  ;;  %s9000_s3 = sld [smem:[#allocation3 + $0x5a]]  ;;  %v9017_v16 = vld [vmem:[#allocation2 + $0xa] sm:$0xff] }
 0x3bb   : > { %v3977_v10 = vpop.permute.xlu1 %3976  ;;  %v3958_v32 = vmul.f32 %v9926_v56, %v8899_v14 }
 0x3bc   : > { %v3981_v28 = vadd.f32 %v3977_v10, %v3929_v51  ;;  %v3858_v13 = vpop.permute.xlu0 %3857 }
 0x3bd   : > { %3937 = vrot.lane.b32.xlu1 %v3932_v18, %s9887_s25  ;;  %v9927_v18 = vstv %s8719_s5  ;;  %s9934_s5 = sld [smem:[#allocation36_spill]] }
 0x3be   : > { %4511 = vrot.lane.b32.xlu0 %v4507_v52, %s9883_s7  ;;  %v8985_v5 = vadd.f32 %v4019_v49, %v3981_v28  ;;  %v4029_v60 = vmul.f32 %v9927_v18, %v8606_v34  ;;  %v9799_v28 = vstv %s8965_s30  ;;  %v9790_v52 = vstv %s8967_s19 }
 0x3bf   : > { %v4003_v4 = vpop.permute.xlu1 %4002  ;;  %v4611_v18 = vmul.f32 %v9799_v28, %v8962_v57 }
 0x3c0   : > { %v4007_v51 = vadd.f32 %v4003_v4, %v3955_v26  ;;  %v3884_v10 = vpop.permute.xlu0 %3883  ;;  %v3703_v26 = vadd.f32 %v8834_v2, %v3673_v24  ;;  %v9928_v4 = vstv %s8622_s0  ;;  %v9791_v2 = vstv %s8981_s29  ;;  %s9042_s0 = sld [smem:[#allocation3 + $0x35]] }
 0x3c1   : > { %3963 = vrot.lane.b32.xlu1 %v3958_v32, %s9903_s22  ;;  %v3984_v56 = vmul.f32 %v9928_v4, %v8899_v14  ;;  %v4663_v4 = vmul.f32 %v9791_v2, %v8962_v57 }
 0x3c2   : > { %4563 = vrot.lane.b32.xlu0 %v4559_v46, %s9885_s28  ;;  %v9004_v49 = vadd.f32 %v4029_v60, %v4007_v51  ;;  %v3683_v51 = vmul.f32 %v6162_v54, %v9790_v52  ;;  %v3755_v46 = vadd.f32 %v8908_v23, %v3703_v26  ;;  %v9931_v54 = vstv %s8632_s2  ;;  %s9932_s2 = sld [smem:[#allocation35_spill]] }
 0x3c3   : > { %v9009_v34 = vpop.permute.xlu1 %4052  ;;  %v4034_v23 = vmul.f32 %v9931_v54, %v9017_v16 }
 0x3c4   : > { %v3910_v32 = vpop.permute.xlu0 %3909  ;;  %v3729_v14 = vadd.f32 %v8896_v6, %v3683_v51  ;;  %v3807_v60 = vadd.f32 %v8940_v48, %v3755_v46  ;;  %v9039_v6 = vld [vmem:[#allocation2 + $0x6] sm:$0xff]  ;;  %v9798_v48 = vstv %s9000_s3 }
 0x3c5   : > { %3989 = vrot.lane.b32.xlu1 %v3984_v56, %s9903_s22 }
 0x3c6   : > { %4615 = vrot.lane.b32.xlu0 %v4611_v18, %s9887_s25  ;;  %v3781_v56 = vadd.f32 %v8921_v43, %v3729_v14  ;;  %v3863_v52 = vadd.f32 %v3858_v13, %v3807_v60  ;;  %v9792_v18 = vstv %s9006_s27  ;;  %v9933_v43 = vstv %s9930_s9  ;;  %s9092_s9 = sld [smem:[#allocation3 + $0x40]] }
 0x3c7   : > { %v4079_v24 = vpop.permute.xlu1 %4078  ;;  %v4060_v13 = vmul.f32 %v9933_v43, %v9017_v16  ;;  %v4739_v60 = vmul.f32 %v9798_v48, %v9039_v6 }
 0x3c8   : > { %v3936_v26 = vpop.permute.xlu0 %3935  ;;  %v3837_v51 = vadd.f32 %v8956_v42, %v3781_v56  ;;  %v3915_v46 = vadd.f32 %v3910_v32, %v3863_v52  ;;  %v4013_v42 = vmul.f32 %v9792_v18, %v8651_v37  ;;  %v9793_v52 = vstv %s9027_s8  ;;  %s9117_s8 = sld [smem:[#allocation3 + $0x44]] }
 0x3c9   : > { %4039 = vrot.lane.b32.xlu1 %v4034_v23, %s9875_s4 }
 0x3ca   : > { %4667 = vrot.lane.b32.xlu0 %v4663_v4, %s9903_s22  ;;  %v3889_v23 = vadd.f32 %v3884_v10, %v3837_v51  ;;  %v9797_v4 = vstv %s9024_s14  ;;  %v9935_v10 = vstv %s9932_s2  ;;  %s9941_s2 = sld [smem:[#allocation39_spill]] }
 0x3cb   : > { %v9047_v54 = vpop.permute.xlu1 %4104  ;;  %v4086_v51 = vmul.f32 %v9935_v10, %v9017_v16 }
 0x3cc   : > { %v3962_v14 = vpop.permute.xlu0 %3961  ;;  %v3941_v32 = vadd.f32 %v3936_v26, %v3889_v23  ;;  %v4023_v26 = vmul.f32 %v9793_v52, %v8651_v37 }
 0x3cd   : > { %v3967_v2 = vadd.f32 %v3962_v14, %v3915_v46  ;;  %4065 = vrot.lane.b32.xlu1 %v4060_v13, %s9875_s4  ;;  %v4791_v13 = vmul.f32 %v9797_v4, %v9039_v6 }
 0x3ce   : > { %4743 = vrot.lane.b32.xlu0 %v4739_v60, %s9875_s4  ;;  %v9794_v60 = vstv %s9042_s0 }
 0x3cf   : > { %v4131_v56 = vpop.permute.xlu1 %4130  ;;  %v9067_v46 = vadd.f32 %v4013_v42, %v3967_v2  ;;  %v9937_v2 = vstv %s9934_s5  ;;  %s9944_s5 = sld [smem:[#allocation40_spill]] }
 0x3d0   : > { %v3988_v43 = vpop.permute.xlu0 %3987  ;;  %v4112_v42 = vmul.f32 %v9937_v2, %v9017_v16  ;;  %v9101_v2 = vld [vmem:[#allocation2 + $0xb] sm:$0xff] }
 0x3d1   : > { %v3993_v14 = vadd.f32 %v3988_v43, %v3941_v32  ;;  %4091 = vrot.lane.b32.xlu1 %v4086_v51, %s9878_s26  ;;  %v4310_v32 = vmul.f32 %v9794_v60, %v8348_v9  ;;  %v9795_v51 = vstv %s9060_s20  ;;  %v9940_v43 = vstv %s9936_s18  ;;  %s9945_s18 = sld [smem:[#allocation46_spill]] }
 0x3d2   : > { %4795 = vrot.lane.b32.xlu0 %v4791_v13, %s9878_s26  ;;  %v4138_v13 = vmul.f32 %v9940_v43, %v9017_v16  ;;  %v9943_v43 = vstv %s9939_s1  ;;  %s9950_s1 = sld [smem:[#allocation47_spill]] }
 0x3d3   : > { %v9078_v23 = vpop.permute.xlu1 %4156  ;;  %v9083_v10 = vadd.f32 %v4023_v26, %v3993_v14  ;;  %v4373_v26 = vmul.f32 %v9795_v51, %v8927_v25  ;;  %v4386_v60 = vmul.f32 %v9943_v43, %v8831_v53  ;;  %v9804_v51 = vstv %s9092_s9 }
 0x3d4   : > { %v9085_v18 = vpop.permute.xlu0 %4037  ;;  %v4425_v43 = vmul.f32 %v9804_v51, %v8927_v25 }
 0x3d5   : > { %4117 = vrot.lane.b32.xlu1 %v4112_v42, %s9878_s26  ;;  %v9942_v42 = vstv %s9938_s6  ;;  %s9949_s6 = sld [smem:[#allocation41_spill]] }
 0x3d6   : > { %4314 = vrot.lane.b32.xlu0 %v4310_v32, %s9903_s22  ;;  %v4168_v32 = vmul.f32 %v9942_v42, %v9101_v2  ;;  %v9946_v42 = vstv %s9941_s2  ;;  %s9137_s2 = sld [smem:[#allocation3 + $0x48]] }
 0x3d7   : > { %v4187_v37 = vpop.permute.xlu1 %4186  ;;  %v4194_v4 = vmul.f32 %v9946_v42, %v9101_v2  ;;  %v9802_v42 = vstv %s9117_s8 }
 0x3d8   : > { %v4064_v14 = vpop.permute.xlu0 %4063 }
 0x3d9   : > { %4143 = vrot.lane.b32.xlu1 %v4138_v13, %s9881_s24  ;;  %v4083_v13 = vadd.f32 %v4079_v24, %v9004_v49  ;;  %v9947_v24 = vstv %s9944_s5  ;;  %s9180_s5 = sld [smem:[#allocation3 + $0x57]] }
 0x3da   : > { %4377 = vrot.lane.b32.xlu0 %v4373_v26, %s9875_s4 }
 0x3db   : > { %v9105_v9 = vpop.permute.xlu1 %4212  ;;  %v4135_v48 = vadd.f32 %v4131_v56, %v4083_v13  ;;  %v9948_v56 = vstv %s9945_s18  ;;  %s9183_s18 = sld [smem:[#allocation3 + $0x38]] }
 0x3dc   : > { %v9110_v52 = vpop.permute.xlu0 %4089  ;;  %v4438_v13 = vmul.f32 %v9948_v56, %v8831_v53  ;;  %v9952_v56 = vstv %s9949_s6 }
 0x3dd   : > { %4173 = vrot.lane.b32.xlu1 %v4168_v32, %s9883_s7  ;;  %v4191_v32 = vadd.f32 %v4187_v37, %v4135_v48  ;;  %v9951_v37 = vstv %s8752_s10  ;;  %s9954_s10 = sld [smem:[#allocation48_spill]] }
 0x3de   : > { %4390 = vrot.lane.b32.xlu0 %v4386_v60, %s9875_s4  ;;  %v4220_v60 = vmul.f32 %v9947_v24, %v9101_v2  ;;  %v4477_v24 = vmul.f32 %v9802_v42, %v8927_v25  ;;  %v9803_v42 = vstv %s9137_s2 }
 0x3df   : > { %v4239_v26 = vpop.permute.xlu1 %4238 }
 0x3e0   : > { %v4116_v28 = vpop.permute.xlu0 %4115  ;;  %v4243_v15 = vadd.f32 %v4239_v26, %v4191_v32 }
 0x3e1   : > { %4199 = vrot.lane.b32.xlu1 %v4194_v4, %s9885_s28 }
 0x3e2   : > { %4429 = vrot.lane.b32.xlu0 %v4425_v43, %s9878_s26  ;;  %v4246_v43 = vmul.f32 %v9951_v37, %v9101_v2 }
 0x3e3   : > { %v4291_v49 = vpop.permute.xlu1 %4290 }
 0x3e4   : > { %v4142_v0 = vpop.permute.xlu0 %4141  ;;  %v4295_v48 = vadd.f32 %v4291_v49, %v4243_v15 }
 0x3e5   : > { %4225 = vrot.lane.b32.xlu1 %v4220_v60, %s9885_s28  ;;  %v4369_v60 = vmul.f32 %v4367_v21, %v8459_v55  ;;  %v9955_v21 = vstv %s8786_s15  ;;  %s9956_s15 = sld [smem:[#allocation49_spill]] }
 0x3e6   : > { %4442 = vrot.lane.b32.xlu0 %v4438_v13, %s9878_s26  ;;  %v4272_v13 = vmul.f32 %v9952_v56, %v9101_v2  ;;  %v4069_v56 = vadd.f32 %v4064_v14, %v9083_v10  ;;  %v4043_v10 = vadd.f32 %v9085_v18, %v9067_v46  ;;  %v4362_v46 = vstv %s9170_s16 }
 0x3e7   : > { %v4343_v4 = vpop.permute.xlu1 %4342 }
 0x3e8   : > { %v4347_v26 = vadd.f32 %v4343_v4, %v4295_v48  ;;  %v4172_v32 = vpop.permute.xlu0 %4171  ;;  %v9953_v48 = vstv %s9950_s1  ;;  %v4121_v51 = vadd.f32 %v4116_v28, %v4069_v56  ;;  %s9998_s1 = sld [smem:[#allocation13_spill]] }
 0x3e9   : > { %4251 = vrot.lane.b32.xlu1 %v4246_v43, %s9887_s25  ;;  %v4490_v4 = vmul.f32 %v9953_v48, %v8831_v53  ;;  %v4324_v43 = vmul.f32 %v9955_v21, %v9101_v2  ;;  %v9957_v21 = vstv %s9954_s10 }
 0x3ea   : > { %4481 = vrot.lane.b32.xlu0 %v4477_v24, %s9881_s24  ;;  %v4371_v15 = vadd.f32 %v4369_v60, %v4347_v26  ;;  %v4533_v24 = vmul.f32 %v9803_v42, %v8962_v57  ;;  %v9166_v60 = vld [vmem:[#allocation2 + $0xc] sm:$0xff]  ;;  %v4546_v42 = vmul.f32 %v9957_v21, %v8850_v11 }
 0x3eb   : > { %v4419_v49 = vpop.permute.xlu1 %4418  ;;  %v4400_v48 = vmul.f32 %v4398_v45, %v9166_v60  ;;  %v4177_v45 = vadd.f32 %v4172_v32, %v4121_v51 }
 0x3ec   : > { %v4198_v37 = vpop.permute.xlu0 %4197 }
 0x3ed   : > { %4277 = vrot.lane.b32.xlu1 %v4272_v13, %s9887_s25 }
 0x3ee   : > { %4494 = vrot.lane.b32.xlu0 %v4490_v4, %s9881_s24  ;;  %s5702_s10 = sshll.u32 %s9998_s1, 12 }
 0x3ef   : > { %v4471_v55 = vpop.permute.xlu1 %4470 }
 0x3f0   : > { %v4224_v26 = vpop.permute.xlu0 %4223 }
 0x3f1   : > { %4329 = vrot.lane.b32.xlu1 %v4324_v43, %s9903_s22  ;;  %v4423_v43 = vadd.f32 %v4419_v49, %v4371_v15  ;;  %v4095_v15 = vadd.f32 %v9110_v52, %v4043_v10  ;;  %v9960_v49 = vstv %s8930_s13  ;;  %v9961_v52 = vstv %s9958_s21  ;;  %s9964_s13 = sld [smem:[#allocation52_spill]] }
 0x3f2   : > { %4537 = vrot.lane.b32.xlu0 %v4533_v24, %s9885_s28  ;;  %v4452_v24 = vmul.f32 %v4450_v19, %v9166_v60 }
 0x3f3   : > { %v4527_v13 = vpop.permute.xlu1 %4526  ;;  %v4475_v28 = vadd.f32 %v4471_v55, %v4423_v43  ;;  %v4147_v51 = vadd.f32 %v4142_v0, %v4095_v15  ;;  %v4508_v55 = vmul.f32 %v9960_v49, %v8472_v1  ;;  %v4363_v0 = vmul.f32 %v4362_v46, %v8927_v25 }
 0x3f4   : > { %v4250_v4 = vpop.permute.xlu0 %4249 }
 0x3f5   : > { %4405 = vrot.lane.b32.xlu1 %v4400_v48, %s9875_s4  ;;  %v9959_v48 = vstv %s9956_s15  ;;  %v4531_v18 = vadd.f32 %v4527_v13, %v4475_v28  ;;  %v4203_v10 = vadd.f32 %v4198_v37, %v4147_v51  ;;  %v4707_v13 = vstv %s9180_s5 }
 0x3f6   : > { %4550 = vrot.lane.b32.xlu0 %v4546_v42, %s9885_s28  ;;  %v4585_v21 = vmul.f32 %v9959_v48, %v8962_v57  ;;  %v4229_v42 = vadd.f32 %v4224_v26, %v4177_v45  ;;  %v4598_v26 = vmul.f32 %v9961_v52, %v8850_v11  ;;  %v9805_v28 = vstv %s9183_s18 }
 0x3f7   : > { %v4579_v14 = vpop.permute.xlu1 %4578  ;;  %v4255_v1 = vadd.f32 %v4250_v4, %v4203_v10  ;;  %v9965_v51 = vstv %s9962_s12  ;;  %v4353_v4 = vmul.f32 %v9805_v28, %v8927_v25  ;;  %v9989_v28 = vstv %s8967_s19  ;;  %s9993_s19 = sld [smem:[#allocation18_spill]] }
 0x3f8   : > { %v4276_v56 = vpop.permute.xlu0 %4275  ;;  %v4583_v43 = vadd.f32 %v4579_v14, %v4531_v18 }
 0x3f9   : > { %4457 = vrot.lane.b32.xlu1 %v4452_v24, %s9878_s26  ;;  %v4281_v19 = vadd.f32 %v4276_v56, %v4229_v42  ;;  %v9210_v56 = vld [vmem:[#allocation2 + $0xd] sm:$0xff] }
 0x3fa   : > { %4589 = vrot.lane.b32.xlu0 %v4585_v21, %s9887_s25  ;;  %v9963_v21 = vstv %s8947_s11  ;;  %s9968_s11 = sld [smem:[#allocation54_spill]] }
 0x3fb   : > { %v4631_v32 = vpop.permute.xlu1 %4630  ;;  %v4560_v37 = vmul.f32 %v9210_v56, %v9963_v21  ;;  %v9252_v21 = vld [vmem:[#allocation2 + $0xe] sm:$0xff] }
 0x3fc   : > { %v4328_v48 = vpop.permute.xlu0 %4327  ;;  %v4635_v24 = vadd.f32 %v4631_v32, %v4583_v43  ;;  %v4709_v32 = vmul.f32 %v4707_v13, %v8490_v59 }
 0x3fd   : > { %v4333_v45 = vadd.f32 %v4328_v48, %v4281_v19  ;;  %4513 = vrot.lane.b32.xlu1 %v4508_v55, %s9883_s7  ;;  %v4637_v19 = vmul.f32 %v9965_v51, %v8962_v57  ;;  %s9966_s7 = sld [smem:[#allocation53_spill]]  ;;  %v9967_v48 = vstv %s8965_s30  ;;  %s9971_s30 = sld [smem:[#allocation55_spill]] }
 0x3fe   : > { %4602 = vrot.lane.b32.xlu0 %v4598_v26, %s9887_s25  ;;  %v4612_v52 = vmul.f32 %v9210_v56, %v9967_v48  ;;  %v9969_v26 = vstv %s9964_s13 }
 0x3ff   : > { %v4683_v14 = vpop.permute.xlu1 %4682  ;;  %v9215_v15 = vadd.f32 %v4363_v0, %v4333_v45  ;;  %v4650_v10 = vmul.f32 %v9969_v26, %v8850_v11  ;;  %v9970_v45 = vstv %s8981_s29  ;;  %s9975_s29 = sld [smem:[#allocation56_spill]] }
 0x400   : > { %v4687_v42 = vadd.f32 %v4683_v14, %v4635_v24  ;;  %v4302_v18 = vpop.permute.xlu0 %4301  ;;  %v4664_v0 = vmul.f32 %v9210_v56, %v9970_v45  ;;  %v9974_v51 = vstv %s9968_s11 }
 0x401   : > { %v4307_v49 = vadd.f32 %v4302_v18, %v4255_v1  ;;  %4565 = vrot.lane.b32.xlu1 %v4560_v37, %s9885_s28  ;;  %v9973_v37 = vstv %s9000_s3  ;;  %s9978_s3 = sld [smem:[#allocation57_spill]] }
 0x402   : > { %4641 = vrot.lane.b32.xlu0 %v4637_v19, %s9903_s22  ;;  %v9226_v55 = vadd.f32 %v4709_v32, %v4687_v42  ;;  %v4740_v42 = vmul.f32 %v9252_v21, %v9973_v37  ;;  %v4726_v19 = vmul.f32 %v9974_v51, %v8890_v61 }
 0x403   : > { %v9228_v43 = vpop.permute.xlu1 %4758  ;;  %v9233_v57 = vadd.f32 %v4353_v4, %v4307_v49  ;;  %v9972_v1 = vstv %s9966_s7  ;;  %v9976_v4 = vstv %s9024_s14  ;;  %v9977_v26 = vstv %s9971_s30  ;;  %s9981_s14 = sld [smem:[#allocation58_spill]]  ;;  %s6264_s7 = smov [#allocation6]  }
 0x404   : > { %v4417_v59 = vpop.permute.xlu0 %4416  ;;  %v4713_v14 = vmul.f32 %v9972_v1, %v9039_v6  ;;  %v4792_v48 = vmul.f32 %v9252_v21, %v9976_v4  ;;  %s6186_s11 = sshll.u32 %s6264_s7, 4  ;;  %s6187_s11 = int_to_ptr.vmem [resolvable:$false] %s6186_s11 }
 0x405   : > { %4617 = vrot.lane.b32.xlu1 %v4612_v52, %s9887_s25  ;;  %v4422_v32 = vadd.f32 %v4417_v59, %v8884_v50  ;;  %v9980_v37 = vstv %s9975_s29  ;;  %s6188_s30 = scalar_lea.vmem %s6187_s11, 8192 }
 0x406   : > { %4654 = vrot.lane.b32.xlu0 %v4650_v10, %s9903_s22  ;;  %v4765_v10 = vmul.f32 %v9977_v26, %v9039_v6 }
 0x407   : > { %v9240_v25 = vpop.permute.xlu1 %4810 }
 0x408   : > { %v4469_v24 = vpop.permute.xlu0 %4468 }
 0x409   : > { %4669 = vrot.lane.b32.xlu1 %v4664_v0, %s9903_s22  ;;  %v4474_v45 = vadd.f32 %v4469_v24, %v4422_v32  ;;  %v9982_v32 = vstv %s9042_s0 }
 0x40a   : > { %4717 = vrot.lane.b32.xlu0 %v4713_v14, %s9875_s4  ;;  %v9979_v14 = vstv %s8798_s23  ;;  %s9322_s23 = sld [smem:[#allocation3 + $0x56]] }
 0x40b   : > { %v9250_v11 = vpop.permute.xlu1 %4264  ;;  %v4298_v50 = vmul.f32 %v9979_v14, %v9101_v2 }
 0x40c   : > { %v4525_v18 = vpop.permute.xlu0 %4524 }
 0x40d   : > { %4745 = vrot.lane.b32.xlu1 %v4740_v42, %s9875_s4  ;;  %v4530_v0 = vadd.f32 %v4525_v18, %v4474_v45  ;;  %v4778_v42 = vmul.f32 %v9980_v37, %v8890_v61  ;;  %v4311_v18 = vmul.f32 %v9982_v32, %v8665_v58 }
 0x40e   : > { %4730 = vrot.lane.b32.xlu0 %v4726_v19, %s9875_s4 }
 0x40f   : > { %v3726_v49 = vpop.permute.xlu1 %3725 }
 0x410   : > { %v4577_v52 = vpop.permute.xlu0 %4576 }
 0x411   : > { %4797 = vrot.lane.b32.xlu1 %v4792_v48, %s9878_s26  ;;  %v4582_v51 = vadd.f32 %v4577_v52, %v4530_v0  ;;  %v9983_v48 = vstv %s9978_s3  ;;  %v9984_v0 = vstv %s9060_s20 }
 0x412   : > { %4769 = vrot.lane.b32.xlu0 %v4765_v10, %s9878_s26  ;;  %v4817_v2 = vmul.f32 %v9983_v48, %v9039_v6  ;;  %v4708_v10 = vmul.f32 %v4707_v13, %v8890_v61  ;;  %v4374_v14 = vmul.f32 %v9984_v0, %v9166_v60 }
 0x413   : > { %v3752_v1 = vpop.permute.xlu1 %3751 }
 0x414   : > { %v4629_v59 = vpop.permute.xlu0 %4628 }
 0x415   : > { %4303 = vrot.lane.b32.xlu1 %v4298_v50, %s9903_s22  ;;  %v4634_v24 = vadd.f32 %v4629_v59, %v4582_v51  ;;  %v9985_v50 = vstv %s9981_s14 }
 0x416   : > { %4782 = vrot.lane.b32.xlu0 %v4778_v42, %s9878_s26  ;;  %v4830_v59 = vmul.f32 %v9985_v50, %v8890_v61 }
 0x417   : > { %v3778_v19 = vpop.permute.xlu1 %3777 }
 0x418   : > { %v4681_v4 = vpop.permute.xlu0 %4680 }
 0x419   : > { %v4686_v26 = vadd.f32 %v4681_v4, %v4634_v24  ;;  %4316 = vrot.lane.b32.xlu1 %v4311_v18, %s9903_s22 }
 0x41a   : > { %4821 = vrot.lane.b32.xlu0 %v4817_v2, %s9881_s24  ;;  %v9986_v2 = vstv %s8949_s17  ;;  %s9990_s17 = sld [smem:[#allocation42_spill]] }
 0x41b   : > { %v3804_v52 = vpop.permute.xlu1 %3803  ;;  %v9288_v45 = vadd.f32 %v4708_v10, %v4686_v26  ;;  %v3674_v26 = vmul.f32 %v9986_v2, %v8861_v63  ;;  %v9987_v10 = vstv %s9092_s9  ;;  %s9995_s9 = sld [smem:[#allocation60_spill]] }
 0x41c   : > { %v9293_v58 = vpop.permute.xlu0 %4756  ;;  %v4426_v0 = vmul.f32 %v9987_v10, %v9166_v60  ;;  %v3684_v10 = vmul.f32 %v9989_v28, %v8861_v63 }
 0x41d   : > { %4379 = vrot.lane.b32.xlu1 %v4374_v14, %s9875_s4 }
 0x41e   : > { %4834 = vrot.lane.b32.xlu0 %v4830_v59, %s9881_s24 }
 0x41f   : > { %v2985_v13 = vpop.f32.mrb[48].mxu1  ;;  %v3834_v37 = vpop.permute.xlu1 %3833 }
 0x420   : > { %v2992_v42 = vrot.slane %v2985_v13, 1  ;;  %v5883_v51 = vpop.f32.mrb[49].mxu1  ;;  %v9300_v24 = vpop.permute.xlu0 %4808 }
 0x421   : > { %v2988_v32 = vpop.f32.mrb[50].mxu1  ;;  %4392 = vrot.lane.b32.xlu1 %v8485_v31, %s9875_s4 }
 0x422   : > { %v2994_v18 = vadd.f32 %v2992_v42, %v2985_v13  ;;  %v5884_v4 = vpop.f32.mrb[51].mxu1 }
 0x423   : > { %v3860_v48 = vpop.permute.xlu1 %3859  ;;  %v9988_v4 = vstv %s9117_s8  ;;  %s5701_s8 = sshll.u32 %s9993_s19, 8 }
 0x424   : > { %v5596_v14 = vmul.f32 -1.442695, %v2994_v18  ;;  %v3700_v50 = vpop.permute.xlu0 %3699  ;;  %v4478_v2 = vmul.f32 %v9988_v4, %v9166_v60  ;;  %v9991_v4 = vstv %s9137_s2  ;;  %s9363_s6 = scalar_lea.vmem %s9995_s9, %s5701_s8 }
 0x425   : > { %v3704_v59 = vadd.f32 %v3700_v50, %v3674_v26  ;;  %4431 = vrot.lane.b32.xlu1 %v4426_v0, %s9878_s26  ;;  %v3730_v26 = vadd.f32 %v3726_v49, %v3684_v10  ;;  %v4534_v49 = vmul.f32 %v9210_v56, %v9991_v4 }
 0x426   : > { %6130 = vpow2.f32 %v5596_v14 }
 0x427   : > { %v3756_v51 = vadd.f32 %v3752_v1, %v3704_v59  ;;  %v3886_v32 = vpop.permute.xlu1 %3885  ;;  %v3782_v50 = vadd.f32 %v3778_v19, %v3730_v26 }
 0x428   : > { %v4404_v31 = vpop.permute.xlu0 %4403 }
 0x429   : > { %4444 = vrot.lane.b32.xlu1 %v8497_v47, %s9878_s26  ;;  %v3808_v13 = vadd.f32 %v3804_v52, %v3756_v51  ;;  %v3838_v52 = vadd.f32 %v3834_v37, %v3782_v50  ;;  %v4409_v63 = vadd.f32 %v4404_v31, %v9215_v15 }
 0x42b   : > { %v3912_v42 = vpop.permute.xlu1 %3911  ;;  %v3864_v0 = vadd.f32 %v3860_v48, %v3808_v13  ;;  %v3890_v48 = vadd.f32 %v3886_v32, %v3838_v52  ;;  %v9994_v32 = vstv %s9990_s17 }
 0x42c   : > { %v4456_v18 = vpop.permute.xlu0 %4455 }
 0x42d   : > { %4483 = vrot.lane.b32.xlu1 %v4478_v2, %s9881_s24  ;;  %v3916_v51 = vadd.f32 %v3912_v42, %v3864_v0  ;;  %v9992_v2 = vstv %s9006_s27  ;;  %v4024_v0 = vmul.f32 %v9994_v32, %v9017_v16  ;;  %s9346_s27 = sld [smem:[#allocation3 + $0x39]]  ;;  %v4895_v32 = vld [vmem:[%s9363_s6 + $0xd8] sm:$0xff] }
 0x42e   : > { %v4014_v10 = vmul.f32 %v9992_v2, %v9017_v16  ;;  %v9355_v16 = vsub.s32 0, %v7987_v12  ;;  %v4762_v2 = vadd.f32 %v9293_v58, %v9288_v45 }
 0x42f   : > { %v3938_v1 = vpop.permute.xlu1 %3937 }
 0x430   : > { %v6131_v14 = vpop.eup %6130  ;;  %v4512_v59 = vpop.permute.xlu0 %4511  ;;  %v3942_v37 = vadd.f32 %v3938_v1, %v3890_v48  ;;  %v4887_v48 = vld [vmem:[%s9363_s6 + $0x98] sm:$0xff] }
 0x431   : > { %v2998_v47 = vadd.f32 1.0, %v6131_v14  ;;  %4496 = vrot.lane.b32.xlu1 %v8502_v7, %s9881_s24  ;;  %v4461_v7 = vadd.f32 %v4456_v18, %v4409_v63  ;;  %v4702_v18 = vstv %s9322_s23 }
 0x433   : > { %v3964_v28 = vpop.permute.xlu1 %3963  ;;  %6132 = vrcp.f32 %v2998_v47  ;;  %v4517_v15 = vadd.f32 %v4512_v59, %v4461_v7  ;;  %v4056_v59 = vadd.f32 %v8776_v27, %v8759_v17  ;;  %v4888_v7 = vld [vmem:[%s9363_s6 + $0xa0] sm:$0xff] }
 0x434   : > { %v3968_v19 = vadd.f32 %v3964_v28, %v3916_v51  ;;  %v4564_v13 = vpop.permute.xlu0 %4563 }
 0x435   : > { %4539 = vrot.lane.b32.xlu1 %v4534_v49, %s9885_s28  ;;  %v4569_v14 = vadd.f32 %v4564_v13, %v4517_v15  ;;  %v4108_v28 = vadd.f32 %v8802_v33, %v4056_v59  ;;  %v4889_v13 = vld [vmem:[%s9363_s6 + $0xa8] sm:$0xff]  ;;  %v4896_v59 = vld [vmem:[%s9363_s6 + $0xe0] sm:$0xff] }
 0x436   : > { %v9332_v42 = vadd.f32 %v4014_v10, %v3968_v19  ;;  %v4886_v19 = vld [vmem:[%s9363_s6 + $0x90] sm:$0xff] }
 0x437   : > { %v3990_v31 = vpop.permute.xlu1 %3989 }
 0x438   : > { %v3994_v26 = vadd.f32 %v3990_v31, %v3942_v37  ;;  %v4616_v56 = vpop.permute.xlu0 %4615  ;;  %v4890_v37 = vld [vmem:[%s9363_s6 + $0xb0] sm:$0xff] }
 0x439   : > { %4552 = vrot.lane.b32.xlu1 %v8510_v35, %s9885_s28  ;;  %v4621_v47 = vadd.f32 %v4616_v56, %v4569_v14  ;;  %v4703_v35 = vmul.f32 %v4702_v18, %v9039_v6  ;;  %v4892_v56 = vld [vmem:[%s9363_s6 + $0xc0] sm:$0xff] }
 0x43a   : > { %v9339_v50 = vadd.f32 %v4024_v0, %v3994_v26  ;;  %v4357_v26 = vstv %s9346_s27  ;;  %v4814_v0 = vadd.f32 %v9300_v24, %v4762_v2 }
 0x43b   : > { %v9342_v1 = vpop.permute.xlu1 %4039 }
 0x43c   : > { %v4668_v52 = vpop.permute.xlu0 %4667 }
 0x43d   : > { %v4673_v51 = vadd.f32 %v4668_v52, %v4621_v47  ;;  %4591 = vrot.lane.b32.xlu1 %v8515_v40, %s9887_s25  ;;  %v6133_v63 = vpop.eup %6132  ;;  %v4160_v40 = vadd.f32 %v8824_v8, %v4108_v28  ;;  %v4897_v47 = vld [vmem:[%s9363_s6 + $0xe8] sm:$0xff] }
 0x43e   : > { %v9369_v33 = vrot.slane %v6133_v63, %v9355_v16  ;;  %v4898_v63 = vld [vmem:[%s9363_s6 + $0xf0] sm:$0xff] }
 0x43f   : > { %v9358_v4 = vpop.permute.xlu1 %4065  ;;  %v4705_v17 = vadd.f32 %v4703_v35, %v4673_v51  ;;  %v4216_v49 = vadd.f32 %v8846_v62, %v4160_v40  ;;  %v4893_v62 = vld [vmem:[%s9363_s6 + $0xc8] sm:$0xff]  ;;  %v4899_v35 = vld [vmem:[%s9363_s6 + $0xf8] sm:$0xff] }
 0x440   : > { %v4744_v27 = vpop.permute.xlu0 %4743  ;;  %v9389_v58 = vmul.f32 %v9369_v33, %v4887_v48  ;;  %v9392_v14 = vmul.f32 %v9369_v33, %v4886_v19  ;;  %v9398_v52 = vmul.f32 %v9369_v33, %v4889_v13  ;;  %v9401_v51 = vmul.f32 %v9369_v33, %v4888_v7 }
 0x441   : > { %4604 = vrot.lane.b32.xlu1 %v8523_v3, %s9887_s25  ;;  %v4749_v8 = vadd.f32 %v4744_v27, %v4705_v17  ;;  %v4891_v3 = vld [vmem:[%s9363_s6 + $0xb8] sm:$0xff]  ;;  %v4268_v15 = vadd.f32 %v8886_v22, %v4216_v49  ;;  %v4894_v22 = vld [vmem:[%s9363_s6 + $0xd0] sm:$0xff]  ;;  %v9412_v40 = vmul.f32 %v9369_v33, %v4893_v62  ;;  %v9415_v27 = vmul.f32 %v9369_v33, %v4892_v56  ;;  %s9465_s25 = sld [smem:[#allocation3 + $0x55]] }
 0x442   : > { %v9404_v24 = vmul.f32 %v9369_v33, %v4891_v3  ;;  %v9418_v49 = vmul.f32 %v9369_v33, %v4895_v32  ;;  %v4358_v19 = vmul.f32 %v4357_v26, %v8831_v53  ;;  %v9424_v13 = vmul.f32 %v9369_v33, %v4894_v22 }
 0x443   : > { %v4092_v10 = vpop.permute.xlu1 %4091  ;;  %v9427_v2 = vmul.f32 %v9369_v33, %v4897_v47  ;;  %v9436_v3 = vmul.f32 %v9369_v33, %v4899_v35  ;;  %v9439_v53 = vmul.f32 %v9369_v33, %v4898_v63 }
 0x444   : > { %v4796_v31 = vpop.permute.xlu0 %4795 }
 0x445   : > { %v4801_v45 = vadd.f32 %v4796_v31, %v4749_v8  ;;  %4643 = vrot.lane.b32.xlu1 %v8528_v41, %s9903_s22  ;;  %v9407_v41 = vmul.f32 %v9369_v33, %v4890_v37  ;;  %v9430_v8 = vmul.f32 %v9369_v33, %v4896_v59 }
 0x447   : > { %v4844_v28 = vadd.f32 %v4814_v0, %v4801_v45  ;;  %v4118_v17 = vpop.permute.xlu1 %4117 }
 0x448   : > { %v4315_v48 = vpop.permute.xlu0 %4314 }
 0x449   : > { %v4320_v7 = vadd.f32 %v4315_v48, %v4268_v15  ;;  %4656 = vrot.lane.b32.xlu1 %v8533_v29, %s9903_s22  ;;  %4848 = vrot.lane.b32.xlu0 %v4844_v28, %s9885_s28  ;;  %v4044_v15 = vadd.f32 %v9342_v1, %v9332_v42 }
 0x44b   : > { %v4144_v37 = vpop.permute.xlu1 %4143  ;;  %v4360_v31 = vadd.f32 %v4358_v19, %v4320_v7  ;;  %v4096_v45 = vadd.f32 %v4092_v10, %v4044_v15 }
 0x44c   : > { %v4378_v62 = vpop.permute.xlu0 %4377 }
 0x44d   : > { %4719 = vrot.lane.b32.xlu1 %v8541_v30, %s9875_s4  ;;  %v4148_v47 = vadd.f32 %v4144_v37, %v4096_v45  ;;  %v4070_v30 = vadd.f32 %v9358_v4, %v9339_v50 }
 0x44f   : > { %v4174_v56 = vpop.permute.xlu1 %4173  ;;  %v4122_v63 = vadd.f32 %v4118_v17, %v4070_v30  ;;  %v4364_v17 = vmul.f32 %v4362_v46, %v9166_v60 }
 0x450   : > { %v4391_v32 = vpop.permute.xlu0 %4390 }
 0x451   : > { %4732 = vrot.lane.b32.xlu1 %v8546_v38, %s9875_s4  ;;  %s9462_s4 = sld [smem:[#allocation3 + $0x54]] }
 0x453   : > { %v4200_v29 = vpop.permute.xlu1 %4199 }
 0x454   : > { %v4430_v0 = vpop.permute.xlu0 %4429  ;;  %v4204_v38 = vadd.f32 %v4200_v29, %v4148_v47 }
 0x455   : > { %4771 = vrot.lane.b32.xlu1 %v8553_v39, %s9878_s26  ;;  %v4178_v39 = vadd.f32 %v4174_v56, %v4122_v63 }
 0x457   : > { %v4226_v22 = vpop.permute.xlu1 %4225  ;;  %v4692_v63 = vstv %s9462_s4 }
 0x458   : > { %v4443_v59 = vpop.permute.xlu0 %4442  ;;  %v4230_v10 = vadd.f32 %v4226_v22, %v4178_v39 }
 0x459   : > { %4784 = vrot.lane.b32.xlu1 %v8558_v36, %s9878_s26 }
 0x45b   : > { %v4252_v35 = vpop.permute.xlu1 %4251 }
 0x45c   : > { %v9453_v28 = vadd.f32 %v4252_v35, %v4204_v38  ;;  %v4482_v42 = vpop.permute.xlu0 %4481 }
 0x45d   : > { %4823 = vrot.lane.b32.xlu1 %v8562_v44, %s9881_s24  ;;  %v4383_v44 = vadd.f32 %v4378_v62, %v9233_v57 }
 0x45f   : > { %v4278_v1 = vpop.permute.xlu1 %4277  ;;  %v4435_v45 = vadd.f32 %v4430_v0, %v4383_v44 }
 0x460   : > { %v4495_v48 = vpop.permute.xlu0 %4494  ;;  %v4282_v36 = vadd.f32 %v4278_v1, %v4230_v10 }
 0x461   : > { %4836 = vrot.lane.b32.xlu1 %v8567_v20, %s9881_s24  ;;  %v4396_v20 = vadd.f32 %v4391_v32, %v4360_v31  ;;  %v4487_v22 = vadd.f32 %v4482_v42, %v4435_v45  ;;  %v4693_v31 = vmul.f32 %v4692_v63, %v9039_v6  ;;  %v4697_v42 = vstv %s9465_s25  ;;  %s9997_s24 = sld [smem:[#allocation10_spill]] }
 0x462   : > { %v4704_v45 = vmul.f32 %v9252_v21, %v4702_v18 }
 0x463   : > { %v4330_v19 = vpop.permute.xlu1 %4329  ;;  %v4448_v46 = vadd.f32 %v4443_v59, %v4396_v20 }
 0x464   : > { %v4334_v50 = vadd.f32 %v4330_v19, %v4282_v36  ;;  %v4538_v4 = vpop.permute.xlu0 %4537 }
 0x465   : > { %v4543_v38 = vadd.f32 %v4538_v4, %v4487_v22  ;;  %v4500_v39 = vadd.f32 %v4495_v48, %v4448_v46  ;;  %v4698_v48 = vmul.f32 %v4697_v42, %v8890_v61 }
 0x466   : > { %v4366_v7 = vadd.f32 %v4364_v17, %v4334_v50 }
 0x467   : > { %v4406_v37 = vpop.permute.xlu1 %4405  ;;  %s298_s26 = sand.u32 1, %s9997_s24  }
 0x468   : > { %v4551_v29 = vpop.permute.xlu0 %4550  ;;  %v4410_v35 = vadd.f32 %v4406_v37, %v4366_v7  ;;  %s9638_s12 = scalar_lea.sflag [#allocation4], %s298_s26 }
 0x469   : > { %v4556_v36 = vadd.f32 %v4551_v29, %v4500_v39 }
 0x46b   : > { %v4458_v56 = vpop.permute.xlu1 %4457 }
 0x46c   : > { %v4590_v15 = vpop.permute.xlu0 %4589  ;;  %v4462_v57 = vadd.f32 %v4458_v56, %v4410_v35 }
 0x46d   : > { %v4595_v1 = vadd.f32 %v4590_v15, %v4543_v38 }
 0x46f   : > { %v4514_v47 = vpop.permute.xlu1 %4513 }
 0x470   : > { %v4603_v30 = vpop.permute.xlu0 %4602  ;;  %v4518_v32 = vadd.f32 %v4514_v47, %v4462_v57  ;;  %v4057_v47 = vadd.f32 %v9009_v34, %v8985_v5 }
 0x471   : > { %v4608_v19 = vadd.f32 %v4603_v30, %v4556_v36  ;;  %v4763_v30 = vadd.f32 %v9228_v43, %v9226_v55  ;;  %v9996_v55 = vstv %s9183_s18  ;;  %s10000_s18 = sld [smem:[#allocation66_spill]] }
 0x472   : > { %v4109_v38 = vadd.f32 %v9047_v54, %v4057_v47  ;;  %v4354_v43 = vmul.f32 %v9996_v55, %v9166_v60 }
 0x473   : > { %v4566_v10 = vpop.permute.xlu1 %4565  ;;  %v4815_v35 = vadd.f32 %v9240_v25, %v4763_v30 }
 0x474   : > { %v4642_v62 = vpop.permute.xlu0 %4641  ;;  %v4570_v4 = vadd.f32 %v4566_v10, %v4518_v32  ;;  %v4161_v18 = vadd.f32 %v9078_v23, %v4109_v38  ;;  %v6165_v32 = vld [vmem:[#allocation2 + $0x24] sm:$0xff] }
 0x475   : > { %v4647_v0 = vadd.f32 %v4642_v62, %v4595_v1  ;;  %v4359_v23 = vmul.f32 %v6165_v32, %v4357_v26 }
 0x476   : > { %v4217_v62 = vadd.f32 %v9105_v9, %v4161_v18 }
 0x477   : > { %v4618_v50 = vpop.permute.xlu1 %4617  ;;  %v4695_v59 = vadd.f32 %v4693_v31, %v4647_v0  ;;  %s9626_s21 = scalar_lea.hbm %s10000_s18, %s5702_s10 }
 0x478   : > { %v4655_v17 = vpop.permute.xlu0 %4654  ;;  %v4622_v37 = vadd.f32 %v4618_v50, %v4570_v4  ;;  %v4269_v54 = vadd.f32 %v9250_v11, %v4217_v62 }
 0x479   : > { %v4660_v7 = vadd.f32 %v4655_v17, %v4608_v19 }
 0x47b   : > { %v4670_v44 = vpop.permute.xlu1 %4669  ;;  %v4700_v56 = vadd.f32 %v4698_v48, %v4660_v7 }
 0x47c   : > { %v4674_v29 = vadd.f32 %v4670_v44, %v4622_v37  ;;  %v4718_v15 = vpop.permute.xlu0 %4717 }
 0x47d   : > { %v4723_v19 = vadd.f32 %v4718_v15, %v4695_v59 }
 0x47e   : > { %v4706_v6 = vadd.f32 %v4704_v45, %v4674_v29 }
 0x47f   : > { %v4746_v20 = vpop.permute.xlu1 %4745 }
 0x480   : > { %v4731_v22 = vpop.permute.xlu0 %4730  ;;  %v4750_v46 = vadd.f32 %v4746_v20, %v4706_v6 }
 0x481   : > { %v4736_v50 = vadd.f32 %v4731_v22, %v4700_v56 }
 0x483   : > { %v4798_v61 = vpop.permute.xlu1 %4797 }
 0x484   : > { %v4802_v39 = vadd.f32 %v4798_v61, %v4750_v46  ;;  %v4770_v1 = vpop.permute.xlu0 %4769 }
 0x485   : > { %v4775_v4 = vadd.f32 %v4770_v1, %v4723_v19 }
 0x486   : > { %v4845_v10 = vadd.f32 %v4815_v35, %v4802_v39 }
 0x487   : > { %v4304_v57 = vpop.permute.xlu1 %4303 }
 0x488   : > { %v4308_v5 = vadd.f32 %v4304_v57, %v9453_v28  ;;  %4850 = vrot.lane.b32.xlu1 %v4845_v10, %s9885_s28  ;;  %v4783_v34 = vpop.permute.xlu0 %4782  ;;  %v4694_v10 = vmul.f32 %v9252_v21, %v4692_v63  ;;  %s5282_s28 = sshll.u32 %s298_s26, 8 }
 0x489   : > { %v4788_v28 = vadd.f32 %v4783_v34, %v4736_v50  ;;  %s9517_s22 = scalar_lea.vmem [#allocation6], %s5282_s28 }
 0x48a   : > { %v4356_v25 = vadd.f32 %v4354_v43, %v4308_v5  ;;  %s5190_s16 = sshll.u32 %s9517_s22, 4  ;;  %s9628_s16 = int_to_ptr.vmem [resolvable:$true] %s5190_s16 }
 0x48b   : > { %v4317_v36 = vpop.permute.xlu1 %4316  ;;  %s6182_s13 = scalar_lea.vmem %s9628_s16, 4096  ;;  %p6189_p13 = scmp.lt.s32.totalorder %s9628_s16, %s6187_s11 }
 0x48c   : > { %v4321_v0 = vadd.f32 %v4317_v36, %v4269_v54  ;;  %v4822_v31 = vpop.permute.xlu0 %4821  ;;  %v6166_v54 = vld [vmem:[#allocation2 + $0x26] sm:$0xff]  ;;  %p6183_p9 = scmp.ne.s32.totalorder %s9628_s16, %s6182_s13  ;;  %p6190_p0 = scmp.lt.s32.totalorder %s6188_s30, %s6182_s13 }
 0x48d   : > { %v4827_v48 = vadd.f32 %v4822_v31, %v4775_v4 }
 0x48e   : > { %v4361_v9 = vadd.f32 %v4359_v23, %v4321_v0  ;;  %p6184_p10 = pnand %p6183_p9, %p6345_p5  ;;  %p6191_p1 = por %p6190_p0, %p6189_p13 }
 0x48f   : > { %v4380_v17 = vpop.permute.xlu1 %4379 }
 0x490   : > { %v4835_v7 = vpop.permute.xlu0 %4834  ;;  %v4384_v30 = vadd.f32 %v4380_v17, %v4356_v25  ;;  %v4699_v25 = vmul.f32 %v6166_v54, %v4697_v42  ;;  %p6185_p12 = pneg %p6184_p10 }
 0x491   : > { %v4840_v37 = vadd.f32 %v4835_v7, %v4788_v28 }
 0x492   : > { %p6192_p2 = pnand %p6191_p1, %p6185_p12 }
 0x493   : > { %v4393_v44 = vpop.permute.xlu1 %4392  ;;  %v4842_v60 = vadd.f32 %v4840_v37, %v4827_v48 }
 0x494   : > { %v4397_v56 = vadd.f32 %v4393_v44, %v4361_v9 }
 0x497   : > { %v4432_v29 = vpop.permute.xlu1 %4431 }
 0x498   : > { %v4436_v59 = vadd.f32 %v4432_v29, %v4384_v30  ;;  %v4949_v29 = vsub.s32 1, %v7987_v12  ;;  %v4982_v30 = vsub.s32 4, %v7987_v12 }
 0x49b   : > { %v4445_v11 = vpop.permute.xlu1 %4444 }
 0x49c   : > { %v4449_v46 = vadd.f32 %v4445_v11, %v4397_v56 }
 0x49f   : > { %v4484_v45 = vpop.permute.xlu1 %4483 }
 0x4a0   : > { %v4488_v15 = vadd.f32 %v4484_v45, %v4436_v59  ;;  %v4960_v45 = vsub.s32 2, %v7987_v12  ;;  %v4993_v59 = vsub.s32 5, %v7987_v12 }
 0x4a3   : > { %v4497_v6 = vpop.permute.xlu1 %4496 }
 0x4a4   : > { %v4501_v38 = vadd.f32 %v4497_v6, %v4449_v46  ;;  %v5015_v46 = vsub.s32 7, %v7987_v12 }
 0x4a7   : > { %v4540_v20 = vpop.permute.xlu1 %4539 }
 0x4a8   : > { %v4544_v61 = vadd.f32 %v4540_v20, %v4488_v15  ;;  %v4971_v20 = vsub.s32 3, %v7987_v12  ;;  %v5004_v15 = vsub.s32 6, %v7987_v12 }
 0x4ab   : > { %v4553_v47 = vpop.permute.xlu1 %4552 }
 0x4ac   : > { %v4557_v1 = vadd.f32 %v4553_v47, %v4501_v38 }
 0x4af   : > { %v4592_v26 = vpop.permute.xlu1 %4591 }
 0x4b0   : > { %v4596_v35 = vadd.f32 %v4592_v26, %v4544_v61 }
 0x4b3   : > { %v4605_v22 = vpop.permute.xlu1 %4604 }
 0x4b4   : > { %v4609_v57 = vadd.f32 %v4605_v22, %v4557_v1 }
 0x4b7   : > { %v4644_v39 = vpop.permute.xlu1 %4643 }
 0x4b8   : > { %v4648_v18 = vadd.f32 %v4644_v39, %v4596_v35 }
 0x4ba   : > { %v4696_v62 = vadd.f32 %v4694_v10, %v4648_v18 }
 0x4bb   : > { %v4657_v5 = vpop.permute.xlu1 %4656  ;;  %v4849_v34 = vpop.permute.xlu0 %4848 }
 0x4bc   : > { %v4661_v55 = vadd.f32 %v4657_v5, %v4609_v57  ;;  %v4854_v43 = vadd.f32 %v4849_v34, %v4842_v60 }
 0x4be   : > { %v5694_v36 = vmul.f32 -1.442695, %v4854_v43  ;;  %v4701_v0 = vadd.f32 %v4699_v25, %v4661_v55  ;;  %v4868_v25 = vld [vmem:[%s9363_s6] sm:$0xff] }
 0x4bf   : > { %v4720_v31 = vpop.permute.xlu1 %4719 }
 0x4c0   : > { %6134 = vpow2.f32 %v5694_v36  ;;  %v4724_v63 = vadd.f32 %v4720_v31, %v4696_v62 }
 0x4c3   : > { %v4733_v32 = vpop.permute.xlu1 %4732 }
 0x4c4   : > { %v4737_v4 = vadd.f32 %v4733_v32, %v4701_v0  ;;  %v4904_v0 = vmul.f32 %v9369_v33, %v4868_v25 }
 0x4c7   : > { %v4772_v23 = vpop.permute.xlu1 %4771 }
 0x4c8   : > { %v4776_v28 = vadd.f32 %v4772_v23, %v4724_v63  ;;  %v4871_v23 = vld [vmem:[%s9363_s6 + $0x18] sm:$0xff] }
 0x4ca   : > { %v6135_v19 = vpop.eup %6134 }
 0x4cb   : > { %v4862_v50 = vadd.f32 1.0, %v6135_v19  ;;  %v4785_v9 = vpop.permute.xlu1 %4784  ;;  %v4870_v19 = vld [vmem:[%s9363_s6 + $0x10] sm:$0xff] }
 0x4cc   : > { %v4789_v17 = vadd.f32 %v4785_v9, %v4737_v4  ;;  %v4906_v63 = vmul.f32 %v9369_v33, %v4870_v19 }
 0x4cd   : > { %6136 = vrcp.f32 %v4862_v50 }
 0x4cf   : > { %v4824_v21 = vpop.permute.xlu1 %4823 }
 0x4d0   : > { %v4828_v48 = vadd.f32 %v4824_v21, %v4776_v28  ;;  %v4907_v21 = vmul.f32 %v9369_v33, %v4871_v23  ;;  %v4882_v23 = vld [vmem:[%s9363_s6 + $0x70] sm:$0xff] }
 0x4d3   : > { %v4837_v7 = vpop.permute.xlu1 %4836 }
 0x4d4   : > { %v4841_v37 = vadd.f32 %v4837_v7, %v4789_v17  ;;  %v4873_v17 = vld [vmem:[%s9363_s6 + $0x28] sm:$0xff]  ;;  %v4872_v7 = vld [vmem:[%s9363_s6 + $0x20] sm:$0xff] }
 0x4d6   : > { %v4843_v44 = vadd.f32 %v4841_v37, %v4828_v48 }
 0x4d7   : > { %v6137_v42 = vpop.eup %6136 }
 0x4d8   : > { %v4939_v60 = vrot.slane %v6137_v42, %v9355_v16  ;;  %v4950_v11 = vrot.slane %v6137_v42, %v4949_v29  ;;  %v4961_v6 = vrot.slane %v6137_v42, %v4960_v45  ;;  %v4972_v47 = vrot.slane %v6137_v42, %v4971_v20 }
 0x4d9   : > { %v4983_v26 = vrot.slane %v6137_v42, %v4982_v30  ;;  %v4994_v56 = vrot.slane %v6137_v42, %v4993_v59  ;;  %v5005_v22 = vrot.slane %v6137_v42, %v5004_v15  ;;  %v5016_v61 = vrot.slane %v6137_v42, %v5015_v46 }
 0x4da   : > { %4945 = vbcast.lane.b32.xlu1 %v4939_v60, 264  ;;  %4941 = vbcast.lane.b32.xlu0 %v4939_v60, 256  ;;  %v4908_v42 = vmul.f32 %v9369_v33, %v4872_v7  ;;  %v4885_v7 = vld [vmem:[%s9363_s6 + $0x88] sm:$0xff] }
 0x4de   : > { %4956 = vbcast.lane.b32.xlu1 %v4950_v11, 264  ;;  %4952 = vbcast.lane.b32.xlu0 %v4950_v11, 256  ;;  %v4875_v11 = vld [vmem:[%s9363_s6 + $0x38] sm:$0xff] }
 0x4e2   : > { %4967 = vbcast.lane.b32.xlu1 %v4961_v6, 264  ;;  %4963 = vbcast.lane.b32.xlu0 %v4961_v6, 256 }
 0x4e6   : > { %4978 = vbcast.lane.b32.xlu1 %v4972_v47, 264  ;;  %4974 = vbcast.lane.b32.xlu0 %v4972_v47, 256  ;;  %v4911_v47 = vmul.f32 %v9369_v33, %v4875_v11 }
 0x4ea   : > { %4989 = vbcast.lane.b32.xlu1 %v4983_v26, 264  ;;  %4985 = vbcast.lane.b32.xlu0 %v4983_v26, 256 }
 0x4ee   : > { %5000 = vbcast.lane.b32.xlu1 %v4994_v56, 264  ;;  %4996 = vbcast.lane.b32.xlu0 %v4994_v56, 256  ;;  %v4877_v56 = vld [vmem:[%s9363_s6 + $0x48] sm:$0xff] }
 0x4f2   : > { %5011 = vbcast.lane.b32.xlu1 %v5005_v22, 264  ;;  %5007 = vbcast.lane.b32.xlu0 %v5005_v22, 256 }
 0x4f6   : > { %5022 = vbcast.lane.b32.xlu1 %v5016_v61, 264  ;;  %5018 = vbcast.lane.b32.xlu0 %v5016_v61, 256  ;;  %v4913_v61 = vmul.f32 %v9369_v33, %v4877_v56 }
 0x4fa   : > { %v4851_v38 = vpop.permute.xlu1 %4850 }
 0x4fb   : > { %v4855_v35 = vadd.f32 %v4851_v38, %v4843_v44  ;;  %v4909_v44 = vmul.f32 %v9369_v33, %v4873_v17 }
 0x4fd   : > { %v5695_v39 = vmul.f32 -1.442695, %v4855_v35 }
 0x4ff   : > { %6138 = vpow2.f32 %v5695_v39 }
 0x509   : > { %v6139_v1 = vpop.eup %6138 }
 0x50a   : > { %v4863_v18 = vadd.f32 1.0, %v6139_v1  ;;  %v4879_v1 = vld [vmem:[%s9363_s6 + $0x58] sm:$0xff] }
 0x50c   : > { %6140 = vrcp.f32 %v4863_v18  ;;  %v4878_v18 = vld [vmem:[%s9363_s6 + $0x50] sm:$0xff] }
 0x516   : > { %v6141_v10 = vpop.eup %6140 }
 0x517   : > { %v5027_v57 = vrot.slane %v6141_v10, %v9355_v16  ;;  %v5038_v62 = vrot.slane %v6141_v10, %v4949_v29  ;;  %v5049_v5 = vrot.slane %v6141_v10, %v4960_v45  ;;  %v5060_v34 = vrot.slane %v6141_v10, %v4971_v20  ;;  %v4869_v16 = vld [vmem:[%s9363_s6 + $0x8] sm:$0xff]  ;;  %v4874_v45 = vld [vmem:[%s9363_s6 + $0x30] sm:$0xff] }
 0x518   : > { %v5071_v55 = vrot.slane %v6141_v10, %v4982_v30  ;;  %v5082_v12 = vrot.slane %v6141_v10, %v4993_v59  ;;  %v5093_v43 = vrot.slane %v6141_v10, %v5004_v15  ;;  %v5104_v54 = vrot.slane %v6141_v10, %v5015_v46  ;;  %v4876_v15 = vld [vmem:[%s9363_s6 + $0x40] sm:$0xff] }
 0x519   : > { %5033 = vbcast.lane.b32.xlu1 %v5027_v57, 264  ;;  %5029 = vbcast.lane.b32.xlu0 %v5027_v57, 256  ;;  %v4905_v36 = vmul.f32 %v9369_v33, %v4869_v16  ;;  %v4910_v30 = vmul.f32 %v9369_v33, %v4874_v45  ;;  %v4912_v38 = vmul.f32 %v9369_v33, %v4876_v15 }
 0x51d   : > { %5044 = vbcast.lane.b32.xlu1 %v5038_v62, 264  ;;  %5040 = vbcast.lane.b32.xlu0 %v5038_v62, 256  ;;  %v4915_v62 = vmul.f32 %v9369_v33, %v4879_v1 }
 0x521   : > { %5055 = vbcast.lane.b32.xlu1 %v5049_v5, 264  ;;  %5051 = vbcast.lane.b32.xlu0 %v5049_v5, 256  ;;  %v4914_v5 = vmul.f32 %v9369_v33, %v4878_v18 }
 0x525   : > { %5066 = vbcast.lane.b32.xlu1 %v5060_v34, 264  ;;  %5062 = vbcast.lane.b32.xlu0 %v5060_v34, 256 }
 0x529   : > { %5077 = vbcast.lane.b32.xlu1 %v5071_v55, 264  ;;  %5073 = vbcast.lane.b32.xlu0 %v5071_v55, 256 }
 0x52d   : > { %5088 = vbcast.lane.b32.xlu1 %v5082_v12, 264  ;;  %5084 = vbcast.lane.b32.xlu0 %v5082_v12, 256  ;;  %v4881_v12 = vld [vmem:[%s9363_s6 + $0x68] sm:$0xff] }
 0x52e   : > { %v4917_v25 = vmul.f32 %v9369_v33, %v4881_v12 }
 0x531   : > { %5099 = vbcast.lane.b32.xlu1 %v5093_v43, 264  ;;  %5095 = vbcast.lane.b32.xlu0 %v5093_v43, 256  ;;  %v4880_v43 = vld [vmem:[%s9363_s6 + $0x60] sm:$0xff] }
 0x535   : > { %5110 = vbcast.lane.b32.xlu1 %v5104_v54, 264  ;;  %5106 = vbcast.lane.b32.xlu0 %v5104_v54, 256 }
 0x54c   : > { %v4946_v31 = vpop.permute.xlu1 %4945  ;;  %v4942_v32 = vpop.permute.xlu0 %4941 }
 0x54d   : > { %v5113_v50 = vmul.f32 %v4946_v31, %v4905_v36  ;;  %v5112_v9 = vmul.f32 %v4942_v32, %v4904_v0  ;;  %v4916_v36 = vmul.f32 %v9369_v33, %v4880_v43  ;;  %v4883_v32 = vld [vmem:[%s9363_s6 + $0x78] sm:$0xff] }
 0x54f   : > { %5145 = vst.msk [vmem:[%s9517_s22 + $0x8] sm:$0xff] %vm2744_vm6, %v5113_v50  ;;  %5144 = vst.msk [vmem:[%s9517_s22] sm:$0xff] %vm2744_vm6, %v5112_v9  ;;  %v4919_v9 = vmul.f32 %v9369_v33, %v4883_v32 }
 0x550   : > { %v4957_v4 = vpop.permute.xlu1 %4956  ;;  %v4953_v28 = vpop.permute.xlu0 %4952 }
 0x551   : > { %v5115_v48 = vmul.f32 %v4957_v4, %v4907_v21  ;;  %v5114_v37 = vmul.f32 %v4953_v28, %v4906_v63  ;;  %v4918_v21 = vmul.f32 %v9369_v33, %v4882_v23 }
 0x553   : > { %5147 = vst.msk [vmem:[%s9517_s22 + $0x18] sm:$0xff] %vm2744_vm6, %v5115_v48  ;;  %5146 = vst.msk [vmem:[%s9517_s22 + $0x10] sm:$0xff] %vm2744_vm6, %v5114_v37  ;;  %v4884_v48 = vld [vmem:[%s9363_s6 + $0x80] sm:$0xff]  ;;  %v4921_v37 = vmul.f32 %v9369_v33, %v4885_v7 }
 0x554   : > { %v4968_v60 = vpop.permute.xlu1 %4967  ;;  %v4964_v29 = vpop.permute.xlu0 %4963 }
 0x555   : > { %v5117_v6 = vmul.f32 %v4968_v60, %v4909_v44  ;;  %v5116_v20 = vmul.f32 %v4964_v29, %v4908_v42  ;;  %v4920_v44 = vmul.f32 %v9369_v33, %v4884_v48 }
 0x557   : > { %5149 = vst.msk [vmem:[%s9517_s22 + $0x28] sm:$0xff] %vm2744_vm6, %v5117_v6  ;;  %5148 = vst.msk [vmem:[%s9517_s22 + $0x20] sm:$0xff] %vm2744_vm6, %v5116_v20 }
 0x558   : > { %v4979_v26 = vpop.permute.xlu1 %4978  ;;  %v4975_v59 = vpop.permute.xlu0 %4974 }
 0x559   : > { %v5119_v22 = vmul.f32 %v4979_v26, %v4911_v47  ;;  %v5118_v46 = vmul.f32 %v4975_v59, %v4910_v30 }
 0x55b   : > { %5151 = vst.msk [vmem:[%s9517_s22 + $0x38] sm:$0xff] %vm2744_vm6, %v5119_v22  ;;  %5150 = vst.msk [vmem:[%s9517_s22 + $0x30] sm:$0xff] %vm2744_vm6, %v5118_v46 }
 0x55c   : > { %v4990_v35 = vpop.permute.xlu1 %4989  ;;  %v4986_v39 = vpop.permute.xlu0 %4985 }
 0x55d   : > { %v5121_v10 = vmul.f32 %v4990_v35, %v4913_v61  ;;  %v5120_v57 = vmul.f32 %v4986_v39, %v4912_v38 }
 0x55f   : > { %5153 = vst.msk [vmem:[%s9517_s22 + $0x48] sm:$0xff] %vm2744_vm6, %v5121_v10  ;;  %5152 = vst.msk [vmem:[%s9517_s22 + $0x40] sm:$0xff] %vm2744_vm6, %v5120_v57 }
 0x560   : > { %v5001_v34 = vpop.permute.xlu1 %5000  ;;  %v4997_v55 = vpop.permute.xlu0 %4996 }
 0x561   : > { %v5123_v54 = vmul.f32 %v5001_v34, %v4915_v62  ;;  %v5122_v16 = vmul.f32 %v4997_v55, %v4914_v5 }
 0x563   : > { %5155 = vst.msk [vmem:[%s9517_s22 + $0x58] sm:$0xff] %vm2744_vm6, %v5123_v54  ;;  %5154 = vst.msk [vmem:[%s9517_s22 + $0x50] sm:$0xff] %vm2744_vm6, %v5122_v16 }
 0x564   : > { %v5012_v0 = vpop.permute.xlu1 %5011  ;;  %v5008_v31 = vpop.permute.xlu0 %5007 }
 0x565   : > { %v5125_v19 = vmul.f32 %v5012_v0, %v4917_v25  ;;  %v5124_v50 = vmul.f32 %v5008_v31, %v4916_v36 }
 0x567   : > { %5157 = vst.msk [vmem:[%s9517_s22 + $0x68] sm:$0xff] %vm2744_vm6, %v5125_v19  ;;  %5156 = vst.msk [vmem:[%s9517_s22 + $0x60] sm:$0xff] %vm2744_vm6, %v5124_v50 }
 0x568   : > { %v5023_v63 = vpop.permute.xlu1 %5022  ;;  %v5019_v4 = vpop.permute.xlu0 %5018 }
 0x569   : > { %v5127_v28 = vmul.f32 %v5023_v63, %v4919_v9  ;;  %v5126_v17 = vmul.f32 %v5019_v4, %v4918_v21 }
 0x56b   : > { %5159 = vst.msk [vmem:[%s9517_s22 + $0x78] sm:$0xff] %vm2744_vm6, %v5127_v28  ;;  %5158 = vst.msk [vmem:[%s9517_s22 + $0x70] sm:$0xff] %vm2744_vm6, %v5126_v17 }
 0x58b   : > { %v5034_v42 = vpop.permute.xlu1 %5033  ;;  %v5030_v60 = vpop.permute.xlu0 %5029 }
 0x58c   : > { %v5129_v29 = vmul.f32 %v5034_v42, %v4921_v37  ;;  %v5128_v11 = vmul.f32 %v5030_v60, %v4920_v44 }
 0x58e   : > { %5161 = vst.msk [vmem:[%s9517_s22 + $0x88] sm:$0xff] %vm2744_vm6, %v5129_v29  ;;  %5160 = vst.msk [vmem:[%s9517_s22 + $0x80] sm:$0xff] %vm2744_vm6, %v5128_v11 }
 0x58f   : > { %v5045_v45 = vpop.permute.xlu1 %5044  ;;  %v5041_v6 = vpop.permute.xlu0 %5040 }
 0x590   : > { %v5131_v20 = vmul.f32 %v5045_v45, %v9389_v58  ;;  %v5130_v47 = vmul.f32 %v5041_v6, %v9392_v14 }
 0x592   : > { %5163 = vst.msk [vmem:[%s9517_s22 + $0x98] sm:$0xff] %vm2744_vm6, %v5131_v20  ;;  %5162 = vst.msk [vmem:[%s9517_s22 + $0x90] sm:$0xff] %vm2744_vm6, %v5130_v47 }
 0x593   : > { %v5056_v33 = vpop.permute.xlu1 %5055  ;;  %v5052_v30 = vpop.permute.xlu0 %5051 }
 0x594   : > { %v5133_v26 = vmul.f32 %v5056_v33, %v9398_v52  ;;  %v5132_v59 = vmul.f32 %v5052_v30, %v9401_v51 }
 0x596   : > { %5165 = vst.msk [vmem:[%s9517_s22 + $0xa8] sm:$0xff] %vm2744_vm6, %v5133_v26  ;;  %5164 = vst.msk [vmem:[%s9517_s22 + $0xa0] sm:$0xff] %vm2744_vm6, %v5132_v59 }
 0x597   : > { %v5067_v56 = vpop.permute.xlu1 %5066  ;;  %v5063_v58 = vpop.permute.xlu0 %5062 }
 0x598   : > { %v5135_v14 = vmul.f32 %v5067_v56, %v9404_v24  ;;  %v5134_v15 = vmul.f32 %v5063_v58, %v9407_v41 }
 0x59a   : > { %5167 = vst.msk [vmem:[%s9517_s22 + $0xb8] sm:$0xff] %vm2744_vm6, %v5135_v14  ;;  %5166 = vst.msk [vmem:[%s9517_s22 + $0xb0] sm:$0xff] %vm2744_vm6, %v5134_v15 }
 0x59b   : > { %v5078_v22 = vpop.permute.xlu1 %5077  ;;  %v5074_v52 = vpop.permute.xlu0 %5073 }
 0x59c   : > { %v5137_v51 = vmul.f32 %v5078_v22, %v9412_v40  ;;  %v5136_v46 = vmul.f32 %v5074_v52, %v9415_v27 }
 0x59e   : > { %5169 = vst.msk [vmem:[%s9517_s22 + $0xc8] sm:$0xff] %vm2744_vm6, %v5137_v51  ;;  %5168 = vst.msk [vmem:[%s9517_s22 + $0xc0] sm:$0xff] %vm2744_vm6, %v5136_v46 }
 0x59f   : > { %v5089_v24 = vpop.permute.xlu1 %5088  ;;  %v5085_v41 = vpop.permute.xlu0 %5084 }
 0x5a0   : > { %v5139_v61 = vmul.f32 %v5089_v24, %v9418_v49  ;;  %v5138_v38 = vmul.f32 %v5085_v41, %v9424_v13 }
 0x5a2   : > { %5171 = vst.msk [vmem:[%s9517_s22 + $0xd8] sm:$0xff] %vm2744_vm6, %v5139_v61  ;;  %5170 = vst.msk [vmem:[%s9517_s22 + $0xd0] sm:$0xff] %vm2744_vm6, %v5138_v38 }
 0x5a3   : > { %v5100_v40 = vpop.permute.xlu1 %5099  ;;  %v5096_v27 = vpop.permute.xlu0 %5095 }
 0x5a4   : > { %v5141_v35 = vmul.f32 %v5100_v40, %v9427_v2  ;;  %v5140_v39 = vmul.f32 %v5096_v27, %v9430_v8 }
 0x5a6   : > { %5173 = vst.msk [vmem:[%s9517_s22 + $0xe8] sm:$0xff] %vm2744_vm6, %v5141_v35  ;;  %5172 = vst.msk [vmem:[%s9517_s22 + $0xe0] sm:$0xff] %vm2744_vm6, %v5140_v39 }
 0x5a7   : > { %v5111_v49 = vpop.permute.xlu1 %5110  ;;  %v5107_v13 = vpop.permute.xlu0 %5106 }
 0x5a8   : > { %v5143_v2 = vmul.f32 %v5111_v49, %v9436_v3  ;;  %v5142_v8 = vmul.f32 %v5107_v13, %v9439_v53 }
 0x5aa   : > { %5175 = vst.msk [vmem:[%s9517_s22 + $0xf8] sm:$0xff] %vm2744_vm6, %v5143_v2  ;;  %5174 = vst.msk [vmem:[%s9517_s22 + $0xf0] sm:$0xff] %vm2744_vm6, %v5142_v8 }
 0x5ab   : > { %6195 = shalt.err (!%p6192_p2)
}
 0x5ac   : > { %s6196_s29 = scalar_lea.hbm %s9626_s21, 4096  ;;  %s6200_s23 = scalar_lea.hbm %s10000_s18, 8192 }
 0x5ad   : > { %p6197_p3 = scmp.ne.s32.totalorder %s9626_s21, %s6196_s29  ;;  %p6201_p8 = scmp.lt.u32.totalorder %s9626_s21, %s10000_s18 }
 0x5ae   : > { %p6202_p11 = scmp.lt.u32.totalorder %s6200_s23, %s6196_s29  ;;  %p6204_p10 = scmp.lt.u32.totalorder %s6196_s29, %s9626_s21 }
 0x5af   : > { %p6198_p4 = pnand %p6197_p3, %p6345_p5 }
 0x5b0   : > { %p6203_p9 = por %p6202_p11, %p6201_p8 }
 0x5b1   : > { %p6199_p7 = pneg %p6198_p4 }
 0x5b2   : > { %p6205_p12 = por %p6204_p10, %p6203_p9 }
 0x5b4   : > { %p6206_p13 = pnand %p6205_p12, %p6199_p7 }
 0x5b6   : > { %6209 = shalt.err (!%p6206_p13)
}
 0x5b7   : > { %s6265_s27 = smov 128   ;;  %s6266_s8 = smov 8  }
 0x5b8   : > { %5906 = dma.vmem_to_hbm [thread:$0]  (%p6345_p5), %s9628_s16, 4096, %s9626_s21, %s9638_s12, %s6265_s27, %s6265_s27, %s6266_s8  }
 0x5b9 PF: > { %s10001_s0 = sld [smem:[#allocation12_spill]]  ;;  %s10002_s20 = sld [smem:[#allocation9_spill]] }
 0x5bf   : > { %p5918_p0 = scmp.ge.s32.totalorder %s10001_s0, 2  ;;  %s5205_s6 = sand.u32 1, %s10002_s20  }
 0x5c0   : > { %s5206_s4 = scalar_lea.sflag [#allocation4], %s5205_s6 }
 0x5c1   : > { %p5913_p1 = pnand %p5918_p0, %p6349_p6 }
 0x5c3   : > { %6231 = dma.done.wait (!%p5913_p1), %s5206_s4, 4096  }
 0x5c4   : > { %6233 = vsyncadd (!%p5913_p1), %s5206_s4, 4294963200  ;;  %s10004_s27 = sld [smem:[#allocation14_spill]]  ;;  %s10005_s24 = sld [smem:[#allocation10_spill]] }
 0x5c5   : > { %s10006_s25 = sld [smem:[#allocation11_spill]]  ;;  %s10007_s26 = sld [smem:[#allocation15_spill]] }
 0x5ca   : > { %p18_p2 = scmp.ge.s32.totalorder %s10004_s27, 4  }
 0x5cc   :  { %20 = sbr.rel (!%p18_p2) target bundleno = 13 (0xd), region = 94 }
 0x5d3   :  { %5211 = vsyncpa [#allocation4], 1 }
 0x5d4   :  { %5213 = vsyncpa [#allocation4 + $0x1], 1 }
 0x5d5   :  { %5214 = vsyncpa [#allocation5], 1 }
 0x5d6   :  { %5216 = vsyncpa [#allocation5 + $0x1], 1 }

</bundles_post_ra>
